<compile_context>
chip_gen: v5e
topology: v5e:2x2
jax: 0.10.0
libtpu: 0.0.40
codegen_flags: <defaults>
</compile_context>

<pallas_src>
import functools

import jax
import jax.numpy as jnp
from jax.experimental import pallas as pl
from jax.experimental.pallas import tpu as pltpu


def _round_up(n, m):
    return ((n + m - 1) // m) * m


def _cdiv(a, b):
    return -(-a // b)


def _sigmoid(x):
    # Single EUP tanh instead of exp + divide.
    return 0.5 * jnp.tanh(0.5 * x) + 0.5


def _activation(h, kind):
    if kind == 1:
        return jnp.maximum(h, 0.0)          # ReLU
    elif kind == 2:
        return _sigmoid(h)                  # Sigmoid (tanh form)
    elif kind == 3:
        return jnp.tanh(h)                  # Tanh
    else:
        raise ValueError(f"unsupported activation code {kind}")


def _dnn_kernel(x_ref, w1_ref, b1_ref, w2_ref, b2_ref, w3_ref, b3_ref,
                o_ref, xpad_ref, *, activation, in_size, out_size):
    tb, in_pad = xpad_ref.shape

    # Fused pad + cast of the input tile (no wrapper pass over x).
    if in_pad > in_size:
        xpad_ref[:, in_size:] = jnp.zeros((tb, in_pad - in_size), jnp.bfloat16)
    xpad_ref[:, :in_size] = x_ref[...].astype(jnp.bfloat16)

    # Layer 1: (tb, 512)bf16 @ (512, 1024)bf16 -> f32 acc, + bias.
    h1 = jnp.dot(xpad_ref[...], w1_ref[...],
                 preferred_element_type=jnp.float32) + b1_ref[...]
    h1 = _activation(h1, activation).astype(jnp.bfloat16)

    # Layer 2: (tb, 1024)bf16 @ (1024, 384)bf16.
    h2 = jnp.dot(h1, w2_ref[...],
                 preferred_element_type=jnp.float32) + b2_ref[...]
    h2 = _activation(h2, activation).astype(jnp.bfloat16)

    # Layer 3: (tb, 384)bf16 @ (384, 128)bf16, then final sigmoid on the
    # real output column(s) only; only those columns are written out.
    h3 = jnp.dot(h2, w3_ref[...], preferred_element_type=jnp.float32)
    logits = h3[:, :out_size] + b3_ref[:, :out_size]
    o_ref[...] = _sigmoid(logits).astype(o_ref.dtype)


def init_params(key, input_size=400, output_size=1):
    """Raw f32 params mimicking torch.nn.Linear default init.

    Weights stored transposed vs torch: w has shape (in_features, out_features)
    so the forward is x @ w + b.
    """
    sizes = [(input_size, 1000), (1000, 300), (300, output_size)]
    params = {}
    for i, (fan_in, fan_out) in enumerate(sizes, start=1):
        key, kw, kb = jax.random.split(key, 3)
        bound = 1.0 / jnp.sqrt(float(fan_in))
        params[f"w{i}"] = jax.random.uniform(
            kw, (fan_in, fan_out), jnp.float32, -bound, bound)
        params[f"b{i}"] = jax.random.uniform(
            kb, (1, fan_out), jnp.float32, -bound, bound)
    return params


def prepare_params(raw):
    """Zero-pad lane/contraction dims to multiples of 128, cast weights bf16."""
    def pad2(a, rows, cols):
        return jnp.pad(a, ((0, rows - a.shape[0]), (0, cols - a.shape[1])))

    in_pad = _round_up(raw["w1"].shape[0], 128)     # 400 -> 512
    h1_pad = _round_up(raw["w1"].shape[1], 128)     # 1000 -> 1024
    h2_pad = _round_up(raw["w2"].shape[1], 128)     # 300 -> 384
    out_pad = _round_up(raw["w3"].shape[1], 128)    # 1 -> 128

    return {
        "w1": pad2(raw["w1"], in_pad, h1_pad).astype(jnp.bfloat16),
        "b1": pad2(raw["b1"], 1, h1_pad).astype(jnp.float32),
        "w2": pad2(raw["w2"], h1_pad, h2_pad).astype(jnp.bfloat16),
        "b2": pad2(raw["b2"], 1, h2_pad).astype(jnp.float32),
        "w3": pad2(raw["w3"], h2_pad, out_pad).astype(jnp.bfloat16),
        "b3": pad2(raw["b3"], 1, out_pad).astype(jnp.float32),
        "input_size": raw["w1"].shape[0],
        "output_size": raw["w3"].shape[1],
    }


def dnn_forward(x, prep, activation, *, batch_tile=512):
    """Run the fused 3-layer MLP Pallas kernel.

    x:    (batch, input_size) float32 (consumed directly; no wrapper padding)
    prep: output of prepare_params (padded bf16 weights, padded f32 biases)
    Returns (batch, output_size) float32.
    """
    w1, b1 = prep["w1"], prep["b1"]
    w2, b2 = prep["w2"], prep["b2"]
    w3, b3 = prep["w3"], prep["b3"]

    batch, in_size = x.shape
    assert in_size == prep["input_size"]
    out_size = prep["output_size"]
    in_pad, h1_pad = w1.shape
    h2_pad = w2.shape[1]
    out_pad = w3.shape[1]

    # Batch tile: tiny batches run as one full-batch tile; larger batches use
    # 256-multiples and guarantee >= 2 grid steps so that on v7x both
    # TensorCores get work along the "parallel" batch axis.
    if batch <= 256:
        tb = batch
    else:
        tb = min(batch_tile, _round_up(_cdiv(batch, 2), 256))
    grid = (_cdiv(batch, tb),)

    kernel = functools.partial(_dnn_kernel, activation=activation,
                               in_size=in_size, out_size=out_size)

    out = pl.pallas_call(
        kernel,
        out_shape=jax.ShapeDtypeStruct((batch, out_size), jnp.float32),
        grid=grid,
        in_specs=[
            pl.BlockSpec((tb, in_size), lambda i: (i, 0)),      # x tile (raw f32)
            pl.BlockSpec((in_pad, h1_pad), lambda i: (0, 0)),   # w1 (resident)
            pl.BlockSpec((1, h1_pad), lambda i: (0, 0)),        # b1
            pl.BlockSpec((h1_pad, h2_pad), lambda i: (0, 0)),   # w2
            pl.BlockSpec((1, h2_pad), lambda i: (0, 0)),        # b2
            pl.BlockSpec((h2_pad, out_pad), lambda i: (0, 0)),  # w3
            pl.BlockSpec((1, out_pad), lambda i: (0, 0)),       # b3
        ],
        out_specs=pl.BlockSpec((tb, out_size), lambda i: (i, 0)),
        scratch_shapes=[pltpu.VMEM((tb, in_pad), jnp.bfloat16)],  # padded x tile
        compiler_params=pltpu.CompilerParams(
            dimension_semantics=("parallel",),
            vmem_limit_bytes=48 * 1024 * 1024),
    )(x, w1, b1, w2, b2, w3, b3)

    return out


def reference_forward(x, prep, activation):
    """Pure-JAX reference that mirrors the kernel's bf16 numerics."""
    in_size = prep["input_size"]
    out_size = prep["output_size"]
    w1 = prep["w1"].astype(jnp.float32)[:in_size]
    w2 = prep["w2"].astype(jnp.float32)
    w3 = prep["w3"].astype(jnp.float32)
    b1, b2, b3 = prep["b1"], prep["b2"], prep["b3"]

    xb = x.astype(jnp.bfloat16).astype(jnp.float32)
    h = _activation(xb @ w1 + b1, activation)
    h = h.astype(jnp.bfloat16).astype(jnp.float32)
    h = _activation(h @ w2 + b2, activation)
    h = h.astype(jnp.bfloat16).astype(jnp.float32)
    out = _sigmoid(h @ w3 + b3)
    return out[:, :out_size]


if __name__ == "__main__":
    key = jax.random.PRNGKey(0)
    key, kx = jax.random.split(key)

    batch, input_size, output_size = 8, 400, 1
    x = jax.random.normal(kx, (batch, input_size), jnp.float32)
    raw = init_params(key, input_size=input_size, output_size=output_size)
    prep = prepare_params(raw)

    ok = True
    for activation in (1, 2, 3):  # ReLU / Sigmoid / Tanh variants
        out = jax.block_until_ready(dnn_forward(x, prep, activation))
        ref = reference_forward(x, prep, activation)
        if out.shape != (batch, output_size):
            ok = False
        if not bool(jnp.allclose(out, ref, atol=2e-3, rtol=2e-3)):
            ok = False

    # Also exercise the multi-tile (grid > 1) path with a ragged batch.
    key, kx2 = jax.random.split(key)
    batch2 = 300
    x2 = jax.random.normal(kx2, (batch2, input_size), jnp.float32)
    out2 = jax.block_until_ready(dnn_forward(x2, prep, 1))
    ref2 = reference_forward(x2, prep, 1)
    if out2.shape != (batch2, output_size):
        ok = False
    if not bool(jnp.allclose(out2, ref2, atol=2e-3, rtol=2e-3)):
        ok = False

    if ok:
        print("KERNEL_OK")
    else:
        print("KERNEL_MISMATCH")
</pallas_src>

<mosaic_0001>
module attributes {stable_mosaic.version = 11 : i64} {
  func.func @_dnn_kernel(%arg0: i32, %arg1: memref<8x400xf32, #tpu.memory_space<vmem>>, %arg2: memref<512x1024xbf16, #tpu.memory_space<vmem>>, %arg3: memref<1x1024xf32, #tpu.memory_space<vmem>>, %arg4: memref<1024x384xbf16, #tpu.memory_space<vmem>>, %arg5: memref<1x384xf32, #tpu.memory_space<vmem>>, %arg6: memref<384x128xbf16, #tpu.memory_space<vmem>>, %arg7: memref<1x128xf32, #tpu.memory_space<vmem>>, %arg8: memref<8x1xf32, #tpu.memory_space<vmem>>, %arg9: memref<8x512xbf16, #tpu.memory_space<vmem>>) attributes {dimension_semantics = [#tpu.dimension_semantics<parallel>], iteration_bounds = array<i64: 1>, scalar_prefetch = 0 : i64, scratch_operands = 1 : i64, tpu.core_type = #tpu.core_type<tc>, window_params = [{transform_indices = @transform_0, window_bounds = array<i64: 8, 400>}, {pipeline_mode = #tpu.pipeline_mode<synchronous>, transform_indices = @transform_1, window_bounds = array<i64: 512, 1024>}, {pipeline_mode = #tpu.pipeline_mode<synchronous>, transform_indices = @transform_2, window_bounds = array<i64: 1, 1024>}, {pipeline_mode = #tpu.pipeline_mode<synchronous>, transform_indices = @transform_3, window_bounds = array<i64: 1024, 384>}, {pipeline_mode = #tpu.pipeline_mode<synchronous>, transform_indices = @transform_4, window_bounds = array<i64: 1, 384>}, {pipeline_mode = #tpu.pipeline_mode<synchronous>, transform_indices = @transform_5, window_bounds = array<i64: 384, 128>}, {pipeline_mode = #tpu.pipeline_mode<synchronous>, transform_indices = @transform_6, window_bounds = array<i64: 1, 128>}, {transform_indices = @transform_7, window_bounds = array<i64: 8, 1>}]} {
    %cst = arith.constant 0.000000e+00 : bf16
    %0 = vector.broadcast %cst : bf16 to vector<8x112xbf16>
    %c0 = arith.constant 0 : index
    %c400 = arith.constant 400 : index
    %1 = vector.load %arg9[%c0, %c400] : memref<8x512xbf16, #tpu.memory_space<vmem>>, vector<8x112xbf16>
    tpu.vector_store %arg9[%c0, %c400], %0 {strides = array<i32>} : memref<8x512xbf16, #tpu.memory_space<vmem>>, vector<8x112xbf16>,
    %c0_0 = arith.constant 0 : index
    %c0_1 = arith.constant 0 : index
    %2 = vector.load %arg1[%c0_0, %c0_1] : memref<8x400xf32, #tpu.memory_space<vmem>>, vector<8x400xf32>
    %3 = arith.truncf %2 : vector<8x400xf32> to vector<8x400xbf16>
    %c0_2 = arith.constant 0 : index
    %c0_3 = arith.constant 0 : index
    %4 = vector.load %arg9[%c0_2, %c0_3] : memref<8x512xbf16, #tpu.memory_space<vmem>>, vector<8x400xbf16>
    tpu.vector_store %arg9[%c0_2, %c0_3], %3 {strides = array<i32>} : memref<8x512xbf16, #tpu.memory_space<vmem>>, vector<8x400xbf16>,
    %c0_4 = arith.constant 0 : index
    %c0_5 = arith.constant 0 : index
    %5 = vector.load %arg9[%c0_4, %c0_5] : memref<8x512xbf16, #tpu.memory_space<vmem>>, vector<8x512xbf16>
    %c0_6 = arith.constant 0 : index
    %c0_7 = arith.constant 0 : index
    %6 = vector.load %arg2[%c0_6, %c0_7] : memref<512x1024xbf16, #tpu.memory_space<vmem>>, vector<512x1024xbf16>
    %cst_8 = arith.constant dense<0.000000e+00> : vector<8x1024xf32>
    %7 = tpu.matmul %5, %6, %cst_8 {dimension_numbers = #tpu.dot_dimension_numbers<[1], [0], [0], [1], [0, 0, 1, 1], [], []>} : vector<8x512xbf16>, vector<512x1024xbf16>, vector<8x1024xf32> -> vector<8x1024xf32>
    %c0_9 = arith.constant 0 : index
    %c0_10 = arith.constant 0 : index
    %8 = vector.load %arg3[%c0_9, %c0_10] : memref<1x1024xf32, #tpu.memory_space<vmem>>, vector<1x1024xf32>
    %9 = vector.broadcast %8 : vector<1x1024xf32> to vector<8x1024xf32>
    %10 = arith.addf %7, %9 : vector<8x1024xf32>
    %cst_11 = arith.constant 0.000000e+00 : f32
    %11 = vector.broadcast %cst_11 : f32 to vector<8x1024xf32>
    %12 = arith.maximumf %10, %11 : vector<8x1024xf32>
    %13 = arith.truncf %12 : vector<8x1024xf32> to vector<8x1024xbf16>
    %c0_12 = arith.constant 0 : index
    %c0_13 = arith.constant 0 : index
    %14 = vector.load %arg4[%c0_12, %c0_13] : memref<1024x384xbf16, #tpu.memory_space<vmem>>, vector<1024x384xbf16>
    %cst_14 = arith.constant dense<0.000000e+00> : vector<8x384xf32>
    %15 = tpu.matmul %13, %14, %cst_14 {dimension_numbers = #tpu.dot_dimension_numbers<[1], [0], [0], [1], [0, 0, 1, 1], [], []>} : vector<8x1024xbf16>, vector<1024x384xbf16>, vector<8x384xf32> -> vector<8x384xf32>
    %c0_15 = arith.constant 0 : index
    %c0_16 = arith.constant 0 : index
    %16 = vector.load %arg5[%c0_15, %c0_16] : memref<1x384xf32, #tpu.memory_space<vmem>>, vector<1x384xf32>
    %17 = vector.broadcast %16 : vector<1x384xf32> to vector<8x384xf32>
    %18 = arith.addf %15, %17 : vector<8x384xf32>
    %cst_17 = arith.constant 0.000000e+00 : f32
    %19 = vector.broadcast %cst_17 : f32 to vector<8x384xf32>
    %20 = arith.maximumf %18, %19 : vector<8x384xf32>
    %21 = arith.truncf %20 : vector<8x384xf32> to vector<8x384xbf16>
    %c0_18 = arith.constant 0 : index
    %c0_19 = arith.constant 0 : index
    %22 = vector.load %arg6[%c0_18, %c0_19] : memref<384x128xbf16, #tpu.memory_space<vmem>>, vector<384x128xbf16>
    %cst_20 = arith.constant dense<0.000000e+00> : vector<8x128xf32>
    %23 = tpu.matmul %21, %22, %cst_20 {dimension_numbers = #tpu.dot_dimension_numbers<[1], [0], [0], [1], [0, 0, 1, 1], [], []>} : vector<8x384xbf16>, vector<384x128xbf16>, vector<8x128xf32> -> vector<8x128xf32>
    %24 = vector.extract_strided_slice %23 {offsets = [0, 0], sizes = [8, 1], strides = [1, 1]} : vector<8x128xf32> to vector<8x1xf32>
    %c0_21 = arith.constant 0 : index
    %c0_22 = arith.constant 0 : index
    %25 = vector.load %arg7[%c0_21, %c0_22] : memref<1x128xf32, #tpu.memory_space<vmem>>, vector<1x1xf32>
    %26 = vector.broadcast %25 : vector<1x1xf32> to vector<8x1xf32>
    %27 = arith.addf %24, %26 : vector<8x1xf32>
    %cst_23 = arith.constant 5.000000e-01 : f32
    %28 = vector.broadcast %cst_23 : f32 to vector<8x1xf32>
    %29 = arith.mulf %28, %27 : vector<8x1xf32>
    %30 = math.tanh %29 : vector<8x1xf32>
    %cst_24 = arith.constant 5.000000e-01 : f32
    %31 = vector.broadcast %cst_24 : f32 to vector<8x1xf32>
    %32 = arith.mulf %31, %30 : vector<8x1xf32>
    %cst_25 = arith.constant 5.000000e-01 : f32
    %33 = vector.broadcast %cst_25 : f32 to vector<8x1xf32>
    %34 = arith.addf %32, %33 : vector<8x1xf32>
    %c0_26 = arith.constant 0 : index
    %c0_27 = arith.constant 0 : index
    %35 = vector.load %arg8[%c0_26, %c0_27] : memref<8x1xf32, #tpu.memory_space<vmem>>, vector<8x1xf32>
    tpu.vector_store %arg8[%c0_26, %c0_27], %34 {strides = array<i32>} : memref<8x1xf32, #tpu.memory_space<vmem>>, vector<8x1xf32>,
    return
  }
  func.func @transform_0(%arg0: i32) -> (i32, i32) {
    %c0_i32 = arith.constant 0 : i32
    %c0_i32_0 = arith.constant 0 : i32
    return %arg0, %c0_i32 : i32, i32
  }
  func.func @transform_1(%arg0: i32) -> (i32, i32) {
    %c0_i32 = arith.constant 0 : i32
    %c0_i32_0 = arith.constant 0 : i32
    %c0_i32_1 = arith.constant 0 : i32
    return %c0_i32, %c0_i32_0 : i32, i32
  }
  func.func @transform_2(%arg0: i32) -> (i32, i32) {
    %c0_i32 = arith.constant 0 : i32
    %c0_i32_0 = arith.constant 0 : i32
    %c0_i32_1 = arith.constant 0 : i32
    return %c0_i32, %c0_i32_0 : i32, i32
  }
  func.func @transform_3(%arg0: i32) -> (i32, i32) {
    %c0_i32 = arith.constant 0 : i32
    %c0_i32_0 = arith.constant 0 : i32
    %c0_i32_1 = arith.constant 0 : i32
    return %c0_i32, %c0_i32_0 : i32, i32
  }
  func.func @transform_4(%arg0: i32) -> (i32, i32) {
    %c0_i32 = arith.constant 0 : i32
    %c0_i32_0 = arith.constant 0 : i32
    %c0_i32_1 = arith.constant 0 : i32
    return %c0_i32, %c0_i32_0 : i32, i32
  }
  func.func @transform_5(%arg0: i32) -> (i32, i32) {
    %c0_i32 = arith.constant 0 : i32
    %c0_i32_0 = arith.constant 0 : i32
    %c0_i32_1 = arith.constant 0 : i32
    return %c0_i32, %c0_i32_0 : i32, i32
  }
  func.func @transform_6(%arg0: i32) -> (i32, i32) {
    %c0_i32 = arith.constant 0 : i32
    %c0_i32_0 = arith.constant 0 : i32
    %c0_i32_1 = arith.constant 0 : i32
    return %c0_i32, %c0_i32_0 : i32, i32
  }
  func.func @transform_7(%arg0: i32) -> (i32, i32) {
    %c0_i32 = arith.constant 0 : i32
    %c0_i32_0 = arith.constant 0 : i32
    return %arg0, %c0_i32 : i32, i32
  }
}

</mosaic_0001>

<bundles_post_ra>
// kernel: tpu_custom_call.1
= control target key start
LH: loop header
LB: loop body
LE: loop exit
PB: predicated region body
PF: predicated region fallthrough
CT: control target
= control target key end

     0   :  { %12 = vsyncpa [#allocation4], 0  ;;  %s6670_s0 = inlined_call_operand.hbm [shape: f32[8,400], index: 0, kind: input, shape index: {}]   ;;  %s6671_s1 = inlined_call_operand.hbm [shape: bf16[512,1024], index: 1, kind: input, shape index: {}]   ;;  %s6672_s2 = inlined_call_operand.hbm [shape: f32[1,1024], index: 2, kind: input, shape index: {}]   ;;  %s6673_s3 = inlined_call_operand.hbm [shape: bf16[1024,384], index: 3, kind: input, shape index: {}]   ;;  %s6674_s4 = inlined_call_operand.vmem [shape: f32[1,384], index: 4, kind: input, shape index: {}]   ;;  %s6675_s5 = inlined_call_operand.hbm [shape: bf16[384,128], index: 5, kind: input, shape index: {}]   ;;  %s6676_s6 = inlined_call_operand.vmem [shape: f32[1,128], index: 6, kind: input, shape index: {}]   ;;  %s6677_s7 = inlined_call_operand.vmem [shape: f32[8,1], index: 7, kind: output, shape index: {}]  }
   0x1   :  { %13 = vsyncpa [#allocation6], 0  ;;  %s30_s26 = sshll.u32 %s6671_s1, 4  ;;  %s31_s26 = int_to_ptr.hbm [resolvable:$true] %s30_s26 }
   0x2   :  { %14 = vsyncpa [#allocation9], 0  ;;  %s6473_s27 = smov [#allocation5]   ;;  %s54_s8 = sshll.u32 %s6673_s3, 4  ;;  %s55_s8 = int_to_ptr.hbm [resolvable:$true] %s54_s8 }
   0x3   :  { %s32_s28 = sshll.u32 %s6473_s27, 4  ;;  %s6474_s9 = smov 512   ;;  %s33_s28 = int_to_ptr.vmem [resolvable:$true] %s32_s28 }
   0x4   :  { %s6475_s10 = smov 32   ;;  %s6476_s11 = smov [#allocation8]  }
   0x5   :  { %38 = dma.hbm_to_vmem [thread:$0]  %s31_s26, 32768, %s33_s28, [#allocation6], %s6474_s9, %s6474_s9, %s6475_s10  }
   0x6   :  { %s56_s12 = sshll.u32 %s6476_s11, 4  ;;  %s6477_s13 = smov 192   ;;  %s57_s12 = int_to_ptr.vmem [resolvable:$true] %s56_s12 }
   0x7   :  { %s6478_s14 = smov 12   ;;  %s20_s16 = sshll.u32 %s6670_s0, 4  ;;  %s21_s16 = int_to_ptr.hbm [resolvable:$true] %s20_s16 }
   0x8   :  { %62 = dma.hbm_to_vmem [thread:$0]  %s55_s8, 24576, %s57_s12, [#allocation9], %s6477_s13, %s6477_s13, %s6478_s14  }
   0x9   :  { %s6479_s17 = smov [#allocation3]   ;;  %s44_s20 = sshll.u32 %s6672_s2, 4  ;;  %s45_s20 = int_to_ptr.hbm [resolvable:$true] %s44_s20 }
   0xa   :  { %s22_s18 = sshll.u32 %s6479_s17, 4  ;;  %s6480_s21 = smov [#allocation7]   ;;  %s23_s18 = int_to_ptr.vmem [resolvable:$true] %s22_s18 }
   0xb   :  { %25 = dma.hbm_to_vmem [thread:$0]  %s21_s16, 512, %s23_s18, [#allocation4]  }
   0xc   :  { %s46_s22 = sshll.u32 %s6480_s21, 4  ;;  %s69_s25 = sshll.u32 %s6675_s5, 4  ;;  %s47_s22 = int_to_ptr.vmem [resolvable:$true] %s46_s22  ;;  %s70_s25 = int_to_ptr.hbm [resolvable:$true] %s69_s25 }
   0xd   :  { %49 = dma.hbm_to_vmem [thread:$0]  %s45_s20, 128, %s47_s22, [#allocation6]  }
   0xe   :  { %s6481_s0 = smov [#allocation10]   ;;  %s6482_s27 = smov 64  }
   0xf   :  { %s71_s26 = sshll.u32 %s6481_s0, 4  ;;  %s6483_s28 = smov 4   ;;  %s72_s26 = int_to_ptr.vmem [resolvable:$true] %s71_s26 }
  0x10   :  { %77 = dma.hbm_to_vmem [thread:$0]  %s70_s25, 3072, %s72_s26, [#allocation9], %s6482_s27, %s6482_s27, %s6483_s28  }
  0x11   :  { %6467 = dma.done.wait [#allocation4], 512  }
  0x12   :  { %6468 = vsyncadd [#allocation4], 4294966784 }
  0x13   :  { %6469 = dma.done.wait [#allocation6], 32896  }
  0x14   :  { %6470 = vsyncadd [#allocation6], 4294934400 }
  0x15   :  { %6471 = dma.done.wait [#allocation9], 27648  }
  0x16   :  { %6472 = vsyncadd [#allocation9], 4294939648  ;;  %v4197_v0 = vld [vmem:[#allocation5 + $0x1c0] sm:$0xf]  ;;  %vm101_vm0 = vcmask 1043584   ;;  %vm110_vm1 = vcmask 1043456  }
  0x17   :  { %v5919_v1 = vld [vmem:[#allocation5 + $0x1dc] sm:$0xf0]  ;;  %vm111_vm2 = vcmask 130052   ;;  %vm3962_vm4 = vcmask 7168  }
  0x18   :  { %v4453_v2 = vld [vmem:[#allocation5 + $0x3c0] sm:$0xf]  ;;  %v4198_v3 = vor.u32 %v5919_v1, %v4197_v0  ;;  %vm112_vm3 = vmor %vm111_vm2, %vm110_vm1 }
  0x19   :  { %v5983_v4 = vld [vmem:[#allocation5 + $0x3dc] sm:$0xf0] }
  0x1a   :  { %v4709_v5 = vld [vmem:[#allocation5 + $0x5c0] sm:$0xf]  ;;  %v4454_v7 = vor.u32 %v5983_v4, %v4453_v2  ;;  %1684 = vmatpush.bf16.msra.mxu0 %v4198_v3 }
  0x1b   :  { %v6047_v6 = vld [vmem:[#allocation5 + $0x5dc] sm:$0xf0] }
  0x1c   :  { %v4710_v8 = vor.u32 %v6047_v6, %v4709_v5  ;;  %v4965_v9 = vld [vmem:[#allocation5 + $0x7c0] sm:$0xf]  ;;  %1697 = vmatpush.bf16.msra.mxu1 %v4454_v7 }
  0x1d   :  { %v6111_v10 = vld [vmem:[#allocation5 + $0x7dc] sm:$0xf0] }
  0x1e   :  { %v4165_v11 = vld [vmem:[#allocation5 + $0x180] sm:$0xf]  ;;  %v4966_v12 = vor.u32 %v6111_v10, %v4965_v9  ;;  %1710 = vmatpush.bf16.msra.mxu2 %v4710_v8 }
  0x1f   :  { %v5911_v13 = vld [vmem:[#allocation5 + $0x19c] sm:$0xf0] }
  0x20   :  { %v4421_v14 = vld [vmem:[#allocation5 + $0x380] sm:$0xf]  ;;  %v4166_v16 = vor.u32 %v5911_v13, %v4165_v11  ;;  %1723 = vmatpush.bf16.msra.mxu3 %v4966_v12 }
  0x21   :  { %v5975_v15 = vld [vmem:[#allocation5 + $0x39c] sm:$0xf0] }
  0x22   :  { %v4422_v17 = vor.u32 %v5975_v15, %v4421_v14  ;;  %v4677_v18 = vld [vmem:[#allocation5 + $0x580] sm:$0xf]  ;;  %1685 = vmatpush.bf16.msra.mxu0 %v4166_v16 }
  0x23   :  { %v6039_v19 = vld [vmem:[#allocation5 + $0x59c] sm:$0xf0] }
  0x24   :  { %v4933_v20 = vld [vmem:[#allocation5 + $0x780] sm:$0xf]  ;;  %v4678_v21 = vor.u32 %v6039_v19, %v4677_v18  ;;  %1698 = vmatpush.bf16.msra.mxu1 %v4422_v17 }
  0x25   :  { %v6103_v22 = vld [vmem:[#allocation5 + $0x79c] sm:$0xf0] }
  0x26   :  { %v4133_v23 = vld [vmem:[#allocation5 + $0x140] sm:$0xf]  ;;  %v4934_v25 = vor.u32 %v6103_v22, %v4933_v20  ;;  %1711 = vmatpush.bf16.msra.mxu2 %v4678_v21 }
  0x27   :  { %v5903_v24 = vld [vmem:[#allocation5 + $0x15c] sm:$0xf0] }
  0x28   :  { %v4389_v26 = vld [vmem:[#allocation5 + $0x340] sm:$0xf]  ;;  %v4134_v29 = vor.u32 %v5903_v24, %v4133_v23  ;;  %1724 = vmatpush.bf16.msra.mxu3 %v4934_v25 }
  0x29   :  { %v5967_v27 = vld [vmem:[#allocation5 + $0x35c] sm:$0xf0] }
  0x2a   :  { %v4645_v28 = vld [vmem:[#allocation5 + $0x540] sm:$0xf]  ;;  %v4390_v33 = vor.u32 %v5967_v27, %v4389_v26  ;;  %1686 = vmatpush.bf16.msra.mxu0 %v4134_v29  ;;  %v4199_v29 = vld [vmem:[#allocation5 + $0x1e0] sm:$0xf0] }
  0x2b   :  { %v6031_v30 = vld [vmem:[#allocation5 + $0x55c] sm:$0xf0] }
  0x2c   :  { %v4901_v31 = vld [vmem:[#allocation5 + $0x740] sm:$0xf]  ;;  %v4646_v34 = vor.u32 %v6031_v30, %v4645_v28  ;;  %1699 = vmatpush.bf16.msra.mxu1 %v4390_v33  ;;  %v5915_v28 = vld [vmem:[#allocation5 + $0x1c4] sm:$0xf] }
  0x2d   :  { %v6095_v32 = vld [vmem:[#allocation5 + $0x75c] sm:$0xf0]  ;;  %v5979_v30 = vld [vmem:[#allocation5 + $0x3c4] sm:$0xf] }
  0x2e   :  { %v4101_v35 = vld [vmem:[#allocation5 + $0x100] sm:$0xf]  ;;  %v4902_v38 = vor.u32 %v6095_v32, %v4901_v31  ;;  %1712 = vmatpush.bf16.msra.mxu2 %v4646_v34  ;;  %v4455_v32 = vld [vmem:[#allocation5 + $0x3e0] sm:$0xf0] }
  0x2f   :  { %v5895_v36 = vld [vmem:[#allocation5 + $0x11c] sm:$0xf0]  ;;  %v6043_v33 = vld [vmem:[#allocation5 + $0x5c4] sm:$0xf] }
  0x30   :  { %v4357_v37 = vld [vmem:[#allocation5 + $0x300] sm:$0xf]  ;;  %v4102_v44 = vor.u32 %v5895_v36, %v4101_v35  ;;  %1725 = vmatpush.bf16.msra.mxu3 %v4902_v38  ;;  %v4711_v34 = vld [vmem:[#allocation5 + $0x5e0] sm:$0xf0] }
  0x31   :  { %v5959_v39 = vld [vmem:[#allocation5 + $0x31c] sm:$0xf0]  ;;  %v4967_v38 = vld [vmem:[#allocation5 + $0x7e0] sm:$0xf0] }
  0x32   :  { %v4613_v40 = vld [vmem:[#allocation5 + $0x500] sm:$0xf]  ;;  %v4358_v45 = vor.u32 %v5959_v39, %v4357_v37  ;;  %1687 = vmatpush.bf16.msra.mxu0 %v4102_v44  ;;  %v6107_v37 = vld [vmem:[#allocation5 + $0x7c4] sm:$0xf] }
  0x33   :  { %v6023_v41 = vld [vmem:[#allocation5 + $0x51c] sm:$0xf0]  ;;  %v4167_v44 = vld [vmem:[#allocation5 + $0x1a0] sm:$0xf0] }
  0x34   :  { %v4869_v42 = vld [vmem:[#allocation5 + $0x700] sm:$0xf]  ;;  %v4614_v46 = vor.u32 %v6023_v41, %v4613_v40  ;;  %1700 = vmatpush.bf16.msra.mxu1 %v4358_v45  ;;  %v4202_v40 = vor.u32 %v5915_v28, %v4199_v29  ;;  %v4458_v41 = vor.u32 %v5979_v30, %v4455_v32  ;;  %v5971_v45 = vld [vmem:[#allocation5 + $0x384] sm:$0xf] }
  0x35   :  { %v6087_v43 = vld [vmem:[#allocation5 + $0x71c] sm:$0xf0]  ;;  %v4327_v28 = vld [vmem:[#allocation5 + $0x2e0] sm:$0xf0] }
  0x36   :  { %v4069_v47 = vld [vmem:[#allocation5 + $0xc0] sm:$0xf]  ;;  %v4870_v50 = vor.u32 %v6087_v43, %v4869_v42  ;;  %1713 = vmatpush.bf16.msra.mxu2 %v4614_v46  ;;  %v4714_v42 = vor.u32 %v6043_v33, %v4711_v34  ;;  %v5907_v43 = vld [vmem:[#allocation5 + $0x184] sm:$0xf]  ;;  %v4970_v46 = vor.u32 %v6107_v37, %v4967_v38 }
  0x37   :  { %v5887_v48 = vld [vmem:[#allocation5 + $0xdc] sm:$0xf0]  ;;  %v6011_v29 = vld [vmem:[#allocation5 + $0x4c4] sm:$0xf] }
  0x38   :  { %v4325_v49 = vld [vmem:[#allocation5 + $0x2c0] sm:$0xf]  ;;  %v4070_v56 = vor.u32 %v5887_v48, %v4069_v47  ;;  %1726 = vmatpush.bf16.msra.mxu3 %v4870_v50  ;;  %v4423_v47 = vld [vmem:[#allocation5 + $0x3a0] sm:$0xf0] }
  0x39   :  { %v5951_v51 = vld [vmem:[#allocation5 + $0x2dc] sm:$0xf0]  ;;  %v6035_v48 = vld [vmem:[#allocation5 + $0x584] sm:$0xf] }
  0x3a   :  { %v4581_v52 = vld [vmem:[#allocation5 + $0x4c0] sm:$0xf]  ;;  %v4326_v57 = vor.u32 %v5951_v51, %v4325_v49  ;;  %1688 = vmatpush.bf16.msra.mxu0 %v4070_v56  ;;  %v4679_v49 = vld [vmem:[#allocation5 + $0x5a0] sm:$0xf0] }
  0x3b   :  { %v6015_v53 = vld [vmem:[#allocation5 + $0x4dc] sm:$0xf0]  ;;  %v6099_v50 = vld [vmem:[#allocation5 + $0x784] sm:$0xf] }
  0x3c   :  { %v4837_v54 = vld [vmem:[#allocation5 + $0x6c0] sm:$0xf]  ;;  %v4582_v58 = vor.u32 %v6015_v53, %v4581_v52  ;;  %1701 = vmatpush.bf16.msra.mxu1 %v4326_v57  ;;  %v4935_v51 = vld [vmem:[#allocation5 + $0x7a0] sm:$0xf0]  ;;  %v4170_v52 = vor.u32 %v5907_v43, %v4167_v44 }
  0x3d   :  { %v6079_v55 = vld [vmem:[#allocation5 + $0x6dc] sm:$0xf0]  ;;  %v5899_v53 = vld [vmem:[#allocation5 + $0x144] sm:$0xf] }
  0x3e   :  { %v4037_v59 = vld [vmem:[#allocation5 + $0x80] sm:$0xf]  ;;  %v4838_v62 = vor.u32 %v6079_v55, %v4837_v54  ;;  %1714 = vmatpush.bf16.msra.mxu2 %v4582_v58  ;;  %v4426_v54 = vor.u32 %v5971_v45, %v4423_v47  ;;  %v4682_v55 = vor.u32 %v6035_v48, %v4679_v49  ;;  %v4135_v56 = vld [vmem:[#allocation5 + $0x160] sm:$0xf0] }
  0x3f   :  { %v5879_v60 = vld [vmem:[#allocation5 + $0x9c] sm:$0xf0]  ;;  %v5963_v57 = vld [vmem:[#allocation5 + $0x344] sm:$0xf] }
  0x40   :  { %v4293_v61 = vld [vmem:[#allocation5 + $0x280] sm:$0xf]  ;;  %v4038_v4 = vor.u32 %v5879_v60, %v4037_v59  ;;  %1727 = vmatpush.bf16.msra.mxu3 %v4838_v62  ;;  %v4391_v58 = vld [vmem:[#allocation5 + $0x360] sm:$0xf0]  ;;  %v4938_v59 = vor.u32 %v6099_v50, %v4935_v51 }
  0x41   :  { %v5943_v63 = vld [vmem:[#allocation5 + $0x29c] sm:$0xf0]  ;;  %v6027_v60 = vld [vmem:[#allocation5 + $0x544] sm:$0xf] }
  0x42   :  { %v4549_v0 = vld [vmem:[#allocation5 + $0x480] sm:$0xf]  ;;  %v4294_v5 = vor.u32 %v5943_v63, %v4293_v61  ;;  %1689 = vmatpush.bf16.msra.mxu0 %v4038_v4  ;;  %v4647_v61 = vld [vmem:[#allocation5 + $0x560] sm:$0xf0] }
  0x43   :  { %v6007_v1 = vld [vmem:[#allocation5 + $0x49c] sm:$0xf0]  ;;  %v6091_v62 = vld [vmem:[#allocation5 + $0x744] sm:$0xf] }
  0x44   :  { %v4805_v2 = vld [vmem:[#allocation5 + $0x680] sm:$0xf]  ;;  %v4550_v6 = vor.u32 %v6007_v1, %v4549_v0  ;;  %1702 = vmatpush.bf16.msra.mxu1 %v4294_v5  ;;  %v4903_v63 = vld [vmem:[#allocation5 + $0x760] sm:$0xf0] }
  0x45   :  { %v6071_v3 = vld [vmem:[#allocation5 + $0x69c] sm:$0xf0]  ;;  %v5891_v0 = vld [vmem:[#allocation5 + $0x104] sm:$0xf] }
  0x46   :  { %v4005_v7 = vld [vmem:[#allocation5 + $0x40] sm:$0xf]  ;;  %v4806_v10 = vor.u32 %v6071_v3, %v4805_v2  ;;  %1715 = vmatpush.bf16.msra.mxu2 %v4550_v6  ;;  %v4103_v1 = vld [vmem:[#allocation5 + $0x120] sm:$0xf0]  ;;  %v4138_v2 = vor.u32 %v5899_v53, %v4135_v56  ;;  %v4394_v3 = vor.u32 %v5963_v57, %v4391_v58  ;;  %v105_v6 = vld [vmem:[#allocation3 + $0x10] sm:$0xff] }
  0x47   :  { %v5871_v8 = vld [vmem:[#allocation5 + $0x5c] sm:$0xf0]  ;;  %v5955_v4 = vld [vmem:[#allocation5 + $0x304] sm:$0xf] }
  0x48   :  { %v4261_v9 = vld [vmem:[#allocation5 + $0x240] sm:$0xf]  ;;  %v4006_v16 = vor.u32 %v5871_v8, %v4005_v7  ;;  %1728 = vmatpush.bf16.msra.mxu3 %v4806_v10  ;;  %v4359_v5 = vld [vmem:[#allocation5 + $0x320] sm:$0xf0]  ;;  %v106_v7 = vld [vmem:[#allocation3 + $0x18] sm:$0xff]  ;;  %v4650_v8 = vor.u32 %v6027_v60, %v4647_v61 }
  0x49   :  { %v5935_v11 = vld [vmem:[#allocation5 + $0x25c] sm:$0xf0]  ;;  %v108_v10 = vpack.c.bf16 %v106_v7, %v105_v6  ;;  %v4583_v30 = vld [vmem:[#allocation5 + $0x4e0] sm:$0xf0] }
  0x4a   :  { %v4517_v12 = vld [vmem:[#allocation5 + $0x440] sm:$0xf]  ;;  %v4262_v19 = vor.u32 %v5935_v11, %v4261_v9  ;;  %1690 = vmatpush.bf16.msra.mxu0 %v4006_v16  ;;  %v6484_v9 = vmov 0   ;;  %v6075_v33 = vld [vmem:[#allocation5 + $0x6c4] sm:$0xf]  ;;  %v4586_v38 = vor.u32 %v6011_v29, %v4583_v30 }
  0x4b   :  { %v5999_v13 = vld [vmem:[#allocation5 + $0x45c] sm:$0xf0]  ;;  %102 = vst.msk [vmem:[#allocation2 + $0xc] sm:$0xf] %vm101_vm0, %v6484_v9  ;;  %v4839_v34 = vld [vmem:[#allocation5 + $0x6e0] sm:$0xf0] }
  0x4c   :  { %v4773_v14 = vld [vmem:[#allocation5 + $0x640] sm:$0xf]  ;;  %v4518_v20 = vor.u32 %v5999_v13, %v4517_v12  ;;  %1703 = vmatpush.bf16.msra.mxu1 %v4262_v19  ;;  %v104_v12 = vld [vmem:[#allocation3 + $0x8] sm:$0xff]  ;;  %v4906_v13 = vor.u32 %v6091_v62, %v4903_v63  ;;  %113 = vst.msk [vmem:[#allocation2 + $0x8] sm:$0xff] %vm112_vm3, %v108_v10  ;;  %v4106_v19 = vor.u32 %v5891_v0, %v4103_v1  ;;  %v6003_v43 = vld [vmem:[#allocation5 + $0x484] sm:$0xf] }
  0x4d   :  { %v6063_v15 = vld [vmem:[#allocation5 + $0x65c] sm:$0xf0]  ;;  %v4551_v44 = vld [vmem:[#allocation5 + $0x4a0] sm:$0xf0]  ;;  %v4429_v29 = vld [vmem:[#allocation5 + $0x388] sm:$0xf] }
  0x4e   :  { %v3973_v17 = vld [vmem:[#allocation5] sm:$0xf]  ;;  %v4774_v24 = vor.u32 %v6063_v15, %v4773_v14  ;;  %1716 = vmatpush.bf16.msra.mxu2 %v4518_v20  ;;  %v6019_v14 = vld [vmem:[#allocation5 + $0x504] sm:$0xf] }
  0x4f   :  { %v5863_v18 = vld [vmem:[#allocation5 + $0x1c] sm:$0xf0]  ;;  %v4615_v15 = vld [vmem:[#allocation5 + $0x520] sm:$0xf0] }
  0x50   :  { %v4229_v21 = vld [vmem:[#allocation5 + $0x200] sm:$0xf]  ;;  %v3974_v31 = vor.u32 %v5863_v18, %v3973_v17  ;;  %1729 = vmatpush.bf16.msra.mxu3 %v4774_v24  ;;  %v6083_v17 = vld [vmem:[#allocation5 + $0x704] sm:$0xf] }
  0x51   :  { %v5927_v22 = vld [vmem:[#allocation5 + $0x21c] sm:$0xf0]  ;;  %v4871_v18 = vld [vmem:[#allocation5 + $0x720] sm:$0xf0] }
  0x52   :  { %v4485_v23 = vld [vmem:[#allocation5 + $0x400] sm:$0xf]  ;;  %v4230_v35 = vor.u32 %v5927_v22, %v4229_v21  ;;  %1691 = vmatpush.bf16.msra.mxu0 %v3974_v31  ;;  %v4362_v22 = vor.u32 %v5955_v4, %v4359_v5  ;;  %v5883_v24 = vld [vmem:[#allocation5 + $0xc4] sm:$0xf] }
  0x53   :  { %v5991_v25 = vld [vmem:[#allocation5 + $0x41c] sm:$0xf0]  ;;  %v115_v45 = vld [vmem:[#allocation2 + $0x8] sm:$0xff]  ;;  %v4807_v47 = vld [vmem:[#allocation5 + $0x6a0] sm:$0xf0] }
  0x54   :  { %v4741_v26 = vld [vmem:[#allocation5 + $0x600] sm:$0xf]  ;;  %v4486_v36 = vor.u32 %v5991_v25, %v4485_v23  ;;  %1704 = vmatpush.bf16.msra.mxu1 %v4230_v35  ;;  %v4618_v23 = vor.u32 %v6019_v14, %v4615_v15  ;;  %v4071_v25 = vld [vmem:[#allocation5 + $0xe0] sm:$0xf0]  ;;  %v394_v48 = vunpack.c.l.b16 %v115_v45  ;;  %v395_v49 = vunpack.c.h.b16 %v115_v45  ;;  %v4461_v14 = vld [vmem:[#allocation5 + $0x3c8] sm:$0xf] }
  0x55   :  { %v6055_v27 = vld [vmem:[#allocation5 + $0x61c] sm:$0xf0]  ;;  %v4074_v35 = vor.u32 %v5883_v24, %v4071_v25  ;;  %v4007_v56 = vld [vmem:[#allocation5 + $0x60] sm:$0xf0]  ;;  %v5968_v45 = vld [vmem:[#allocation5 + $0x364] sm:$0xf0] }
  0x56   :  { %v4742_v39 = vor.u32 %v6055_v27, %v4741_v26  ;;  %1717 = vmatpush.bf16.msra.mxu2 %v4486_v36  ;;  %1736 = vmatpush.bf16.msrb.mxu0 %v4202_v40  ;;  %v103_v11 = vld [vmem:[#allocation3] sm:$0xff]  ;;  %v4874_v27 = vor.u32 %v6083_v17, %v4871_v18  ;;  %v6546_v53 = vpack.c.b16 %v394_v48, %v394_v48  ;;  %v4717_v17 = vld [vmem:[#allocation5 + $0x5c8] sm:$0xf] }
  0x57   :  { %v107_v16 = vpack.c.bf16 %v104_v12, %v103_v11  ;;  %v5947_v26 = vld [vmem:[#allocation5 + $0x2c4] sm:$0xf]  ;;  %v4205_v12 = vld [vmem:[#allocation5 + $0x1c8] sm:$0xf] }
  0x58   :  { %1730 = vmatpush.bf16.msra.mxu3 %v4742_v39  ;;  %1749 = vmatpush.bf16.msrb.mxu1 %v4458_v41  ;;  %v5875_v36 = vld [vmem:[#allocation5 + $0x84] sm:$0xf]  ;;  %v4330_v37 = vor.u32 %v5947_v26, %v4327_v28  ;;  %v6048_v18 = vld [vmem:[#allocation5 + $0x5e4] sm:$0xf0] }
  0x59   :  { %v392_v20 = vunpack.c.l.b16 %v107_v16  ;;  %v393_v21 = vunpack.c.h.b16 %v107_v16  ;;  %v4039_v39 = vld [vmem:[#allocation5 + $0xa0] sm:$0xf0]  ;;  %1718 = vmatmul.bf16.vlgmr.msra.gmra.mxu2 %v6546_v53  ;;  %v5984_v16 = vld [vmem:[#allocation5 + $0x3e4] sm:$0xf0]  ;;  %v4718_v26 = vor.u32 %v6048_v18, %v4717_v17 }
  0x5a   :  { %1762 = vmatpush.bf16.msrb.mxu2 %v4714_v42  ;;  %1737 = vmatpush.bf16.msrb.mxu0 %v4170_v52  ;;  %v5939_v40 = vld [vmem:[#allocation5 + $0x284] sm:$0xf]  ;;  %v4842_v42 = vor.u32 %v6075_v33, %v4839_v34  ;;  %v4042_v50 = vor.u32 %v5875_v36, %v4039_v39  ;;  %v4554_v52 = vor.u32 %v6003_v43, %v4551_v44  ;;  %v5912_v28 = vld [vmem:[#allocation5 + $0x1a4] sm:$0xf0] }
  0x5b   :  { %v6540_v31 = vpack.c.b16 %v392_v20, %v392_v20  ;;  %v6542_v32 = vpack.c.b16 %v393_v21, %v393_v21  ;;  %v4295_v41 = vld [vmem:[#allocation5 + $0x2a0] sm:$0xf0]  ;;  %v4973_v21 = vld [vmem:[#allocation5 + $0x7c8] sm:$0xf]  ;;  %v4462_v25 = vor.u32 %v5984_v16, %v4461_v14 }
  0x5c   :  { %1775 = vmatpush.bf16.msrb.mxu3 %v4970_v46  ;;  %1750 = vmatpush.bf16.msrb.mxu1 %v4426_v54  ;;  %v6067_v46 = vld [vmem:[#allocation5 + $0x684] sm:$0xf]  ;;  %v4298_v51 = vor.u32 %v5939_v40, %v4295_v41  ;;  %v6548_v54 = vpack.c.b16 %v395_v49, %v395_v49  ;;  %v5976_v33 = vld [vmem:[#allocation5 + $0x3a4] sm:$0xf0] }
  0x5d   :  { %1705 = vmatmul.bf16.vlgmr.msra.gmra.mxu1 %v6542_v32  ;;  %1692 = vmatmul.bf16.vlgmr.msra.gmra.mxu0 %v6540_v31  ;;  %v5931_v57 = vld [vmem:[#allocation5 + $0x244] sm:$0xf]  ;;  %v4810_v58 = vor.u32 %v6067_v46, %v4807_v47  ;;  %v4685_v34 = vld [vmem:[#allocation5 + $0x588] sm:$0xf]  ;;  %v4430_v39 = vor.u32 %v5976_v33, %v4429_v29 }
  0x5e   :  { %1763 = vmatpush.bf16.msrb.mxu2 %v4682_v55  ;;  %1738 = vmatpush.bf16.msrb.mxu0 %v4138_v2  ;;  %v5867_v55 = vld [vmem:[#allocation5 + $0x44] sm:$0xf]  ;;  %v4941_v36 = vld [vmem:[#allocation5 + $0x788] sm:$0xf] }
  0x5f   :  { %v5995_v60 = vld [vmem:[#allocation5 + $0x444] sm:$0xf]  ;;  %1731 = vmatmul.bf16.vlgmr.msra.gmra.mxu3 %v6548_v54  ;;  %v4010_v0 = vor.u32 %v5867_v55, %v4007_v56  ;;  %v4141_v41 = vld [vmem:[#allocation5 + $0x148] sm:$0xf] }
  0x60   :  { %1776 = vmatpush.bf16.msrb.mxu3 %v4938_v59  ;;  %1751 = vmatpush.bf16.msrb.mxu1 %v4394_v3  ;;  %v4263_v59 = vld [vmem:[#allocation5 + $0x260] sm:$0xf0]  ;;  %v4397_v43 = vld [vmem:[#allocation5 + $0x348] sm:$0xf] }
  0x61   :  { %v4519_v61 = vld [vmem:[#allocation5 + $0x460] sm:$0xf0]  ;;  %v4266_v3 = vor.u32 %v5931_v57, %v4263_v59  ;;  %v4653_v46 = vld [vmem:[#allocation5 + $0x548] sm:$0xf] }
  0x62   :  { %1764 = vmatpush.bf16.msrb.mxu2 %v4650_v8  ;;  %1739 = vmatpush.bf16.msrb.mxu0 %v4106_v19  ;;  %v6059_v62 = vld [vmem:[#allocation5 + $0x644] sm:$0xf]  ;;  %v4522_v4 = vor.u32 %v5995_v60, %v4519_v61  ;;  %v6032_v47 = vld [vmem:[#allocation5 + $0x564] sm:$0xf0] }
  0x63   :  { %v4775_v63 = vld [vmem:[#allocation5 + $0x660] sm:$0xf0]  ;;  %v4909_v48 = vld [vmem:[#allocation5 + $0x748] sm:$0xf] }
  0x64   :  { %1777 = vmatpush.bf16.msrb.mxu3 %v4906_v13  ;;  %1752 = vmatpush.bf16.msrb.mxu1 %v4362_v22  ;;  %v5859_v1 = vld [vmem:[#allocation5 + $0x4] sm:$0xf]  ;;  %v4778_v8 = vor.u32 %v6059_v62, %v4775_v63  ;;  %v5920_v13 = vld [vmem:[#allocation5 + $0x1e4] sm:$0xf0] }
  0x65   :  { %v3975_v2 = vld [vmem:[#allocation5 + $0x20] sm:$0xf0]  ;;  %v6112_v22 = vld [vmem:[#allocation5 + $0x7e4] sm:$0xf0]  ;;  %v4206_v24 = vor.u32 %v5920_v13, %v4205_v12 }
  0x66   :  { %1765 = vmatpush.bf16.msrb.mxu2 %v4618_v23  ;;  %1740 = vmatpush.bf16.msrb.mxu0 %v4074_v35  ;;  %v5923_v5 = vld [vmem:[#allocation5 + $0x204] sm:$0xf]  ;;  %v3978_v15 = vor.u32 %v5859_v1, %v3975_v2  ;;  %v4974_v30 = vor.u32 %v6112_v22, %v4973_v21  ;;  %v6040_v35 = vld [vmem:[#allocation5 + $0x5a4] sm:$0xf0] }
  0x67   :  { %v4231_v6 = vld [vmem:[#allocation5 + $0x220] sm:$0xf0]  ;;  %v4686_v40 = vor.u32 %v6040_v35, %v4685_v34  ;;  %v6096_v49 = vld [vmem:[#allocation5 + $0x764] sm:$0xf0] }
  0x68   :  { %1778 = vmatpush.bf16.msrb.mxu3 %v4874_v27  ;;  %1753 = vmatpush.bf16.msrb.mxu1 %v4330_v37  ;;  %v5987_v7 = vld [vmem:[#allocation5 + $0x404] sm:$0xf]  ;;  %v4234_v19 = vor.u32 %v5923_v5, %v4231_v6  ;;  %v4173_v27 = vld [vmem:[#allocation5 + $0x188] sm:$0xf] }
  0x69   :  { %v4487_v9 = vld [vmem:[#allocation5 + $0x420] sm:$0xf0]  ;;  %v6104_v37 = vld [vmem:[#allocation5 + $0x7a4] sm:$0xf0] }
  0x6a   :  { %1766 = vmatpush.bf16.msrb.mxu2 %v4586_v38  ;;  %1741 = vmatpush.bf16.msrb.mxu0 %v4042_v50  ;;  %v6051_v10 = vld [vmem:[#allocation5 + $0x604] sm:$0xf]  ;;  %v4490_v20 = vor.u32 %v5987_v7, %v4487_v9  ;;  %v4174_v38 = vor.u32 %v5912_v28, %v4173_v27  ;;  %v4942_v44 = vor.u32 %v6104_v37, %v4941_v36  ;;  %v4109_v55 = vld [vmem:[#allocation5 + $0x108] sm:$0xf] }
  0x6b   :  { %v4743_v11 = vld [vmem:[#allocation5 + $0x620] sm:$0xf0]  ;;  %v5896_v56 = vld [vmem:[#allocation5 + $0x124] sm:$0xf0] }
  0x6c   :  { %1779 = vmatpush.bf16.msrb.mxu3 %v4842_v42  ;;  %1754 = vmatpush.bf16.msrb.mxu1 %v4298_v51  ;;  %v4746_v23 = vor.u32 %v6051_v10, %v4743_v11  ;;  %v5904_v42 = vld [vmem:[#allocation5 + $0x164] sm:$0xf0]  ;;  %v4398_v51 = vor.u32 %v5968_v45, %v4397_v43 }
  0x6d   :  { %v4142_v50 = vor.u32 %v5904_v42, %v4141_v41  ;;  %v4365_v57 = vld [vmem:[#allocation5 + $0x308] sm:$0xf] }
  0x6e   :  { %1767 = vmatpush.bf16.msrb.mxu2 %v4554_v52  ;;  %1742 = vmatpush.bf16.msrb.mxu0 %v4010_v0  ;;  %v4654_v52 = vor.u32 %v6032_v47, %v4653_v46  ;;  %v5960_v59 = vld [vmem:[#allocation5 + $0x324] sm:$0xf0]  ;;  %v4110_v0 = vor.u32 %v5896_v56, %v4109_v55  ;;  %v4463_v56 = vld [vmem:[#allocation5 + $0x3e8] sm:$0xf0] }
  0x6f   :  { %v4621_v60 = vld [vmem:[#allocation5 + $0x508] sm:$0xf]  ;;  %v4366_v1 = vor.u32 %v5960_v59, %v4365_v57  ;;  %v6044_v57 = vld [vmem:[#allocation5 + $0x5cc] sm:$0xf] }
  0x70   :  { %1780 = vmatpush.bf16.msrb.mxu3 %v4810_v58  ;;  %1755 = vmatpush.bf16.msrb.mxu1 %v4266_v3  ;;  %v4910_v58 = vor.u32 %v6096_v49, %v4909_v48  ;;  %v6024_v61 = vld [vmem:[#allocation5 + $0x524] sm:$0xf0] }
  0x71   :  { %v4877_v62 = vld [vmem:[#allocation5 + $0x708] sm:$0xf]  ;;  %v4622_v2 = vor.u32 %v6024_v61, %v4621_v60  ;;  %v6108_v61 = vld [vmem:[#allocation5 + $0x7cc] sm:$0xf] }
  0x72   :  { %1768 = vmatpush.bf16.msrb.mxu2 %v4522_v4  ;;  %1743 = vmatpush.bf16.msrb.mxu0 %v3978_v15  ;;  %v6088_v63 = vld [vmem:[#allocation5 + $0x724] sm:$0xf0] }
  0x73   :  { %v4077_v3 = vld [vmem:[#allocation5 + $0xc8] sm:$0xf]  ;;  %v4878_v6 = vor.u32 %v6088_v63, %v4877_v62  ;;  %v4975_v62 = vld [vmem:[#allocation5 + $0x7e8] sm:$0xf0] }
  0x74   :  { %1781 = vmatpush.bf16.msrb.mxu3 %v4778_v8  ;;  %1756 = vmatpush.bf16.msrb.mxu1 %v4234_v19  ;;  %v5888_v4 = vld [vmem:[#allocation5 + $0xe4] sm:$0xf0] }
  0x75   :  { %1744 = vmatmul.bf16.vlgmr.msrb.gmra.mxu0 %v6540_v31  ;;  %v4333_v5 = vld [vmem:[#allocation5 + $0x2c8] sm:$0xf]  ;;  %v4078_v12 = vor.u32 %v5888_v4, %v4077_v3  ;;  %v5908_v3 = vld [vmem:[#allocation5 + $0x18c] sm:$0xf] }
  0x76   :  { %1769 = vmatpush.bf16.msrb.mxu2 %v4490_v20  ;;  %1788 = vmatpush.bf16.msra.mxu0 %v4206_v24  ;;  %v5952_v7 = vld [vmem:[#allocation5 + $0x2e4] sm:$0xf0]  ;;  %v4175_v4 = vld [vmem:[#allocation5 + $0x1a8] sm:$0xf0] }
  0x77   :  { %1757 = vmatmul.bf16.vlgmr.msrb.gmra.mxu1 %v6542_v32  ;;  %v4589_v8 = vld [vmem:[#allocation5 + $0x4c8] sm:$0xf]  ;;  %v4334_v13 = vor.u32 %v5952_v7, %v4333_v5  ;;  %v5972_v5 = vld [vmem:[#allocation5 + $0x38c] sm:$0xf] }
  0x78   :  { %1782 = vmatpush.bf16.msrb.mxu3 %v4746_v23  ;;  %1801 = vmatpush.bf16.msra.mxu1 %v4462_v25  ;;  %v6016_v9 = vld [vmem:[#allocation5 + $0x4e4] sm:$0xf0]  ;;  %v4431_v7 = vld [vmem:[#allocation5 + $0x3a8] sm:$0xf0] }
  0x79   :  { %1770 = vmatmul.bf16.vlgmr.msrb.gmra.mxu2 %v6546_v53  ;;  %v4845_v10 = vld [vmem:[#allocation5 + $0x6c8] sm:$0xf]  ;;  %v4590_v14 = vor.u32 %v6016_v9, %v4589_v8  ;;  %v6036_v8 = vld [vmem:[#allocation5 + $0x58c] sm:$0xf] }
  0x7a   :  { %1814 = vmatpush.bf16.msra.mxu2 %v4718_v26  ;;  %1789 = vmatpush.bf16.msra.mxu0 %v4174_v38  ;;  %v6080_v11 = vld [vmem:[#allocation5 + $0x6e4] sm:$0xf0]  ;;  %v4687_v9 = vld [vmem:[#allocation5 + $0x5a8] sm:$0xf0] }
  0x7b   :  { %1783 = vmatmul.bf16.vlgmr.msrb.gmra.mxu3 %v6548_v54  ;;  %v4045_v15 = vld [vmem:[#allocation5 + $0x88] sm:$0xf]  ;;  %v4846_v18 = vor.u32 %v6080_v11, %v4845_v10  ;;  %v6100_v10 = vld [vmem:[#allocation5 + $0x78c] sm:$0xf] }
  0x7c   :  { %1827 = vmatpush.bf16.msra.mxu3 %v4974_v30  ;;  %1802 = vmatpush.bf16.msra.mxu1 %v4430_v39  ;;  %v5880_v16 = vld [vmem:[#allocation5 + $0xa4] sm:$0xf0]  ;;  %v4943_v11 = vld [vmem:[#allocation5 + $0x7a8] sm:$0xf0] }
  0x7d   :  { %v4301_v17 = vld [vmem:[#allocation5 + $0x288] sm:$0xf]  ;;  %v4046_v24 = vor.u32 %v5880_v16, %v4045_v15  ;;  %v5900_v15 = vld [vmem:[#allocation5 + $0x14c] sm:$0xf] }
  0x7e   :  { %1815 = vmatpush.bf16.msra.mxu2 %v4686_v40  ;;  %1790 = vmatpush.bf16.msra.mxu0 %v4142_v50  ;;  %v5944_v19 = vld [vmem:[#allocation5 + $0x2a4] sm:$0xf0]  ;;  %v5916_v50 = vld [vmem:[#allocation5 + $0x1cc] sm:$0xf] }
  0x7f   :  { %v4557_v20 = vld [vmem:[#allocation5 + $0x488] sm:$0xf]  ;;  %v4302_v25 = vor.u32 %v5944_v19, %v4301_v17  ;;  %v4143_v16 = vld [vmem:[#allocation5 + $0x168] sm:$0xf0] }
  0x80   :  { %1828 = vmatpush.bf16.msra.mxu3 %v4942_v44  ;;  %1803 = vmatpush.bf16.msra.mxu1 %v4398_v51  ;;  %v6008_v21 = vld [vmem:[#allocation5 + $0x4a4] sm:$0xf0]  ;;  %v4207_v51 = vld [vmem:[#allocation5 + $0x1e8] sm:$0xf0] }
  0x81   :  { %v4813_v22 = vld [vmem:[#allocation5 + $0x688] sm:$0xf]  ;;  %v4558_v26 = vor.u32 %v6008_v21, %v4557_v20  ;;  %v5964_v17 = vld [vmem:[#allocation5 + $0x34c] sm:$0xf] }
  0x82   :  { %1816 = vmatpush.bf16.msra.mxu2 %v4654_v52  ;;  %1791 = vmatpush.bf16.msra.mxu0 %v4110_v0  ;;  %v6072_v23 = vld [vmem:[#allocation5 + $0x6a4] sm:$0xf0]  ;;  %v5980_v52 = vld [vmem:[#allocation5 + $0x3cc] sm:$0xf]  ;;  %v4210_v0 = vor.u32 %v5916_v50, %v4207_v51 }
  0x83   :  { %v4013_v27 = vld [vmem:[#allocation5 + $0x48] sm:$0xf]  ;;  %v4814_v30 = vor.u32 %v6072_v23, %v4813_v22  ;;  %v4399_v19 = vld [vmem:[#allocation5 + $0x368] sm:$0xf0] }
  0x84   :  { %1829 = vmatpush.bf16.msra.mxu3 %v4910_v58  ;;  %1804 = vmatpush.bf16.msra.mxu1 %v4366_v1  ;;  %v5872_v28 = vld [vmem:[#allocation5 + $0x64] sm:$0xf0]  ;;  %v4719_v58 = vld [vmem:[#allocation5 + $0x5e8] sm:$0xf0]  ;;  %v4466_v1 = vor.u32 %v5980_v52, %v4463_v56 }
  0x85   :  { %v4269_v29 = vld [vmem:[#allocation5 + $0x248] sm:$0xf]  ;;  %v4014_v38 = vor.u32 %v5872_v28, %v4013_v27  ;;  %v6028_v20 = vld [vmem:[#allocation5 + $0x54c] sm:$0xf] }
  0x86   :  { %1817 = vmatpush.bf16.msra.mxu2 %v4622_v2  ;;  %1792 = vmatpush.bf16.msra.mxu0 %v4078_v12  ;;  %v5936_v33 = vld [vmem:[#allocation5 + $0x264] sm:$0xf0]  ;;  %v4722_v2 = vor.u32 %v6044_v57, %v4719_v58  ;;  %v4178_v12 = vor.u32 %v5908_v3, %v4175_v4  ;;  %v4655_v21 = vld [vmem:[#allocation5 + $0x568] sm:$0xf0] }
  0x87   :  { %v4525_v34 = vld [vmem:[#allocation5 + $0x448] sm:$0xf]  ;;  %v4270_v41 = vor.u32 %v5936_v33, %v4269_v29  ;;  %v6092_v22 = vld [vmem:[#allocation5 + $0x74c] sm:$0xf] }
  0x88   :  { %1830 = vmatpush.bf16.msra.mxu3 %v4878_v6  ;;  %1805 = vmatpush.bf16.msra.mxu1 %v4334_v13  ;;  %v6000_v35 = vld [vmem:[#allocation5 + $0x464] sm:$0xf0]  ;;  %v4978_v6 = vor.u32 %v6108_v61, %v4975_v62  ;;  %v4434_v13 = vor.u32 %v5972_v5, %v4431_v7  ;;  %v4911_v23 = vld [vmem:[#allocation5 + $0x768] sm:$0xf0] }
  0x89   :  { %v4781_v36 = vld [vmem:[#allocation5 + $0x648] sm:$0xf]  ;;  %v4526_v42 = vor.u32 %v6000_v35, %v4525_v34  ;;  %v5892_v27 = vld [vmem:[#allocation5 + $0x10c] sm:$0xf] }
  0x8a   :  { %1818 = vmatpush.bf16.msra.mxu2 %v4590_v14  ;;  %v6064_v37 = vld [vmem:[#allocation5 + $0x664] sm:$0xf0]  ;;  %1793 = vmatpush.bf16.msra.mxu0 %v4046_v24  ;;  %v4690_v14 = vor.u32 %v6036_v8, %v4687_v9  ;;  %v4146_v24 = vor.u32 %v5900_v15, %v4143_v16  ;;  %v4111_v28 = vld [vmem:[#allocation5 + $0x128] sm:$0xf0] }
  0x8b   :  { %v3981_v39 = vld [vmem:[#allocation5 + $0x8] sm:$0xf]  ;;  %v4782_v46 = vor.u32 %v6064_v37, %v4781_v36  ;;  %v5956_v29 = vld [vmem:[#allocation5 + $0x30c] sm:$0xf] }
  0x8c   :  { %1831 = vmatpush.bf16.msra.mxu3 %v4846_v18  ;;  %v5864_v40 = vld [vmem:[#allocation5 + $0x24] sm:$0xf0]  ;;  %1806 = vmatpush.bf16.msra.mxu1 %v4302_v25  ;;  %v4946_v18 = vor.u32 %v6100_v10, %v4943_v11  ;;  %v4402_v25 = vor.u32 %v5964_v17, %v4399_v19  ;;  %v4367_v33 = vld [vmem:[#allocation5 + $0x328] sm:$0xf0] }
  0x8d   :  { %v4237_v43 = vld [vmem:[#allocation5 + $0x208] sm:$0xf]  ;;  %v3982_v55 = vor.u32 %v5864_v40, %v3981_v39  ;;  %v6020_v34 = vld [vmem:[#allocation5 + $0x50c] sm:$0xf]  ;;  %v4370_v39 = vor.u32 %v5956_v29, %v4367_v33  ;;  %v4725_v29 = vld [vmem:[#allocation5 + $0x5d0] sm:$0xf] }
  0x8e   :  { %1819 = vmatpush.bf16.msra.mxu2 %v4558_v26  ;;  %v5928_v44 = vld [vmem:[#allocation5 + $0x224] sm:$0xf0]  ;;  %1794 = vmatpush.bf16.msra.mxu0 %v4014_v38  ;;  %v4658_v26 = vor.u32 %v6028_v20, %v4655_v21  ;;  %v4623_v35 = vld [vmem:[#allocation5 + $0x528] sm:$0xf0]  ;;  %v4114_v38 = vor.u32 %v5892_v27, %v4111_v28  ;;  %v5985_v28 = vld [vmem:[#allocation5 + $0x3ec] sm:$0xf0] }
  0x8f   :  { %v4493_v45 = vld [vmem:[#allocation5 + $0x408] sm:$0xf]  ;;  %v4238_v59 = vor.u32 %v5928_v44, %v4237_v43  ;;  %v6084_v36 = vld [vmem:[#allocation5 + $0x70c] sm:$0xf]  ;;  %v4626_v40 = vor.u32 %v6020_v34, %v4623_v35  ;;  %v4981_v35 = vld [vmem:[#allocation5 + $0x7d0] sm:$0xf] }
  0x90   :  { %1832 = vmatpush.bf16.msra.mxu3 %v4814_v30  ;;  %v5992_v47 = vld [vmem:[#allocation5 + $0x424] sm:$0xf0]  ;;  %1807 = vmatpush.bf16.msra.mxu1 %v4270_v41  ;;  %v4914_v30 = vor.u32 %v6092_v22, %v4911_v23  ;;  %v4879_v37 = vld [vmem:[#allocation5 + $0x728] sm:$0xf0] }
  0x91   :  { %v4749_v48 = vld [vmem:[#allocation5 + $0x608] sm:$0xf]  ;;  %v4494_v60 = vor.u32 %v5992_v47, %v4493_v45  ;;  %v5884_v41 = vld [vmem:[#allocation5 + $0xcc] sm:$0xf]  ;;  %v4882_v44 = vor.u32 %v6084_v36, %v4879_v37  ;;  %v6113_v36 = vld [vmem:[#allocation5 + $0x7ec] sm:$0xf0] }
  0x92   :  { %v6056_v49 = vld [vmem:[#allocation5 + $0x624] sm:$0xf0]  ;;  %1820 = vmatpush.bf16.msra.mxu2 %v4526_v42  ;;  %1795 = vmatpush.bf16.msra.mxu0 %v3982_v55  ;;  %v4079_v42 = vld [vmem:[#allocation5 + $0xe8] sm:$0xf0] }
  0x93   :  { %v4750_v63 = vor.u32 %v6056_v49, %v4749_v48  ;;  %v5948_v43 = vld [vmem:[#allocation5 + $0x2cc] sm:$0xf]  ;;  %v4082_v50 = vor.u32 %v5884_v41, %v4079_v42  ;;  %v4181_v41 = vld [vmem:[#allocation5 + $0x190] sm:$0xf] }
  0x94   :  { %1833 = vmatpush.bf16.msra.mxu3 %v4782_v46  ;;  %1808 = vmatpush.bf16.msra.mxu1 %v4238_v59  ;;  %v4335_v45 = vld [vmem:[#allocation5 + $0x2e8] sm:$0xf0]  ;;  %v5913_v42 = vld [vmem:[#allocation5 + $0x1ac] sm:$0xf0] }
  0x95   :  { %1796 = vmatmul.bf16.vlgmr.msra.gmra.mxu0 %v6540_v31  ;;  %v6012_v46 = vld [vmem:[#allocation5 + $0x4cc] sm:$0xf]  ;;  %v4338_v51 = vor.u32 %v5948_v43, %v4335_v45  ;;  %v4437_v43 = vld [vmem:[#allocation5 + $0x390] sm:$0xf] }
  0x96   :  { %1821 = vmatpush.bf16.msra.mxu2 %v4494_v60  ;;  %1840 = vmatpush.bf16.msrb.mxu0 %v4210_v0  ;;  %v4591_v47 = vld [vmem:[#allocation5 + $0x4e8] sm:$0xf0]  ;;  %v5977_v45 = vld [vmem:[#allocation5 + $0x3ac] sm:$0xf0] }
  0x97   :  { %1809 = vmatmul.bf16.vlgmr.msra.gmra.mxu1 %v6542_v32  ;;  %v6076_v48 = vld [vmem:[#allocation5 + $0x6cc] sm:$0xf]  ;;  %v4594_v52 = vor.u32 %v6012_v46, %v4591_v47  ;;  %v4693_v46 = vld [vmem:[#allocation5 + $0x590] sm:$0xf] }
  0x98   :  { %1834 = vmatpush.bf16.msra.mxu3 %v4750_v63  ;;  %1853 = vmatpush.bf16.msrb.mxu1 %v4466_v1  ;;  %v4847_v49 = vld [vmem:[#allocation5 + $0x6e8] sm:$0xf0]  ;;  %v6041_v47 = vld [vmem:[#allocation5 + $0x5ac] sm:$0xf0] }
  0x99   :  { %1822 = vmatmul.bf16.vlgmr.msra.gmra.mxu2 %v6546_v53  ;;  %v5876_v55 = vld [vmem:[#allocation5 + $0x8c] sm:$0xf]  ;;  %v4850_v58 = vor.u32 %v6076_v48, %v4847_v49  ;;  %v4949_v48 = vld [vmem:[#allocation5 + $0x790] sm:$0xf] }
  0x9a   :  { %1866 = vmatpush.bf16.msrb.mxu2 %v4722_v2  ;;  %1841 = vmatpush.bf16.msrb.mxu0 %v4178_v12  ;;  %v4047_v56 = vld [vmem:[#allocation5 + $0xa8] sm:$0xf0]  ;;  %v6105_v49 = vld [vmem:[#allocation5 + $0x7ac] sm:$0xf0] }
  0x9b   :  { %1835 = vmatmul.bf16.vlgmr.msra.gmra.mxu3 %v6548_v54  ;;  %v5940_v57 = vld [vmem:[#allocation5 + $0x28c] sm:$0xf]  ;;  %v4050_v0 = vor.u32 %v5876_v55, %v4047_v56  ;;  %v4149_v55 = vld [vmem:[#allocation5 + $0x150] sm:$0xf] }
  0x9c   :  { %1879 = vmatpush.bf16.msrb.mxu3 %v4978_v6  ;;  %1854 = vmatpush.bf16.msrb.mxu1 %v4434_v13  ;;  %v4303_v59 = vld [vmem:[#allocation5 + $0x2a8] sm:$0xf0]  ;;  %v5905_v56 = vld [vmem:[#allocation5 + $0x16c] sm:$0xf0] }
  0x9d   :  { %v6004_v60 = vld [vmem:[#allocation5 + $0x48c] sm:$0xf]  ;;  %v4306_v1 = vor.u32 %v5940_v57, %v4303_v59  ;;  %v4405_v57 = vld [vmem:[#allocation5 + $0x350] sm:$0xf] }
  0x9e   :  { %1867 = vmatpush.bf16.msrb.mxu2 %v4690_v14  ;;  %1842 = vmatpush.bf16.msrb.mxu0 %v4146_v24  ;;  %v4559_v61 = vld [vmem:[#allocation5 + $0x4a8] sm:$0xf0]  ;;  %v4213_v24 = vld [vmem:[#allocation5 + $0x1d0] sm:$0xf] }
  0x9f   :  { %v6068_v62 = vld [vmem:[#allocation5 + $0x68c] sm:$0xf]  ;;  %v4562_v2 = vor.u32 %v6004_v60, %v4559_v61  ;;  %v5969_v59 = vld [vmem:[#allocation5 + $0x36c] sm:$0xf0] }
  0xa0   :  { %1880 = vmatpush.bf16.msrb.mxu3 %v4946_v18  ;;  %1855 = vmatpush.bf16.msrb.mxu1 %v4402_v25  ;;  %v4815_v63 = vld [vmem:[#allocation5 + $0x6a8] sm:$0xf0]  ;;  %v5921_v25 = vld [vmem:[#allocation5 + $0x1ec] sm:$0xf0] }
  0xa1   :  { %v5868_v3 = vld [vmem:[#allocation5 + $0x4c] sm:$0xf]  ;;  %v4818_v6 = vor.u32 %v6068_v62, %v4815_v63  ;;  %v4661_v60 = vld [vmem:[#allocation5 + $0x550] sm:$0xf] }
  0xa2   :  { %1868 = vmatpush.bf16.msrb.mxu2 %v4658_v26  ;;  %1843 = vmatpush.bf16.msrb.mxu0 %v4114_v38  ;;  %v4015_v4 = vld [vmem:[#allocation5 + $0x68] sm:$0xf0]  ;;  %v4469_v26 = vld [vmem:[#allocation5 + $0x3d0] sm:$0xf]  ;;  %v4214_v38 = vor.u32 %v5921_v25, %v4213_v24 }
  0xa3   :  { %v5932_v5 = vld [vmem:[#allocation5 + $0x24c] sm:$0xf]  ;;  %v4018_v12 = vor.u32 %v5868_v3, %v4015_v4  ;;  %v6033_v61 = vld [vmem:[#allocation5 + $0x56c] sm:$0xf0] }
  0xa4   :  { %1881 = vmatpush.bf16.msrb.mxu3 %v4914_v30  ;;  %1856 = vmatpush.bf16.msrb.mxu1 %v4370_v39  ;;  %v4271_v7 = vld [vmem:[#allocation5 + $0x268] sm:$0xf0]  ;;  %v6049_v30 = vld [vmem:[#allocation5 + $0x5ec] sm:$0xf0]  ;;  %v4470_v39 = vor.u32 %v5985_v28, %v4469_v26 }
  0xa5   :  { %v5996_v8 = vld [vmem:[#allocation5 + $0x44c] sm:$0xf]  ;;  %v4274_v15 = vor.u32 %v5932_v5, %v4271_v7  ;;  %v4917_v62 = vld [vmem:[#allocation5 + $0x750] sm:$0xf] }
  0xa6   :  { %1869 = vmatpush.bf16.msrb.mxu2 %v4626_v40  ;;  %1844 = vmatpush.bf16.msrb.mxu0 %v4082_v50  ;;  %v4527_v9 = vld [vmem:[#allocation5 + $0x468] sm:$0xf0]  ;;  %v4726_v40 = vor.u32 %v6049_v30, %v4725_v29  ;;  %v4182_v50 = vor.u32 %v5913_v42, %v4181_v41  ;;  %v6097_v63 = vld [vmem:[#allocation5 + $0x76c] sm:$0xf0] }
  0xa7   :  { %v6060_v10 = vld [vmem:[#allocation5 + $0x64c] sm:$0xf]  ;;  %v4530_v16 = vor.u32 %v5996_v8, %v4527_v9  ;;  %v4117_v3 = vld [vmem:[#allocation5 + $0x110] sm:$0xf] }
  0xa8   :  { %1882 = vmatpush.bf16.msrb.mxu3 %v4882_v44  ;;  %1857 = vmatpush.bf16.msrb.mxu1 %v4338_v51  ;;  %v4783_v11 = vld [vmem:[#allocation5 + $0x668] sm:$0xf0]  ;;  %v4982_v44 = vor.u32 %v6113_v36, %v4981_v35  ;;  %v4438_v51 = vor.u32 %v5977_v45, %v4437_v43  ;;  %v5897_v4 = vld [vmem:[#allocation5 + $0x12c] sm:$0xf0] }
  0xa9   :  { %v5860_v13 = vld [vmem:[#allocation5 + $0xc] sm:$0xf]  ;;  %v4786_v20 = vor.u32 %v6060_v10, %v4783_v11  ;;  %v4373_v5 = vld [vmem:[#allocation5 + $0x310] sm:$0xf] }
  0xaa   :  { %1870 = vmatpush.bf16.msrb.mxu2 %v4594_v52  ;;  %1845 = vmatpush.bf16.msrb.mxu0 %v4050_v0  ;;  %v3983_v14 = vld [vmem:[#allocation5 + $0x28] sm:$0xf0]  ;;  %v4694_v52 = vor.u32 %v6041_v47, %v4693_v46  ;;  %v4150_v0 = vor.u32 %v5905_v56, %v4149_v55  ;;  %v5961_v7 = vld [vmem:[#allocation5 + $0x32c] sm:$0xf0] }
  0xab   :  { %v5924_v17 = vld [vmem:[#allocation5 + $0x20c] sm:$0xf]  ;;  %v3986_v27 = vor.u32 %v5860_v13, %v3983_v14  ;;  %v4629_v8 = vld [vmem:[#allocation5 + $0x510] sm:$0xf]  ;;  %v4374_v13 = vor.u32 %v5961_v7, %v4373_v5  ;;  %v6045_v5 = vld [vmem:[#allocation5 + $0x5d4] sm:$0xf] }
  0xac   :  { %1883 = vmatpush.bf16.msrb.mxu3 %v4850_v58  ;;  %1858 = vmatpush.bf16.msrb.mxu1 %v4306_v1  ;;  %v4239_v18 = vld [vmem:[#allocation5 + $0x228] sm:$0xf0]  ;;  %v4950_v58 = vor.u32 %v6105_v49, %v4949_v48  ;;  %v4406_v1 = vor.u32 %v5969_v59, %v4405_v57  ;;  %v6025_v9 = vld [vmem:[#allocation5 + $0x52c] sm:$0xf0] }
  0xad   :  { %v5988_v19 = vld [vmem:[#allocation5 + $0x40c] sm:$0xf]  ;;  %v4242_v33 = vor.u32 %v5924_v17, %v4239_v18  ;;  %v4885_v10 = vld [vmem:[#allocation5 + $0x710] sm:$0xf]  ;;  %v4630_v14 = vor.u32 %v6025_v9, %v4629_v8  ;;  %v6109_v9 = vld [vmem:[#allocation5 + $0x7d4] sm:$0xf] }
  0xae   :  { %1871 = vmatpush.bf16.msrb.mxu2 %v4562_v2  ;;  %v4495_v21 = vld [vmem:[#allocation5 + $0x428] sm:$0xf0]  ;;  %1846 = vmatpush.bf16.msrb.mxu0 %v4018_v12  ;;  %v4662_v2 = vor.u32 %v6033_v61, %v4661_v60  ;;  %v6089_v11 = vld [vmem:[#allocation5 + $0x72c] sm:$0xf0]  ;;  %v4118_v12 = vor.u32 %v5897_v4, %v4117_v3  ;;  %v4471_v4 = vld [vmem:[#allocation5 + $0x3f0] sm:$0xf0] }
  0xaf   :  { %v6052_v22 = vld [vmem:[#allocation5 + $0x60c] sm:$0xf]  ;;  %v4498_v34 = vor.u32 %v5988_v19, %v4495_v21  ;;  %v4341_v17 = vld [vmem:[#allocation5 + $0x2d0] sm:$0xf]  ;;  %v4886_v18 = vor.u32 %v6089_v11, %v4885_v10  ;;  %v4983_v10 = vld [vmem:[#allocation5 + $0x7f0] sm:$0xf0] }
  0xb0   :  { %1884 = vmatpush.bf16.msrb.mxu3 %v4818_v6  ;;  %v4751_v23 = vld [vmem:[#allocation5 + $0x628] sm:$0xf0]  ;;  %1859 = vmatpush.bf16.msrb.mxu1 %v4274_v15  ;;  %v4918_v6 = vor.u32 %v6097_v63, %v4917_v62  ;;  %v4085_v15 = vld [vmem:[#allocation5 + $0xd0] sm:$0xf] }
  0xb1   :  { %v4754_v37 = vor.u32 %v6052_v22, %v4751_v23  ;;  %v5953_v19 = vld [vmem:[#allocation5 + $0x2ec] sm:$0xf0] }
  0xb2   :  { %1872 = vmatpush.bf16.msrb.mxu2 %v4530_v16  ;;  %1847 = vmatpush.bf16.msrb.mxu0 %v3986_v27  ;;  %v5889_v16 = vld [vmem:[#allocation5 + $0xec] sm:$0xf0]  ;;  %v4342_v25 = vor.u32 %v5953_v19, %v4341_v17  ;;  %v5973_v17 = vld [vmem:[#allocation5 + $0x394] sm:$0xf] }
  0xb3   :  { %v6017_v21 = vld [vmem:[#allocation5 + $0x4ec] sm:$0xf0]  ;;  %v4086_v24 = vor.u32 %v5889_v16, %v4085_v15  ;;  %v5909_v15 = vld [vmem:[#allocation5 + $0x194] sm:$0xf] }
  0xb4   :  { %1885 = vmatpush.bf16.msrb.mxu3 %v4786_v20  ;;  %1860 = vmatpush.bf16.msrb.mxu1 %v4242_v33  ;;  %v4597_v20 = vld [vmem:[#allocation5 + $0x4d0] sm:$0xf]  ;;  %v4183_v16 = vld [vmem:[#allocation5 + $0x1b0] sm:$0xf0] }
  0xb5   :  { %1848 = vmatmul.bf16.vlgmr.msrb.gmra.mxu0 %v6540_v31  ;;  %v4853_v22 = vld [vmem:[#allocation5 + $0x6d0] sm:$0xf]  ;;  %v4598_v26 = vor.u32 %v6017_v21, %v4597_v20  ;;  %v4439_v19 = vld [vmem:[#allocation5 + $0x3b0] sm:$0xf0] }
  0xb6   :  { %1873 = vmatpush.bf16.msrb.mxu2 %v4498_v34  ;;  %1892 = vmatpush.bf16.msra.mxu0 %v4214_v38  ;;  %v6081_v23 = vld [vmem:[#allocation5 + $0x6ec] sm:$0xf0]  ;;  %v6037_v20 = vld [vmem:[#allocation5 + $0x594] sm:$0xf] }
  0xb7   :  { %1861 = vmatmul.bf16.vlgmr.msrb.gmra.mxu1 %v6542_v32  ;;  %v4053_v27 = vld [vmem:[#allocation5 + $0x90] sm:$0xf]  ;;  %v4854_v30 = vor.u32 %v6081_v23, %v4853_v22  ;;  %v4695_v21 = vld [vmem:[#allocation5 + $0x5b0] sm:$0xf0] }
  0xb8   :  { %1886 = vmatpush.bf16.msrb.mxu3 %v4754_v37  ;;  %1905 = vmatpush.bf16.msra.mxu1 %v4470_v39  ;;  %v5881_v28 = vld [vmem:[#allocation5 + $0xac] sm:$0xf0]  ;;  %v6101_v22 = vld [vmem:[#allocation5 + $0x794] sm:$0xf] }
  0xb9   :  { %1874 = vmatmul.bf16.vlgmr.msrb.gmra.mxu2 %v6546_v53  ;;  %v4309_v29 = vld [vmem:[#allocation5 + $0x290] sm:$0xf]  ;;  %v4054_v38 = vor.u32 %v5881_v28, %v4053_v27  ;;  %v4951_v23 = vld [vmem:[#allocation5 + $0x7b0] sm:$0xf0] }
  0xba   :  { %1918 = vmatpush.bf16.msra.mxu2 %v4726_v40  ;;  %1893 = vmatpush.bf16.msra.mxu0 %v4182_v50  ;;  %v5945_v33 = vld [vmem:[#allocation5 + $0x2ac] sm:$0xf0]  ;;  %v5901_v27 = vld [vmem:[#allocation5 + $0x154] sm:$0xf] }
  0xbb   :  { %1887 = vmatmul.bf16.vlgmr.msrb.gmra.mxu3 %v6548_v54  ;;  %v4565_v34 = vld [vmem:[#allocation5 + $0x490] sm:$0xf]  ;;  %v4310_v39 = vor.u32 %v5945_v33, %v4309_v29  ;;  %v4151_v28 = vld [vmem:[#allocation5 + $0x170] sm:$0xf0] }
  0xbc   :  { %1931 = vmatpush.bf16.msra.mxu3 %v4982_v44  ;;  %1906 = vmatpush.bf16.msra.mxu1 %v4438_v51  ;;  %v6009_v35 = vld [vmem:[#allocation5 + $0x4ac] sm:$0xf0]  ;;  %v5965_v29 = vld [vmem:[#allocation5 + $0x354] sm:$0xf] }
  0xbd   :  { %v4821_v36 = vld [vmem:[#allocation5 + $0x690] sm:$0xf]  ;;  %v4566_v40 = vor.u32 %v6009_v35, %v4565_v34  ;;  %v4407_v33 = vld [vmem:[#allocation5 + $0x370] sm:$0xf0] }
  0xbe   :  { %1919 = vmatpush.bf16.msra.mxu2 %v4694_v52  ;;  %1894 = vmatpush.bf16.msra.mxu0 %v4150_v0  ;;  %v6073_v37 = vld [vmem:[#allocation5 + $0x6ac] sm:$0xf0]  ;;  %v5917_v0 = vld [vmem:[#allocation5 + $0x1d4] sm:$0xf] }
  0xbf   :  { %v4021_v41 = vld [vmem:[#allocation5 + $0x50] sm:$0xf]  ;;  %v4822_v44 = vor.u32 %v6073_v37, %v4821_v36  ;;  %v6029_v34 = vld [vmem:[#allocation5 + $0x554] sm:$0xf] }
  0xc0   :  { %1932 = vmatpush.bf16.msra.mxu3 %v4950_v58  ;;  %1907 = vmatpush.bf16.msra.mxu1 %v4406_v1  ;;  %v5873_v42 = vld [vmem:[#allocation5 + $0x6c] sm:$0xf0]  ;;  %v4215_v1 = vld [vmem:[#allocation5 + $0x1f0] sm:$0xf0] }
  0xc1   :  { %v4277_v43 = vld [vmem:[#allocation5 + $0x250] sm:$0xf]  ;;  %v4022_v50 = vor.u32 %v5873_v42, %v4021_v41  ;;  %v4663_v35 = vld [vmem:[#allocation5 + $0x570] sm:$0xf0] }
  0xc2   :  { %1920 = vmatpush.bf16.msra.mxu2 %v4662_v2  ;;  %1895 = vmatpush.bf16.msra.mxu0 %v4118_v12  ;;  %v5937_v45 = vld [vmem:[#allocation5 + $0x26c] sm:$0xf0]  ;;  %v5981_v2 = vld [vmem:[#allocation5 + $0x3d4] sm:$0xf]  ;;  %v4218_v12 = vor.u32 %v5917_v0, %v4215_v1 }
  0xc3   :  { %v4533_v46 = vld [vmem:[#allocation5 + $0x450] sm:$0xf]  ;;  %v4278_v55 = vor.u32 %v5937_v45, %v4277_v43  ;;  %v6093_v36 = vld [vmem:[#allocation5 + $0x754] sm:$0xf] }
  0xc4   :  { %1933 = vmatpush.bf16.msra.mxu3 %v4918_v6  ;;  %1908 = vmatpush.bf16.msra.mxu1 %v4374_v13  ;;  %v6001_v47 = vld [vmem:[#allocation5 + $0x46c] sm:$0xf0]  ;;  %v4727_v6 = vld [vmem:[#allocation5 + $0x5f0] sm:$0xf0]  ;;  %v4474_v13 = vor.u32 %v5981_v2, %v4471_v4 }
  0xc5   :  { %v4789_v48 = vld [vmem:[#allocation5 + $0x650] sm:$0xf]  ;;  %v4534_v56 = vor.u32 %v6001_v47, %v4533_v46  ;;  %v4919_v37 = vld [vmem:[#allocation5 + $0x770] sm:$0xf0] }
  0xc6   :  { %1921 = vmatpush.bf16.msra.mxu2 %v4630_v14  ;;  %1896 = vmatpush.bf16.msra.mxu0 %v4086_v24  ;;  %v6065_v49 = vld [vmem:[#allocation5 + $0x66c] sm:$0xf0]  ;;  %v4730_v14 = vor.u32 %v6045_v5, %v4727_v6  ;;  %v4186_v24 = vor.u32 %v5909_v15, %v4183_v16  ;;  %v5893_v41 = vld [vmem:[#allocation5 + $0x114] sm:$0xf]  ;;  %v6568_v6 = vld [vmem:[#allocation7] sm:$0xff] }
  0xc7   :  { %v3989_v51 = vld [vmem:[#allocation5 + $0x10] sm:$0xf]  ;;  %v4790_v60 = vor.u32 %v6065_v49, %v4789_v48  ;;  %v4119_v42 = vld [vmem:[#allocation5 + $0x130] sm:$0xf0] }
  0xc8   :  { %1934 = vmatpush.bf16.msra.mxu3 %v4886_v18  ;;  %1909 = vmatpush.bf16.msra.mxu1 %v4342_v25  ;;  %v5865_v52 = vld [vmem:[#allocation5 + $0x2c] sm:$0xf0]  ;;  %v4986_v18 = vor.u32 %v6109_v9, %v4983_v10  ;;  %v4442_v25 = vor.u32 %v5973_v17, %v4439_v19  ;;  %v5957_v43 = vld [vmem:[#allocation5 + $0x314] sm:$0xf] }
  0xc9   :  { %v4245_v57 = vld [vmem:[#allocation5 + $0x210] sm:$0xf]  ;;  %v3990_v3 = vor.u32 %v5865_v52, %v3989_v51  ;;  %v4375_v45 = vld [vmem:[#allocation5 + $0x330] sm:$0xf0] }
  0xca   :  { %1922 = vmatpush.bf16.msra.mxu2 %v4598_v26  ;;  %1897 = vmatpush.bf16.msra.mxu0 %v4054_v38  ;;  %v5929_v58 = vld [vmem:[#allocation5 + $0x22c] sm:$0xf0]  ;;  %v4698_v26 = vor.u32 %v6037_v20, %v4695_v21  ;;  %v4154_v38 = vor.u32 %v5901_v27, %v4151_v28  ;;  %v6021_v46 = vld [vmem:[#allocation5 + $0x514] sm:$0xf]  ;;  %v4378_v51 = vor.u32 %v5957_v43, %v4375_v45  ;;  %v5922_v45 = vld [vmem:[#allocation5 + $0x1f4] sm:$0xf0] }
  0xcb   :  { %v4501_v59 = vld [vmem:[#allocation5 + $0x410] sm:$0xf]  ;;  %v4246_v7 = vor.u32 %v5929_v58, %v4245_v57  ;;  %v4631_v47 = vld [vmem:[#allocation5 + $0x530] sm:$0xf0] }
  0xcc   :  { %1935 = vmatpush.bf16.msra.mxu3 %v4854_v30  ;;  %1910 = vmatpush.bf16.msra.mxu1 %v4310_v39  ;;  %v5993_v61 = vld [vmem:[#allocation5 + $0x42c] sm:$0xf0]  ;;  %v4954_v30 = vor.u32 %v6101_v22, %v4951_v23  ;;  %v4410_v39 = vor.u32 %v5965_v29, %v4407_v33  ;;  %v6085_v48 = vld [vmem:[#allocation5 + $0x714] sm:$0xf]  ;;  %v4634_v52 = vor.u32 %v6021_v46, %v4631_v47  ;;  %v4477_v46 = vld [vmem:[#allocation5 + $0x3d8] sm:$0xf] }
  0xcd   :  { %v4757_v62 = vld [vmem:[#allocation5 + $0x610] sm:$0xf]  ;;  %v4502_v8 = vor.u32 %v5993_v61, %v4501_v59  ;;  %v4887_v49 = vld [vmem:[#allocation5 + $0x730] sm:$0xf0] }
  0xce   :  { %1923 = vmatpush.bf16.msra.mxu2 %v4566_v40  ;;  %v6057_v63 = vld [vmem:[#allocation5 + $0x62c] sm:$0xf0]  ;;  %1898 = vmatpush.bf16.msra.mxu0 %v4022_v50  ;;  %v4666_v40 = vor.u32 %v6029_v34, %v4663_v35  ;;  %v4122_v50 = vor.u32 %v5893_v41, %v4119_v42  ;;  %v5949_v57 = vld [vmem:[#allocation5 + $0x2d4] sm:$0xf]  ;;  %v4890_v58 = vor.u32 %v6085_v48, %v4887_v49  ;;  %v5986_v48 = vld [vmem:[#allocation5 + $0x3f4] sm:$0xf0] }
  0xcf   :  { %v4758_v11 = vor.u32 %v6057_v63, %v4757_v62  ;;  %v4343_v59 = vld [vmem:[#allocation5 + $0x2f0] sm:$0xf0]  ;;  %v4733_v49 = vld [vmem:[#allocation5 + $0x5d8] sm:$0xf] }
  0xd0   :  { %1936 = vmatpush.bf16.msra.mxu3 %v4822_v44  ;;  %1911 = vmatpush.bf16.msra.mxu1 %v4278_v55  ;;  %v4922_v44 = vor.u32 %v6093_v36, %v4919_v37  ;;  %v5885_v55 = vld [vmem:[#allocation5 + $0xd4] sm:$0xf]  ;;  %v4346_v2 = vor.u32 %v5949_v57, %v4343_v59 }
  0xd1   :  { %v4599_v61 = vld [vmem:[#allocation5 + $0x4f0] sm:$0xf0] }
  0xd2   :  { %1924 = vmatpush.bf16.msra.mxu2 %v4534_v56  ;;  %1899 = vmatpush.bf16.msra.mxu0 %v3990_v3  ;;  %v4087_v56 = vld [vmem:[#allocation5 + $0xf0] sm:$0xf0] }
  0xd3   :  { %v6077_v62 = vld [vmem:[#allocation5 + $0x6d4] sm:$0xf]  ;;  %v4090_v0 = vor.u32 %v5885_v55, %v4087_v56  ;;  %v4989_v55 = vld [vmem:[#allocation5 + $0x7d8] sm:$0xf] }
  0xd4   :  { %1937 = vmatpush.bf16.msra.mxu3 %v4790_v60  ;;  %1912 = vmatpush.bf16.msra.mxu1 %v4246_v7  ;;  %v6013_v60 = vld [vmem:[#allocation5 + $0x4d4] sm:$0xf]  ;;  %v6114_v56 = vld [vmem:[#allocation5 + $0x7f4] sm:$0xf0] }
  0xd5   :  { %1900 = vmatmul.bf16.vlgmr.msra.gmra.mxu0 %v6540_v31  ;;  %v4855_v63 = vld [vmem:[#allocation5 + $0x6f0] sm:$0xf0]  ;;  %v4602_v3 = vor.u32 %v6013_v60, %v4599_v61  ;;  %v4478_v60 = vor.u32 %v5986_v48, %v4477_v46  ;;  %v5890_v48 = vld [vmem:[#allocation5 + $0xf4] sm:$0xf0] }
  0xd6   :  { %1925 = vmatpush.bf16.msra.mxu2 %v4502_v8  ;;  %1944 = vmatpush.bf16.msrb.mxu0 %v4218_v12  ;;  %v5877_v1 = vld [vmem:[#allocation5 + $0x94] sm:$0xf]  ;;  %v4858_v7 = vor.u32 %v6077_v62, %v4855_v63  ;;  %v4189_v62 = vld [vmem:[#allocation5 + $0x198] sm:$0xf] }
  0xd7   :  { %1913 = vmatmul.bf16.vlgmr.msra.gmra.mxu1 %v6542_v32  ;;  %v4055_v4 = vld [vmem:[#allocation5 + $0xb0] sm:$0xf0]  ;;  %v5914_v63 = vld [vmem:[#allocation5 + $0x1b4] sm:$0xf0] }
  0xd8   :  { %1938 = vmatpush.bf16.msra.mxu3 %v4758_v11  ;;  %1957 = vmatpush.bf16.msrb.mxu1 %v4474_v13  ;;  %v5941_v5 = vld [vmem:[#allocation5 + $0x294] sm:$0xf]  ;;  %v4058_v13 = vor.u32 %v5877_v1, %v4055_v4  ;;  %v4701_v4 = vld [vmem:[#allocation5 + $0x598] sm:$0xf] }
  0xd9   :  { %1926 = vmatmul.bf16.vlgmr.msra.gmra.mxu2 %v6546_v53  ;;  %v4311_v8 = vld [vmem:[#allocation5 + $0x2b0] sm:$0xf0] }
  0xda   :  { %1970 = vmatpush.bf16.msrb.mxu2 %v4730_v14  ;;  %1945 = vmatpush.bf16.msrb.mxu0 %v4186_v24  ;;  %v6005_v9 = vld [vmem:[#allocation5 + $0x494] sm:$0xf]  ;;  %v374_v14 = vperm.slane %v6568_v6, 0  ;;  %v4314_v15 = vor.u32 %v5941_v5, %v4311_v8  ;;  %v1706_v20 = vpop.f32.mrf.mxu1  ;;  %v1693_v27 = vpop.f32.mrf.mxu0  ;;  %v6042_v5 = vld [vmem:[#allocation5 + $0x5b4] sm:$0xf0] }
  0xdb   :  { %1939 = vmatmul.bf16.vlgmr.msra.gmra.mxu3 %v6548_v54  ;;  %v4567_v10 = vld [vmem:[#allocation5 + $0x4b0] sm:$0xf0]  ;;  %v6106_v8 = vld [vmem:[#allocation5 + $0x7b4] sm:$0xf0] }
  0xdc   :  { %1983 = vmatpush.bf16.msrb.mxu3 %v4986_v18  ;;  %1958 = vmatpush.bf16.msrb.mxu1 %v4442_v25  ;;  %v6069_v11 = vld [vmem:[#allocation5 + $0x694] sm:$0xf]  ;;  %v4570_v16 = vor.u32 %v6005_v9, %v4567_v10  ;;  %v1694_v33 = vadd.f32 %v1693_v27, %v374_v14  ;;  %v4190_v9 = vor.u32 %v5914_v63, %v4189_v62  ;;  %v1719_v10 = vpop.f32.mrf.mxu2  ;;  %v4061_v63 = vld [vmem:[#allocation5 + $0x98] sm:$0xf] }
  0xdd   :  { %v4823_v12 = vld [vmem:[#allocation5 + $0x6b0] sm:$0xf0] }
  0xde   :  { %1971 = vmatpush.bf16.msrb.mxu2 %v4698_v26  ;;  %1946 = vmatpush.bf16.msrb.mxu0 %v4154_v38  ;;  %v5869_v17 = vld [vmem:[#allocation5 + $0x54] sm:$0xf]  ;;  %v4826_v21 = vor.u32 %v6069_v11, %v4823_v12  ;;  %v1707_v43 = vadd.f32 %v1706_v20, %v1694_v33  ;;  %v4669_v20 = vld [vmem:[#allocation5 + $0x558] sm:$0xf] }
  0xdf   :  { %v4023_v18 = vld [vmem:[#allocation5 + $0x70] sm:$0xf0]  ;;  %v4381_v33 = vld [vmem:[#allocation5 + $0x318] sm:$0xf] }
  0xe0   :  { %1984 = vmatpush.bf16.msrb.mxu3 %v4954_v30  ;;  %1959 = vmatpush.bf16.msrb.mxu1 %v4410_v39  ;;  %v5933_v19 = vld [vmem:[#allocation5 + $0x254] sm:$0xf]  ;;  %v4026_v28 = vor.u32 %v5869_v17, %v4023_v18  ;;  %v1720_v14 = vadd.f32 %v1719_v10, %v1707_v43  ;;  %v4413_v17 = vld [vmem:[#allocation5 + $0x358] sm:$0xf] }
  0xe1   :  { %v4279_v22 = vld [vmem:[#allocation5 + $0x270] sm:$0xf0] }
  0xe2   :  { %1972 = vmatpush.bf16.msrb.mxu2 %v4666_v40  ;;  %1947 = vmatpush.bf16.msrb.mxu0 %v4122_v50  ;;  %v5997_v23 = vld [vmem:[#allocation5 + $0x454] sm:$0xf]  ;;  %v4282_v34 = vor.u32 %v5933_v19, %v4279_v22  ;;  %v6050_v50 = vld [vmem:[#allocation5 + $0x5f4] sm:$0xf0]  ;;  %v1708_v57 = vpop.f32.mrf.mxu1  ;;  %v1695_v1 = vpop.f32.mrf.mxu0 }
  0xe3   :  { %v4535_v24 = vld [vmem:[#allocation5 + $0x470] sm:$0xf0]  ;;  %v4734_v61 = vor.u32 %v6050_v50, %v4733_v49  ;;  %v1732_v11 = vpop.f32.mrf.mxu3  ;;  %v5970_v19 = vld [vmem:[#allocation5 + $0x374] sm:$0xf0] }
  0xe4   :  { %1985 = vmatpush.bf16.msrb.mxu3 %v4922_v44  ;;  %1960 = vmatpush.bf16.msrb.mxu1 %v4378_v51  ;;  %v6061_v25 = vld [vmem:[#allocation5 + $0x654] sm:$0xf]  ;;  %v4538_v35 = vor.u32 %v5997_v23, %v4535_v24  ;;  %v4221_v44 = vld [vmem:[#allocation5 + $0x1d8] sm:$0xf]  ;;  %v6574_v24 = vadd.f32 %v1732_v11, %v1720_v14  ;;  %v4414_v27 = vor.u32 %v5970_v19, %v4413_v17 }
  0xe5   :  { %v4791_v26 = vld [vmem:[#allocation5 + $0x670] sm:$0xf0]  ;;  %v4222_v59 = vor.u32 %v5922_v45, %v4221_v44  ;;  %v4925_v22 = vld [vmem:[#allocation5 + $0x758] sm:$0xf] }
  0xe6   :  { %1973 = vmatpush.bf16.msrb.mxu2 %v4634_v52  ;;  %1948 = vmatpush.bf16.msrb.mxu0 %v4090_v0  ;;  %v5861_v29 = vld [vmem:[#allocation5 + $0x14] sm:$0xf]  ;;  %v4794_v39 = vor.u32 %v6061_v25, %v4791_v26  ;;  %v4445_v0 = vld [vmem:[#allocation5 + $0x398] sm:$0xf]  ;;  %v375_v26 = vperm.slane %v6568_v6, 1 }
  0xe7   :  { %v3991_v30 = vld [vmem:[#allocation5 + $0x30] sm:$0xf0]  ;;  %v6098_v23 = vld [vmem:[#allocation5 + $0x774] sm:$0xf0] }
  0xe8   :  { %1986 = vmatpush.bf16.msrb.mxu3 %v4890_v58  ;;  %1961 = vmatpush.bf16.msrb.mxu1 %v4346_v2  ;;  %v5925_v36 = vld [vmem:[#allocation5 + $0x214] sm:$0xf]  ;;  %v3994_v47 = vor.u32 %v5861_v29, %v3991_v30  ;;  %v4990_v2 = vor.u32 %v6114_v56, %v4989_v55  ;;  %v4125_v29 = vld [vmem:[#allocation5 + $0x118] sm:$0xf] }
  0xe9   :  { %v4247_v37 = vld [vmem:[#allocation5 + $0x230] sm:$0xf0]  ;;  %v5898_v30 = vld [vmem:[#allocation5 + $0x134] sm:$0xf0] }
  0xea   :  { %1974 = vmatpush.bf16.msrb.mxu2 %v4602_v3  ;;  %1949 = vmatpush.bf16.msrb.mxu0 %v4058_v13  ;;  %v5989_v38 = vld [vmem:[#allocation5 + $0x414] sm:$0xf]  ;;  %v4250_v51 = vor.u32 %v5925_v36, %v4247_v37  ;;  %v5978_v3 = vld [vmem:[#allocation5 + $0x3b4] sm:$0xf0]  ;;  %v4702_v13 = vor.u32 %v6042_v5, %v4701_v4 }
  0xeb   :  { %v4503_v40 = vld [vmem:[#allocation5 + $0x430] sm:$0xf0]  ;;  %v4446_v12 = vor.u32 %v5978_v3, %v4445_v0  ;;  %v4637_v36 = vld [vmem:[#allocation5 + $0x518] sm:$0xf]  ;;  %v1734_v43 = vpop.f32.mrf.mxu3 }
  0xec   :  { %1987 = vmatpush.bf16.msrb.mxu3 %v4858_v7  ;;  %1962 = vmatpush.bf16.msrb.mxu1 %v4314_v15  ;;  %v6053_v41 = vld [vmem:[#allocation5 + $0x614] sm:$0xf]  ;;  %v4506_v52 = vor.u32 %v5989_v38, %v4503_v40  ;;  %v4957_v7 = vld [vmem:[#allocation5 + $0x798] sm:$0xf]  ;;  %v4223_v43 = vld [vmem:[#allocation5 + $0x1f8] sm:$0xf0] }
  0xed   :  { %v4759_v42 = vld [vmem:[#allocation5 + $0x630] sm:$0xf0]  ;;  %v4157_v15 = vld [vmem:[#allocation5 + $0x158] sm:$0xf]  ;;  %v4958_v18 = vor.u32 %v6106_v8, %v4957_v7 }
  0xee   :  { %1975 = vmatpush.bf16.msrb.mxu2 %v4570_v16  ;;  %1950 = vmatpush.bf16.msrb.mxu0 %v4026_v28  ;;  %v4762_v58 = vor.u32 %v6053_v41, %v4759_v42  ;;  %v5906_v16 = vld [vmem:[#allocation5 + $0x174] sm:$0xf0]  ;;  %v4126_v41 = vor.u32 %v5898_v30, %v4125_v29  ;;  %v1721_v42 = vpop.f32.mrf.mxu2 }
  0xef   :  { %v4158_v25 = vor.u32 %v5906_v16, %v4157_v15  ;;  %v6026_v37 = vld [vmem:[#allocation5 + $0x534] sm:$0xf0]  ;;  %v5918_v42 = vld [vmem:[#allocation5 + $0x1dc] sm:$0xf] }
  0xf0   :  { %1988 = vmatpush.bf16.msrb.mxu3 %v4826_v21  ;;  %1963 = vmatpush.bf16.msrb.mxu1 %v4282_v34  ;;  %v6034_v21 = vld [vmem:[#allocation5 + $0x574] sm:$0xf0]  ;;  %v4926_v34 = vor.u32 %v6098_v23, %v4925_v22  ;;  %v4638_v46 = vor.u32 %v6026_v37, %v4637_v36 }
  0xf1   :  { %v4670_v28 = vor.u32 %v6034_v21, %v4669_v20  ;;  %v4893_v38 = vld [vmem:[#allocation5 + $0x718] sm:$0xf] }
  0xf2   :  { %1976 = vmatpush.bf16.msrb.mxu2 %v4538_v35  ;;  %1951 = vmatpush.bf16.msrb.mxu0 %v3994_v47  ;;  %v5962_v35 = vld [vmem:[#allocation5 + $0x334] sm:$0xf0]  ;;  %v1745_v40 = vpop.f32.mrf.mxu0 }
  0xf3   :  { %v1746_v44 = vadd.f32 %v1745_v40, %v375_v26  ;;  %v4382_v45 = vor.u32 %v5962_v35, %v4381_v33  ;;  %v4093_v47 = vld [vmem:[#allocation5 + $0xd8] sm:$0xf] }
  0xf4   :  { %1989 = vmatpush.bf16.msrb.mxu3 %v4794_v39  ;;  %1964 = vmatpush.bf16.msrb.mxu1 %v4250_v51  ;;  %v6090_v39 = vld [vmem:[#allocation5 + $0x734] sm:$0xf0]  ;;  %v1758_v50 = vpop.f32.mrf.mxu1 }
  0xf5   :  { %1952 = vmatmul.bf16.vlgmr.msrb.gmra.mxu0 %v6540_v31  ;;  %v4349_v49 = vld [vmem:[#allocation5 + $0x2d8] sm:$0xf]  ;;  %v4894_v51 = vor.u32 %v6090_v39, %v4893_v38  ;;  %v1759_v57 = vadd.f32 %v1758_v50, %v1746_v44  ;;  %v5982_v44 = vld [vmem:[#allocation5 + $0x3dc] sm:$0xf] }
  0xf6   :  { %1977 = vmatpush.bf16.msrb.mxu2 %v4506_v52  ;;  %1996 = vmatpush.bf16.msra.mxu0 %v4222_v59  ;;  %v5954_v52 = vld [vmem:[#allocation5 + $0x2f4] sm:$0xf0] }
  0xf7   :  { %1965 = vmatmul.bf16.vlgmr.msrb.gmra.mxu1 %v6542_v32  ;;  %v4605_v55 = vld [vmem:[#allocation5 + $0x4d8] sm:$0xf] }
  0xf8   :  { %1990 = vmatpush.bf16.msrb.mxu3 %v4762_v58  ;;  %2009 = vmatpush.bf16.msra.mxu1 %v4478_v60  ;;  %v6018_v56 = vld [vmem:[#allocation5 + $0x4f4] sm:$0xf0]  ;;  %v4094_v60 = vor.u32 %v5890_v48, %v4093_v47  ;;  %v6046_v47 = vld [vmem:[#allocation5 + $0x5dc] sm:$0xf] }
  0xf9   :  { %1978 = vmatmul.bf16.vlgmr.msrb.gmra.mxu2 %v6546_v53  ;;  %v4861_v58 = vld [vmem:[#allocation5 + $0x6d8] sm:$0xf]  ;;  %v4606_v62 = vor.u32 %v6018_v56, %v4605_v55  ;;  %v4735_v48 = vld [vmem:[#allocation5 + $0x5f8] sm:$0xf0] }
  0xfa   :  { %2022 = vmatpush.bf16.msra.mxu2 %v4734_v61  ;;  %1997 = vmatpush.bf16.msra.mxu0 %v4190_v9  ;;  %v6082_v59 = vld [vmem:[#allocation5 + $0x6f4] sm:$0xf0]  ;;  %v4350_v61 = vor.u32 %v5954_v52, %v4349_v49  ;;  %v1747_v9 = vpop.f32.mrf.mxu0  ;;  %v4991_v52 = vld [vmem:[#allocation5 + $0x7f8] sm:$0xf0] }
  0xfb   :  { %1991 = vmatmul.bf16.vlgmr.msrb.gmra.mxu3 %v6548_v54  ;;  %v5882_v0 = vld [vmem:[#allocation5 + $0xb4] sm:$0xf0] }
  0xfc   :  { %2035 = vmatpush.bf16.msra.mxu3 %v4990_v2  ;;  %2010 = vmatpush.bf16.msra.mxu1 %v4446_v12  ;;  %v4317_v1 = vld [vmem:[#allocation5 + $0x298] sm:$0xf]  ;;  %v4862_v2 = vor.u32 %v6082_v59, %v4861_v58  ;;  %v4062_v10 = vor.u32 %v5882_v0, %v4061_v63  ;;  %v1771_v16 = vpop.f32.mrf.mxu2  ;;  %v1760_v17 = vpop.f32.mrf.mxu1  ;;  %v5974_v63 = vld [vmem:[#allocation5 + $0x39c] sm:$0xf] }
  0xfd   :  { %v5946_v3 = vld [vmem:[#allocation5 + $0x2b4] sm:$0xf0]  ;;  %v1772_v22 = vadd.f32 %v1771_v16, %v1759_v57  ;;  %v4226_v57 = vor.u32 %v5918_v42, %v4223_v43  ;;  %v4671_v16 = vld [vmem:[#allocation5 + $0x578] sm:$0xf0] }
  0xfe   :  { %2023 = vmatpush.bf16.msra.mxu2 %v4702_v13  ;;  %1998 = vmatpush.bf16.msra.mxu0 %v4158_v25  ;;  %v4573_v4 = vld [vmem:[#allocation5 + $0x498] sm:$0xf]  ;;  %v4318_v11 = vor.u32 %v5946_v3, %v4317_v1  ;;  %v1784_v23 = vpop.f32.mrf.mxu3  ;;  %v4447_v1 = vld [vmem:[#allocation5 + $0x3b8] sm:$0xf0] }
  0xff   :  { %v6010_v5 = vld [vmem:[#allocation5 + $0x4b4] sm:$0xf0]  ;;  %v6578_v30 = vadd.f32 %v1784_v23, %v1772_v22  ;;  %v4703_v3 = vld [vmem:[#allocation5 + $0x5b8] sm:$0xf0] }
 0x100   :  { %2036 = vmatpush.bf16.msra.mxu3 %v4958_v18  ;;  %2011 = vmatpush.bf16.msra.mxu1 %v4414_v27  ;;  %v4829_v7 = vld [vmem:[#allocation5 + $0x698] sm:$0xf]  ;;  %v4574_v12 = vor.u32 %v6010_v5, %v4573_v4  ;;  %v6102_v4 = vld [vmem:[#allocation5 + $0x79c] sm:$0xf] }
 0x101   :  { %v6074_v8 = vld [vmem:[#allocation5 + $0x6b4] sm:$0xf0]  ;;  %v4959_v5 = vld [vmem:[#allocation5 + $0x7b8] sm:$0xf0] }
 0x102   :  { %2024 = vmatpush.bf16.msra.mxu2 %v4670_v28  ;;  %1999 = vmatpush.bf16.msra.mxu0 %v4126_v41  ;;  %v4029_v13 = vld [vmem:[#allocation5 + $0x58] sm:$0xf]  ;;  %v4830_v18 = vor.u32 %v6074_v8, %v4829_v7  ;;  %v4450_v8 = vor.u32 %v5974_v63, %v4447_v1  ;;  %v6094_v17 = vld [vmem:[#allocation5 + $0x75c] sm:$0xf] }
 0x103   :  { %v5874_v14 = vld [vmem:[#allocation5 + $0x74] sm:$0xf0]  ;;  %v5894_v22 = vld [vmem:[#allocation5 + $0x11c] sm:$0xf] }
 0x104   :  { %2037 = vmatpush.bf16.msra.mxu3 %v4926_v34  ;;  %2012 = vmatpush.bf16.msra.mxu1 %v4382_v45  ;;  %v4285_v15 = vld [vmem:[#allocation5 + $0x258] sm:$0xf]  ;;  %v4030_v27 = vor.u32 %v5874_v14, %v4029_v13  ;;  %v1773_v55 = vpop.f32.mrf.mxu2  ;;  %v4962_v13 = vor.u32 %v6102_v4, %v4959_v5  ;;  %v4415_v14 = vld [vmem:[#allocation5 + $0x378] sm:$0xf0] }
 0x105   :  { %v5938_v19 = vld [vmem:[#allocation5 + $0x274] sm:$0xf0]  ;;  %v4127_v23 = vld [vmem:[#allocation5 + $0x138] sm:$0xf0] }
 0x106   :  { %2025 = vmatpush.bf16.msra.mxu2 %v4638_v46  ;;  %2000 = vmatpush.bf16.msra.mxu0 %v4094_v60  ;;  %v4541_v20 = vld [vmem:[#allocation5 + $0x458] sm:$0xf]  ;;  %v4286_v33 = vor.u32 %v5938_v19, %v4285_v15  ;;  %v4479_v46 = vld [vmem:[#allocation5 + $0x3f8] sm:$0xf0]  ;;  %v1786_v58 = vpop.f32.mrf.mxu3  ;;  %v4738_v60 = vor.u32 %v6046_v47, %v4735_v48 }
 0x107   :  { %v6002_v21 = vld [vmem:[#allocation5 + $0x474] sm:$0xf0]  ;;  %v4482_v59 = vor.u32 %v5982_v44, %v4479_v46  ;;  %v6030_v15 = vld [vmem:[#allocation5 + $0x55c] sm:$0xf] }
 0x108   :  { %2038 = vmatpush.bf16.msra.mxu3 %v4894_v51  ;;  %2013 = vmatpush.bf16.msra.mxu1 %v4350_v61  ;;  %v4797_v25 = vld [vmem:[#allocation5 + $0x658] sm:$0xf]  ;;  %v4542_v34 = vor.u32 %v6002_v21, %v4541_v20  ;;  %v6110_v51 = vld [vmem:[#allocation5 + $0x7dc] sm:$0xf]  ;;  %v4674_v21 = vor.u32 %v6030_v15, %v4671_v16 }
 0x109   :  { %v6066_v26 = vld [vmem:[#allocation5 + $0x674] sm:$0xf0]  ;;  %v5910_v61 = vld [vmem:[#allocation5 + $0x19c] sm:$0xf]  ;;  %v4994_v0 = vor.u32 %v6110_v51, %v4991_v52 }
 0x10a   :  { %2026 = vmatpush.bf16.msra.mxu2 %v4606_v62  ;;  %2001 = vmatpush.bf16.msra.mxu0 %v4062_v10  ;;  %v3997_v28 = vld [vmem:[#allocation5 + $0x18] sm:$0xf]  ;;  %v4798_v38 = vor.u32 %v6066_v26, %v4797_v25  ;;  %v4191_v62 = vld [vmem:[#allocation5 + $0x1b8] sm:$0xf0] }
 0x10b   :  { %v5866_v29 = vld [vmem:[#allocation5 + $0x34] sm:$0xf0]  ;;  %v4194_v7 = vor.u32 %v5910_v61, %v4191_v62  ;;  %v5902_v10 = vld [vmem:[#allocation5 + $0x15c] sm:$0xf] }
 0x10c   :  { %2039 = vmatpush.bf16.msra.mxu3 %v4862_v2  ;;  %2014 = vmatpush.bf16.msra.mxu1 %v4318_v11  ;;  %v4253_v35 = vld [vmem:[#allocation5 + $0x218] sm:$0xf]  ;;  %v3998_v45 = vor.u32 %v5866_v29, %v3997_v28  ;;  %v6038_v2 = vld [vmem:[#allocation5 + $0x59c] sm:$0xf] }
 0x10d   :  { %v5930_v36 = vld [vmem:[#allocation5 + $0x234] sm:$0xf0]  ;;  %v4706_v9 = vor.u32 %v6038_v2, %v4703_v3  ;;  %v4159_v11 = vld [vmem:[#allocation5 + $0x178] sm:$0xf0] }
 0x10e   :  { %2027 = vmatpush.bf16.msra.mxu2 %v4574_v12  ;;  %v4509_v37 = vld [vmem:[#allocation5 + $0x418] sm:$0xf]  ;;  %2002 = vmatpush.bf16.msra.mxu0 %v4030_v27  ;;  %v4254_v49 = vor.u32 %v5930_v36, %v4253_v35  ;;  %v5966_v12 = vld [vmem:[#allocation5 + $0x35c] sm:$0xf]  ;;  %v4162_v19 = vor.u32 %v5902_v10, %v4159_v11  ;;  %v4130_v35 = vor.u32 %v5894_v22, %v4127_v23 }
 0x10f   :  { %v5994_v39 = vld [vmem:[#allocation5 + $0x434] sm:$0xf0]  ;;  %v4418_v20 = vor.u32 %v5966_v12, %v4415_v14  ;;  %v5958_v25 = vld [vmem:[#allocation5 + $0x31c] sm:$0xf] }
 0x110   :  { %2040 = vmatpush.bf16.msra.mxu3 %v4830_v18  ;;  %v4765_v40 = vld [vmem:[#allocation5 + $0x618] sm:$0xf]  ;;  %2015 = vmatpush.bf16.msra.mxu1 %v4286_v33  ;;  %v4510_v50 = vor.u32 %v5994_v39, %v4509_v37  ;;  %v4927_v18 = vld [vmem:[#allocation5 + $0x778] sm:$0xf0] }
 0x111   :  { %v6058_v41 = vld [vmem:[#allocation5 + $0x634] sm:$0xf0]  ;;  %v4930_v26 = vor.u32 %v6094_v17, %v4927_v18  ;;  %v4383_v27 = vld [vmem:[#allocation5 + $0x338] sm:$0xf0] }
 0x112   :  { %2028 = vmatpush.bf16.msra.mxu2 %v4542_v34  ;;  %v4766_v56 = vor.u32 %v6058_v41, %v4765_v40  ;;  %2003 = vmatpush.bf16.msra.mxu0 %v3998_v45  ;;  %v6022_v28 = vld [vmem:[#allocation5 + $0x51c] sm:$0xf]  ;;  %v6584_v36 = vpop.f32.mrf.mxu0  ;;  %v4386_v37 = vor.u32 %v5958_v25, %v4383_v27 }
 0x113   :  { %v4639_v29 = vld [vmem:[#allocation5 + $0x538] sm:$0xf0] }
 0x114   :  { %2041 = vmatpush.bf16.msra.mxu3 %v4798_v38  ;;  %2016 = vmatpush.bf16.msra.mxu1 %v4254_v49  ;;  %v6086_v33 = vld [vmem:[#allocation5 + $0x71c] sm:$0xf]  ;;  %v4642_v38 = vor.u32 %v6022_v28, %v4639_v29  ;;  %v6586_v42 = vpop.f32.mrf.mxu1 }
 0x115   :  { %2004 = vmatmul.bf16.vlgmr.msra.gmra.mxu0 %v6540_v31  ;;  %v4895_v34 = vld [vmem:[#allocation5 + $0x738] sm:$0xf0] }
 0x116   :  { %2029 = vmatpush.bf16.msra.mxu2 %v4510_v50  ;;  %2048 = vmatpush.bf16.msrb.mxu0 %v4226_v57  ;;  %v5886_v39 = vld [vmem:[#allocation5 + $0xdc] sm:$0xf]  ;;  %v4898_v43 = vor.u32 %v6086_v33, %v4895_v34  ;;  %v5081_v34 = vld [vmem:[#allocation8 + $0xa8] sm:$0xf] }
 0x117   :  { %2017 = vmatmul.bf16.vlgmr.msra.gmra.mxu1 %v6542_v32  ;;  %v4095_v40 = vld [vmem:[#allocation5 + $0xf8] sm:$0xf0] }
 0x118   :  { %2042 = vmatpush.bf16.msra.mxu3 %v4766_v56  ;;  %2061 = vmatpush.bf16.msrb.mxu1 %v4482_v59  ;;  %v5950_v41 = vld [vmem:[#allocation5 + $0x2dc] sm:$0xf]  ;;  %v4098_v49 = vor.u32 %v5886_v39, %v4095_v40  ;;  %v5273_v40 = vld [vmem:[#allocation8 + $0x228] sm:$0xf] }
 0x119   :  { %2030 = vmatmul.bf16.vlgmr.msra.gmra.mxu2 %v6546_v53  ;;  %v4351_v44 = vld [vmem:[#allocation5 + $0x2f8] sm:$0xf0] }
 0x11a   :  { %2074 = vmatpush.bf16.msrb.mxu2 %v4738_v60  ;;  %2049 = vmatpush.bf16.msrb.mxu0 %v4194_v7  ;;  %v6014_v45 = vld [vmem:[#allocation5 + $0x4dc] sm:$0xf]  ;;  %v4354_v50 = vor.u32 %v5950_v41, %v4351_v44  ;;  %v1799_v2 = vpop.f32.mrf.mxu0 }
 0x11b   :  { %2043 = vmatmul.bf16.vlgmr.msra.gmra.mxu3 %v6548_v54  ;;  %v4607_v46 = vld [vmem:[#allocation5 + $0x4f8] sm:$0xf0] }
 0x11c   :  { %2087 = vmatpush.bf16.msrb.mxu3 %v4994_v0  ;;  %2062 = vmatpush.bf16.msrb.mxu1 %v4450_v8  ;;  %v6078_v47 = vld [vmem:[#allocation5 + $0x6dc] sm:$0xf]  ;;  %v4610_v51 = vor.u32 %v6014_v45, %v4607_v46  ;;  %v6588_v57 = vpop.f32.mrf.mxu2 }
 0x11d   :  { %v4863_v48 = vld [vmem:[#allocation5 + $0x6f8] sm:$0xf0] }
 0x11e   :  { %2075 = vmatpush.bf16.msrb.mxu2 %v4706_v9  ;;  %2050 = vmatpush.bf16.msrb.mxu0 %v4162_v19  ;;  %v5878_v52 = vld [vmem:[#allocation5 + $0x9c] sm:$0xf]  ;;  %v4866_v58 = vor.u32 %v6078_v47, %v4863_v48  ;;  %v6590_v62 = vpop.f32.mrf.mxu3  ;;  %v1812_v9 = vpop.f32.mrf.mxu1  ;;  %v5369_v47 = vld [vmem:[#allocation8 + $0x2e8] sm:$0xf] }
 0x11f   :  { %v4063_v55 = vld [vmem:[#allocation5 + $0xb8] sm:$0xf0]  ;;  %v6179_v9 = vld [vmem:[#allocation8 + $0x200] sm:$0xf0] }
 0x120   :  { %2088 = vmatpush.bf16.msrb.mxu3 %v4962_v13  ;;  %2063 = vmatpush.bf16.msrb.mxu1 %v4418_v20  ;;  %v5942_v56 = vld [vmem:[#allocation5 + $0x29c] sm:$0xf]  ;;  %v4066_v1 = vor.u32 %v5878_v52, %v4063_v55  ;;  %v6134_v52 = vld [vmem:[#allocation8 + $0x98] sm:$0xf0]  ;;  %v5165_v55 = vld [vmem:[#allocation8 + $0x150] sm:$0xf] }
 0x121   :  { %v4319_v59 = vld [vmem:[#allocation5 + $0x2b8] sm:$0xf0] }
 0x122   :  { %2076 = vmatpush.bf16.msrb.mxu2 %v4674_v21  ;;  %2051 = vmatpush.bf16.msrb.mxu0 %v4130_v35  ;;  %v6006_v60 = vld [vmem:[#allocation5 + $0x49c] sm:$0xf]  ;;  %v4322_v3 = vor.u32 %v5942_v56, %v4319_v59  ;;  %v6158_v56 = vld [vmem:[#allocation8 + $0x158] sm:$0xf0] }
 0x123   :  { %v4575_v61 = vld [vmem:[#allocation5 + $0x4b8] sm:$0xf0]  ;;  %v6182_v59 = vld [vmem:[#allocation8 + $0x218] sm:$0xf0] }
 0x124   :  { %2089 = vmatpush.bf16.msrb.mxu3 %v4930_v26  ;;  %2064 = vmatpush.bf16.msrb.mxu1 %v4386_v37  ;;  %v6070_v63 = vld [vmem:[#allocation5 + $0x69c] sm:$0xf]  ;;  %v4578_v4 = vor.u32 %v6006_v60, %v4575_v61  ;;  %v1825_v25 = vpop.f32.mrf.mxu2  ;;  %v5177_v37 = vld [vmem:[#allocation8 + $0x168] sm:$0xf] }
 0x125   :  { %v4831_v0 = vld [vmem:[#allocation5 + $0x6b8] sm:$0xf0] }
 0x126   :  { %2077 = vmatpush.bf16.msrb.mxu2 %v4642_v38  ;;  %2052 = vmatpush.bf16.msrb.mxu0 %v4098_v49  ;;  %v5870_v5 = vld [vmem:[#allocation5 + $0x5c] sm:$0xf]  ;;  %v4834_v10 = vor.u32 %v6070_v63, %v4831_v0  ;;  %v1838_v33 = vpop.f32.mrf.mxu3  ;;  %v5357_v63 = vld [vmem:[#allocation8 + $0x2d0] sm:$0xf]  ;;  %v6206_v0 = vld [vmem:[#allocation8 + $0x2d8] sm:$0xf0] }
 0x127   :  { %v4031_v7 = vld [vmem:[#allocation5 + $0x78] sm:$0xf0]  ;;  %v5129_v33 = vld [vmem:[#allocation8 + $0x108] sm:$0xf] }
 0x128   :  { %2090 = vmatpush.bf16.msrb.mxu3 %v4898_v43  ;;  %2065 = vmatpush.bf16.msrb.mxu1 %v4354_v50  ;;  %v5934_v8 = vld [vmem:[#allocation5 + $0x25c] sm:$0xf]  ;;  %v4034_v16 = vor.u32 %v5870_v5, %v4031_v7  ;;  %v5153_v5 = vld [vmem:[#allocation8 + $0x138] sm:$0xf]  ;;  %v6155_v7 = vld [vmem:[#allocation8 + $0x140] sm:$0xf0] }
 0x129   :  { %v4287_v11 = vld [vmem:[#allocation5 + $0x278] sm:$0xf0] }
 0x12a   :  { %2078 = vmatpush.bf16.msrb.mxu2 %v4610_v51  ;;  %v5998_v12 = vld [vmem:[#allocation5 + $0x45c] sm:$0xf]  ;;  %2053 = vmatpush.bf16.msrb.mxu0 %v4066_v1  ;;  %v4290_v19 = vor.u32 %v5934_v8, %v4287_v11  ;;  %v5069_v51 = vld [vmem:[#allocation8 + $0x90] sm:$0xf]  ;;  %v5166_v1 = vor.u32 %v6158_v56, %v5165_v55  ;;  %v5249_v8 = vld [vmem:[#allocation8 + $0x1f8] sm:$0xf] }
 0x12b   :  { %v4543_v13 = vld [vmem:[#allocation5 + $0x478] sm:$0xf0]  ;;  %v5070_v61 = vor.u32 %v6134_v52, %v5069_v51  ;;  %v6146_v51 = vld [vmem:[#allocation8 + $0xf8] sm:$0xf0]  ;;  %v5213_v52 = vld [vmem:[#allocation8 + $0x1b0] sm:$0xf] }
 0x12c   :  { %2091 = vmatpush.bf16.msrb.mxu3 %v4866_v58  ;;  %v6062_v14 = vld [vmem:[#allocation5 + $0x65c] sm:$0xf]  ;;  %2066 = vmatpush.bf16.msrb.mxu1 %v4322_v3  ;;  %v4546_v20 = vor.u32 %v5998_v12, %v4543_v13  ;;  %v5261_v58 = vld [vmem:[#allocation8 + $0x210] sm:$0xf]  ;;  %v5057_v3 = vld [vmem:[#allocation8 + $0x78] sm:$0xf] }
 0x12d   :  { %v4799_v15 = vld [vmem:[#allocation5 + $0x678] sm:$0xf0]  ;;  %v5262_v2 = vor.u32 %v6182_v59, %v5261_v58  ;;  %v5345_v12 = vld [vmem:[#allocation8 + $0x2b8] sm:$0xf]  ;;  %v6203_v13 = vld [vmem:[#allocation8 + $0x2c0] sm:$0xf0] }
 0x12e   :  { %v5862_v17 = vld [vmem:[#allocation5 + $0x1c] sm:$0xf]  ;;  %2079 = vmatpush.bf16.msrb.mxu2 %v4578_v4  ;;  %v4802_v26 = vor.u32 %v6062_v14, %v4799_v15  ;;  %2054 = vmatpush.bf16.msrb.mxu0 %v4034_v16  ;;  %v6131_v4 = vld [vmem:[#allocation8 + $0x80] sm:$0xf0]  ;;  %v5154_v14 = vor.u32 %v6155_v7, %v5153_v5  ;;  %v5250_v15 = vor.u32 %v6179_v9, %v5249_v8  ;;  %v6128_v16 = vld [vmem:[#allocation8 + $0x68] sm:$0xf0] }
 0x12f   :  { %v3999_v18 = vld [vmem:[#allocation5 + $0x38] sm:$0xf0]  ;;  %v5058_v11 = vor.u32 %v6131_v4, %v5057_v3  ;;  %v6170_v55 = vld [vmem:[#allocation8 + $0x1b8] sm:$0xf0]  ;;  %v5009_v3 = vld [vmem:[#allocation8 + $0x18] sm:$0xf] }
 0x130   :  { %v5926_v21 = vld [vmem:[#allocation5 + $0x21c] sm:$0xf]  ;;  %2092 = vmatpush.bf16.msrb.mxu3 %v4834_v10  ;;  %v4002_v38 = vor.u32 %v5862_v17, %v3999_v18  ;;  %2067 = vmatpush.bf16.msrb.mxu1 %v4290_v19  ;;  %v5358_v10 = vor.u32 %v6206_v0, %v5357_v63  ;;  %v6152_v17 = vld [vmem:[#allocation8 + $0x128] sm:$0xf0]  ;;  %v5237_v18 = vld [vmem:[#allocation8 + $0x1e0] sm:$0xf] }
 0x131   :  { %v4255_v22 = vld [vmem:[#allocation5 + $0x238] sm:$0xf0]  ;;  %v6176_v19 = vld [vmem:[#allocation8 + $0x1e8] sm:$0xf0]  ;;  %v6194_v63 = vld [vmem:[#allocation8 + $0x278] sm:$0xf0] }
 0x132   :  { %v5990_v23 = vld [vmem:[#allocation5 + $0x41c] sm:$0xf]  ;;  %2080 = vmatpush.bf16.msrb.mxu2 %v4546_v20  ;;  %v4258_v43 = vor.u32 %v5926_v21, %v4255_v22  ;;  %2055 = vmatpush.bf16.msrb.mxu0 %v4002_v38  ;;  %v5346_v20 = vor.u32 %v6203_v13, %v5345_v12  ;;  %v5333_v22 = vld [vmem:[#allocation8 + $0x2a0] sm:$0xf]  ;;  %v1849_v25 = vpop.f32.mrf.mxu0  ;;  %v6119_v4 = vld [vmem:[#allocation8 + $0x20] sm:$0xf0] }
 0x133   :  { %v4511_v27 = vld [vmem:[#allocation5 + $0x438] sm:$0xf0]  ;;  %v5105_v5 = vld [vmem:[#allocation8 + $0xd8] sm:$0xf]  ;;  %v6143_v8 = vld [vmem:[#allocation8 + $0xe0] sm:$0xf0]  ;;  %v5010_v13 = vor.u32 %v6119_v4, %v5009_v3 }
 0x134   :  { %v6054_v28 = vld [vmem:[#allocation5 + $0x61c] sm:$0xf]  ;;  %v4514_v44 = vor.u32 %v5990_v23, %v4511_v27  ;;  %2093 = vmatpush.bf16.msrb.mxu3 %v4802_v26  ;;  %2068 = vmatpush.bf16.msrb.mxu1 %v4258_v43  ;;  %v6200_v23 = vld [vmem:[#allocation8 + $0x2a8] sm:$0xf0]  ;;  %v5238_v27 = vor.u32 %v6176_v19, %v5237_v18  ;;  %v5321_v43 = vld [vmem:[#allocation8 + $0x288] sm:$0xf] }
 0x135   :  { %v4767_v29 = vld [vmem:[#allocation5 + $0x638] sm:$0xf0]  ;;  %2056 = vmatmul.bf16.vlgmr.msrb.gmra.mxu0 %v6540_v31  ;;  %v5045_v31 = vld [vmem:[#allocation8 + $0x60] sm:$0xf]  ;;  %v5201_v9 = vld [vmem:[#allocation8 + $0x198] sm:$0xf] }
 0x136   :  { %v6137_v35 = vld [vmem:[#allocation8 + $0xb0] sm:$0xf0]  ;;  %v4770_v45 = vor.u32 %v6054_v28, %v4767_v29  ;;  %2081 = vmatpush.bf16.msrb.mxu2 %v4514_v44  ;;  %v5046_v21 = vor.u32 %v6128_v16, %v5045_v31  ;;  %v5033_v28 = vld [vmem:[#allocation8 + $0x48] sm:$0xf]  ;;  %v4997_v31 = vld [vmem:[#allocation8] sm:$0xf]  ;;  %v5106_v16 = vor.u32 %v6143_v8, %v5105_v5 }
 0x137   :  { %v6161_v39 = vld [vmem:[#allocation8 + $0x170] sm:$0xf0]  ;;  %v5082_v46 = vor.u32 %v6137_v35, %v5081_v34  ;;  %2069 = vmatmul.bf16.vlgmr.msrb.gmra.mxu1 %v6542_v32  ;;  %v5141_v32 = vld [vmem:[#allocation8 + $0x120] sm:$0xf]  ;;  %v1862_v34 = vpop.f32.mrf.mxu1  ;;  %v6140_v19 = vld [vmem:[#allocation8 + $0xc8] sm:$0xf0] }
 0x138   :  { %v6185_v41 = vld [vmem:[#allocation8 + $0x230] sm:$0xf0]  ;;  %v5178_v49 = vor.u32 %v6161_v39, %v5177_v37  ;;  %2094 = vmatpush.bf16.msrb.mxu3 %v4770_v45  ;;  %v5142_v26 = vor.u32 %v6152_v17, %v5141_v32  ;;  %v5225_v37 = vld [vmem:[#allocation8 + $0x1c8] sm:$0xf]  ;;  %v6116_v17 = vld [vmem:[#allocation8 + $0x8] sm:$0xf0] }
 0x139   :  { %v6209_v48 = vld [vmem:[#allocation8 + $0x2f0] sm:$0xf0]  ;;  %v5274_v50 = vor.u32 %v6185_v41, %v5273_v40  ;;  %3404 = vmatpush.bf16.msra.mxu0 %v5082_v46  ;;  %2082 = vmatmul.bf16.vlgmr.msrb.gmra.mxu2 %v6546_v53  ;;  %v376_v53 = vperm.slane %v6568_v6, 2  ;;  %v5334_v40 = vor.u32 %v6200_v23, %v5333_v22  ;;  %v5093_v18 = vld [vmem:[#allocation8 + $0xc0] sm:$0xf] }
 0x13a   :  { %v5370_v60 = vor.u32 %v6209_v48, %v5369_v47  ;;  %3417 = vmatpush.bf16.msra.mxu1 %v5178_v49  ;;  %v6125_v29 = vld [vmem:[#allocation8 + $0x50] sm:$0xf0]  ;;  %v5021_v47 = vld [vmem:[#allocation8 + $0x30] sm:$0xf]  ;;  %v6122_v48 = vld [vmem:[#allocation8 + $0x38] sm:$0xf0]  ;;  %v1851_v0 = vpop.f32.mrf.mxu0 }
 0x13b   :  { %3430 = vmatpush.bf16.msra.mxu2 %v5274_v50  ;;  %2095 = vmatmul.bf16.vlgmr.msrb.gmra.mxu3 %v6548_v54  ;;  %v377_v54 = vperm.slane %v6568_v6, 3  ;;  %v6149_v35 = vld [vmem:[#allocation8 + $0x110] sm:$0xf0]  ;;  %v1798_v6 = vadd.f32 %v6584_v36, %v376_v53  ;;  %v5034_v41 = vor.u32 %v6125_v29, %v5033_v28  ;;  %v5117_v49 = vld [vmem:[#allocation8 + $0xf0] sm:$0xf]  ;;  %v4998_v29 = vor.u32 %v6116_v17, %v4997_v31 }
 0x13c   :  { %3443 = vmatpush.bf16.msra.mxu3 %v5370_v60  ;;  %v6173_v38 = vld [vmem:[#allocation8 + $0x1d0] sm:$0xf0]  ;;  %v5130_v45 = vor.u32 %v6149_v35, %v5129_v33  ;;  %v1875_v50 = vpop.f32.mrf.mxu2  ;;  %v5022_v60 = vor.u32 %v6122_v48, %v5021_v47  ;;  %v5657_v33 = vld [vmem:[#allocation8 + $0x528] sm:$0xf]  ;;  %v2100_v35 = vmax.f32 %v6574_v24, 0.0 }
 0x13d   :  { %3405 = vmatpush.bf16.msra.mxu0 %v5070_v61  ;;  %v1850_v39 = vadd.f32 %v1849_v25, %v377_v54  ;;  %v6197_v44 = vld [vmem:[#allocation8 + $0x290] sm:$0xf0]  ;;  %v5226_v46 = vor.u32 %v6173_v38, %v5225_v37  ;;  %v1811_v36 = vadd.f32 %v6586_v42, %v1798_v6  ;;  %v5309_v61 = vld [vmem:[#allocation8 + $0x270] sm:$0xf]  ;;  %v5189_v54 = vld [vmem:[#allocation8 + $0x180] sm:$0xf]  ;;  %v5094_v37 = vor.u32 %v6140_v19, %v5093_v18 }
 0x13e   :  { %3418 = vmatpush.bf16.msra.mxu1 %v5166_v1  ;;  %v1888_v56 = vpop.f32.mrf.mxu3  ;;  %v5322_v59 = vor.u32 %v6197_v44, %v5321_v43  ;;  %v5118_v1 = vor.u32 %v6146_v51, %v5117_v49  ;;  %v5310_v12 = vor.u32 %v6194_v63, %v5309_v61  ;;  %v6233_v25 = vld [vmem:[#allocation8 + $0x3b0] sm:$0xf0]  ;;  %v5285_v6 = vld [vmem:[#allocation8 + $0x240] sm:$0xf]  ;;  %v5453_v43 = vld [vmem:[#allocation8 + $0x390] sm:$0xf] }
 0x13f   :  { %3431 = vmatpush.bf16.msra.mxu2 %v5262_v2  ;;  %v1863_v58 = vadd.f32 %v1862_v34, %v1850_v39  ;;  %v5214_v2 = vor.u32 %v6170_v55, %v5213_v52  ;;  %v1864_v7 = vpop.f32.mrf.mxu1  ;;  %v1824_v42 = vadd.f32 %v6588_v57, %v1811_v36  ;;  %v6281_v34 = vld [vmem:[#allocation8 + $0x530] sm:$0xf0]  ;;  %v6188_v39 = vld [vmem:[#allocation8 + $0x248] sm:$0xf0]  ;;  %v6230_v44 = vld [vmem:[#allocation8 + $0x398] sm:$0xf0]  ;;  %v6604_v52 = vpack.c.bf16 %v2100_v35, %v2100_v35 }
 0x140   :  { %3444 = vmatpush.bf16.msra.mxu3 %v5358_v10  ;;  %v6167_v10 = vld [vmem:[#allocation8 + $0x1a0] sm:$0xf0]  ;;  %v5549_v47 = vld [vmem:[#allocation8 + $0x450] sm:$0xf]  ;;  %v6254_v48 = vld [vmem:[#allocation8 + $0x458] sm:$0xf0]  ;;  %v5658_v49 = vor.u32 %v6281_v34, %v5657_v33  ;;  %v5286_v24 = vor.u32 %v6188_v39, %v5285_v6 }
 0x141   :  { %3406 = vmatpush.bf16.msra.mxu0 %v5058_v11  ;;  %v1876_v11 = vadd.f32 %v1875_v50, %v1863_v58  ;;  %v5202_v32 = vor.u32 %v6167_v10, %v5201_v9  ;;  %v1837_v22 = vadd.f32 %v6590_v62, %v1824_v42  ;;  %v2101_v62 = vmax.f32 %v6578_v30, 0.0  ;;  %v5645_v50 = vld [vmem:[#allocation8 + $0x510] sm:$0xf]  ;;  %v6278_v51 = vld [vmem:[#allocation8 + $0x518] sm:$0xf0] }
 0x142   :  { %3419 = vmatpush.bf16.msra.mxu1 %v5154_v14  ;;  %v5297_v14 = vld [vmem:[#allocation8 + $0x258] sm:$0xf]  ;;  %v5454_v30 = vor.u32 %v6230_v44, %v5453_v43  ;;  %v6251_v63 = vld [vmem:[#allocation8 + $0x440] sm:$0xf0]  ;;  %v5646_v0 = vor.u32 %v6278_v51, %v5645_v50  ;;  %v5429_v5 = vld [vmem:[#allocation8 + $0x360] sm:$0xf] }
 0x143   :  { %3432 = vmatpush.bf16.msra.mxu2 %v5250_v15  ;;  %v6191_v15 = vld [vmem:[#allocation8 + $0x260] sm:$0xf0]  ;;  %v1889_v23 = vadd.f32 %v1888_v56, %v1876_v11  ;;  %v6606_v55 = vpack.c.bf16 %v2101_v62, %v2101_v62  ;;  %v5550_v56 = vor.u32 %v6254_v48, %v5549_v47  ;;  %v5441_v36 = vld [vmem:[#allocation8 + $0x378] sm:$0xf]  ;;  %v6224_v7 = vld [vmem:[#allocation8 + $0x368] sm:$0xf0] }
 0x144   :  { %3445 = vmatpush.bf16.msra.mxu3 %v5346_v20  ;;  %v1877_v53 = vpop.f32.mrf.mxu2  ;;  %v6164_v20 = vld [vmem:[#allocation8 + $0x188] sm:$0xf0]  ;;  %v5298_v28 = vor.u32 %v6191_v15, %v5297_v14  ;;  %v5537_v61 = vld [vmem:[#allocation8 + $0x438] sm:$0xf]  ;;  %v5525_v8 = vld [vmem:[#allocation8 + $0x420] sm:$0xf]  ;;  %v5430_v14 = vor.u32 %v6224_v7, %v5429_v5 }
 0x145   :  { %3407 = vmatpush.bf16.msra.mxu0 %v5046_v21  ;;  %v5465_v21 = vld [vmem:[#allocation8 + $0x3a8] sm:$0xf]  ;;  %v5190_v38 = vor.u32 %v6164_v20, %v5189_v54  ;;  %v5538_v4 = vor.u32 %v6251_v63, %v5537_v61  ;;  %v6248_v9 = vld [vmem:[#allocation8 + $0x428] sm:$0xf0]  ;;  %v6616_v10 = vld [vmem:[#allocation7] sm:$0xff] }
 0x146   :  { %3420 = vmatpush.bf16.msra.mxu1 %v5142_v26  ;;  %v1890_v57 = vpop.f32.mrf.mxu3  ;;  %v5561_v26 = vld [vmem:[#allocation8 + $0x468] sm:$0xf]  ;;  %v378_v42 = vperm.slane %v6616_v10, 4  ;;  %v5526_v15 = vor.u32 %v6248_v9, %v5525_v8  ;;  %v6245_v18 = vld [vmem:[#allocation8 + $0x410] sm:$0xf0] }
 0x147   :  { %3433 = vmatpush.bf16.msra.mxu2 %v5238_v27  ;;  %v6257_v27 = vld [vmem:[#allocation8 + $0x470] sm:$0xf0]  ;;  %v5417_v31 = vld [vmem:[#allocation8 + $0x348] sm:$0xf]  ;;  %v5597_v35 = vld [vmem:[#allocation8 + $0x4b0] sm:$0xf] }
 0x148   :  { %3446 = vmatpush.bf16.msra.mxu3 %v5334_v40  ;;  %v5466_v40 = vor.u32 %v6233_v25, %v5465_v21  ;;  %v5513_v17 = vld [vmem:[#allocation8 + $0x408] sm:$0xf]  ;;  %v6269_v21 = vld [vmem:[#allocation8 + $0x4d0] sm:$0xf0]  ;;  %v5405_v25 = vld [vmem:[#allocation8 + $0x330] sm:$0xf] }
 0x149   :  { %3408 = vmatpush.bf16.msra.mxu0 %v5034_v41  ;;  %v5562_v41 = vor.u32 %v6257_v27, %v5561_v26  ;;  %v5609_v20 = vld [vmem:[#allocation8 + $0x4c8] sm:$0xf]  ;;  %v6218_v26 = vld [vmem:[#allocation8 + $0x338] sm:$0xf0]  ;;  %v5501_v27 = vld [vmem:[#allocation8 + $0x3f0] sm:$0xf] }
 0x14a   :  { %3421 = vmatpush.bf16.msra.mxu1 %v5130_v45  ;;  %v2102_v45 = vmax.f32 %v1837_v22, 0.0  ;;  %v5610_v33 = vor.u32 %v6269_v21, %v5609_v20  ;;  %v5406_v6 = vor.u32 %v6218_v26, %v5405_v25  ;;  %v5393_v62 = vld [vmem:[#allocation8 + $0x318] sm:$0xf]  ;;  %v6239_v44 = vld [vmem:[#allocation8 + $0x3e0] sm:$0xf0] }
 0x14b   :  { %3434 = vmatpush.bf16.msra.mxu2 %v5226_v46  ;;  %v2103_v46 = vmax.f32 %v1889_v23, 0.0  ;;  %v5514_v23 = vor.u32 %v6245_v18, %v5513_v17  ;;  %v5489_v43 = vld [vmem:[#allocation8 + $0x3d8] sm:$0xf]  ;;  %v6263_v48 = vld [vmem:[#allocation8 + $0x4a0] sm:$0xf0] }
 0x14c   :  { %3447 = vmatpush.bf16.msra.mxu3 %v5322_v59  ;;  %v6608_v58 = vpack.c.bf16 %v2102_v45, %v2102_v45  ;;  %v5585_v47 = vld [vmem:[#allocation8 + $0x498] sm:$0xf]  ;;  %v5490_v51 = vor.u32 %v6239_v44, %v5489_v43  ;;  %v5573_v9 = vld [vmem:[#allocation8 + $0x480] sm:$0xf]  ;;  %v6302_v17 = vld [vmem:[#allocation8 + $0x5d8] sm:$0xf0] }
 0x14d   :  { %3409 = vmatpush.bf16.msra.mxu0 %v5022_v60  ;;  %v6610_v59 = vpack.c.bf16 %v2103_v46, %v2103_v46  ;;  %v6227_v60 = vld [vmem:[#allocation8 + $0x380] sm:$0xf0]  ;;  %v5586_v63 = vor.u32 %v6263_v48, %v5585_v47  ;;  %v5071_v18 = vld [vmem:[#allocation8 + $0x9c] sm:$0xf0]  ;;  %v6296_v44 = vld [vmem:[#allocation8 + $0x5a8] sm:$0xf0] }
 0x14e   :  { %3422 = vmatpush.bf16.msra.mxu1 %v5118_v1  ;;  %v5633_v1 = vld [vmem:[#allocation8 + $0x4f8] sm:$0xf]  ;;  %v5442_v3 = vor.u32 %v6227_v60, %v5441_v36  ;;  %v6236_v36 = vld [vmem:[#allocation8 + $0x3c8] sm:$0xf0]  ;;  %v5717_v43 = vld [vmem:[#allocation8 + $0x5a0] sm:$0xf] }
 0x14f   :  { %3435 = vmatpush.bf16.msra.mxu2 %v5214_v2  ;;  %v6275_v2 = vld [vmem:[#allocation8 + $0x500] sm:$0xf0]  ;;  %v6136_v60 = vld [vmem:[#allocation8 + $0xac] sm:$0xf]  ;;  %v5143_v47 = vld [vmem:[#allocation8 + $0x12c] sm:$0xf0]  ;;  %v5718_v48 = vor.u32 %v6296_v44, %v5717_v43 }
 0x150   :  { %3448 = vmatpush.bf16.msra.mxu3 %v5310_v12  ;;  %v5634_v11 = vor.u32 %v6275_v2, %v5633_v1  ;;  %v5621_v12 = vld [vmem:[#allocation8 + $0x4e0] sm:$0xf]  ;;  %v6305_v1 = vld [vmem:[#allocation8 + $0x5f0] sm:$0xf0]  ;;  %v5083_v2 = vld [vmem:[#allocation8 + $0xb4] sm:$0xf0] }
 0x151   :  { %3410 = vmatpush.bf16.msra.mxu0 %v5010_v13  ;;  %v6272_v13 = vld [vmem:[#allocation8 + $0x4e8] sm:$0xf0]  ;;  %v6166_v43 = vld [vmem:[#allocation8 + $0x19c] sm:$0xf]  ;;  %v5203_v44 = vld [vmem:[#allocation8 + $0x1a4] sm:$0xf0] }
 0x152   :  { %3423 = vmatpush.bf16.msra.mxu1 %v5106_v16  ;;  %v1901_v16 = vpop.f32.mrf.mxu0  ;;  %v5622_v54 = vor.u32 %v6272_v13, %v5621_v12  ;;  %v6184_v13 = vld [vmem:[#allocation8 + $0x22c] sm:$0xf] }
 0x153   :  { %3436 = vmatpush.bf16.msra.mxu2 %v5202_v32  ;;  %v6221_v32 = vld [vmem:[#allocation8 + $0x350] sm:$0xf0]  ;;  %v1902_v19 = vadd.f32 %v1901_v16, %v378_v42  ;;  %v6260_v42 = vld [vmem:[#allocation8 + $0x488] sm:$0xf0] }
 0x154   :  { %3449 = vmatpush.bf16.msra.mxu3 %v5298_v28  ;;  %v1914_v53 = vpop.f32.mrf.mxu1  ;;  %v5418_v22 = vor.u32 %v6221_v32, %v5417_v31  ;;  %v6242_v28 = vld [vmem:[#allocation8 + $0x3f8] sm:$0xf0]  ;;  %v6133_v16 = vld [vmem:[#allocation8 + $0x94] sm:$0xf]  ;;  %v5741_v32 = vld [vmem:[#allocation8 + $0x5d0] sm:$0xf] }
 0x155   :  { %3411 = vmatpush.bf16.msra.mxu0 %v4998_v29  ;;  %v1915_v57 = vadd.f32 %v1914_v53, %v1902_v19  ;;  %v5502_v39 = vor.u32 %v6242_v28, %v5501_v27  ;;  %v6157_v19 = vld [vmem:[#allocation8 + $0x154] sm:$0xf]  ;;  %v5167_v53 = vld [vmem:[#allocation8 + $0x15c] sm:$0xf0]  ;;  %v5742_v20 = vor.u32 %v6302_v17, %v5741_v32  ;;  %v5074_v25 = vor.u32 %v6133_v16, %v5071_v18  ;;  %v6130_v27 = vld [vmem:[#allocation8 + $0x7c] sm:$0xf] }
 0x156   :  { %3424 = vmatpush.bf16.msra.mxu1 %v5094_v37  ;;  %v6266_v37 = vld [vmem:[#allocation8 + $0x4b8] sm:$0xf0]  ;;  %v5170_v26 = vor.u32 %v6157_v19, %v5167_v53  ;;  %v5729_v28 = vld [vmem:[#allocation8 + $0x5b8] sm:$0xf]  ;;  %v6145_v16 = vld [vmem:[#allocation8 + $0xf4] sm:$0xf] }
 0x157   :  { %3437 = vmatpush.bf16.msra.mxu2 %v5190_v38  ;;  %v5598_v46 = vor.u32 %v6266_v37, %v5597_v35  ;;  %v5155_v35 = vld [vmem:[#allocation8 + $0x144] sm:$0xf0]  ;;  %v5119_v32 = vld [vmem:[#allocation8 + $0xfc] sm:$0xf0] }
 0x158   :  { %3412 = vmatmul.bf16.vlgmr.msra.gmra.mxu0 %v6604_v52  ;;  %3450 = vmatpush.bf16.msra.mxu3 %v5286_v24  ;;  %v5381_v24 = vld [vmem:[#allocation8 + $0x300] sm:$0xf] }
 0x159   :  { %3456 = vmatpush.bf16.msrb.mxu0 %v5466_v40  ;;  %3425 = vmatmul.bf16.vlgmr.msra.gmra.mxu1 %v6606_v55 }
 0x15a   :  { %3469 = vmatpush.bf16.msrb.mxu1 %v5562_v41  ;;  %3438 = vmatmul.bf16.vlgmr.msra.gmra.mxu2 %v6608_v58  ;;  %v1903_v40 = vpop.f32.mrf.mxu0  ;;  %v6215_v41 = vld [vmem:[#allocation8 + $0x320] sm:$0xf0] }
 0x15b   :  { %3482 = vmatpush.bf16.msrb.mxu2 %v5658_v49  ;;  %3451 = vmatmul.bf16.vlgmr.msra.gmra.mxu3 %v6610_v59  ;;  %v5394_v50 = vor.u32 %v6215_v41, %v5393_v62  ;;  %v6127_v41 = vld [vmem:[#allocation8 + $0x64] sm:$0xf] }
 0x15c   :  { %v1927_v29 = vpop.f32.mrf.mxu2  ;;  %v1916_v45 = vpop.f32.mrf.mxu1 }
 0x15d   :  { %3457 = vmatpush.bf16.msrb.mxu0 %v5454_v30  ;;  %v1928_v38 = vadd.f32 %v1927_v29, %v1915_v57  ;;  %v6212_v30 = vld [vmem:[#allocation8 + $0x308] sm:$0xf0]  ;;  %v6299_v29 = vld [vmem:[#allocation8 + $0x5c0] sm:$0xf0]  ;;  %v5047_v45 = vld [vmem:[#allocation8 + $0x6c] sm:$0xf0] }
 0x15e   :  { %3470 = vmatpush.bf16.msrb.mxu1 %v5550_v56  ;;  %v1940_v34 = vpop.f32.mrf.mxu3  ;;  %v5477_v56 = vld [vmem:[#allocation8 + $0x3c0] sm:$0xf]  ;;  %v5730_v37 = vor.u32 %v6299_v29, %v5729_v28  ;;  %v5011_v29 = vld [vmem:[#allocation8 + $0x24] sm:$0xf0] }
 0x15f   :  { %3483 = vmatpush.bf16.msrb.mxu2 %v5646_v0  ;;  %v1941_v49 = vadd.f32 %v1940_v34, %v1928_v38  ;;  %v5753_v0 = vld [vmem:[#allocation8 + $0x5e8] sm:$0xf]  ;;  %v5478_v12 = vor.u32 %v6236_v36, %v5477_v56  ;;  %v6154_v34 = vld [vmem:[#allocation8 + $0x13c] sm:$0xf]  ;;  %v6124_v36 = vld [vmem:[#allocation8 + $0x4c] sm:$0xf] }
 0x160   :  { %v5754_v7 = vor.u32 %v6305_v1, %v5753_v0  ;;  %v5158_v40 = vor.u32 %v6154_v34, %v5155_v35  ;;  %v5035_v0 = vld [vmem:[#allocation8 + $0x54] sm:$0xf0]  ;;  %v6148_v1 = vld [vmem:[#allocation8 + $0x10c] sm:$0xf]  ;;  %v5107_v34 = vld [vmem:[#allocation8 + $0xe4] sm:$0xf0] }
 0x161   :  { %3458 = vmatpush.bf16.msrb.mxu0 %v5442_v3  ;;  %v6160_v3 = vld [vmem:[#allocation8 + $0x16c] sm:$0xf]  ;;  %v2104_v8 = vmax.f32 %v1941_v49, 0.0  ;;  %v379_v49 = vperm.slane %v6616_v10, 5 }
 0x162   :  { %3471 = vmatpush.bf16.msrb.mxu1 %v5538_v4  ;;  %v5179_v4 = vld [vmem:[#allocation8 + $0x174] sm:$0xf0]  ;;  %3495 = vmatpush.bf16.msrb.mxu3 %v5754_v7 }
 0x163   :  { %3484 = vmatpush.bf16.msrb.mxu2 %v5634_v11  ;;  %v5382_v11 = vor.u32 %v6212_v30, %v5381_v24  ;;  %v5182_v31 = vor.u32 %v6160_v3, %v5179_v4  ;;  %v6619_v21 = vpack.c.bf16 %v2104_v8, %v2104_v8  ;;  %v5050_v30 = vor.u32 %v6127_v41, %v5047_v45  ;;  %v6172_v8 = vld [vmem:[#allocation8 + $0x1cc] sm:$0xf]  ;;  %v6139_v41 = vld [vmem:[#allocation8 + $0xc4] sm:$0xf] }
 0x164   :  { %v1929_v61 = vpop.f32.mrf.mxu2 }
 0x165   :  { %3459 = vmatpush.bf16.msrb.mxu0 %v5430_v14  ;;  %v5275_v14 = vld [vmem:[#allocation8 + $0x234] sm:$0xf0]  ;;  %v6293_v61 = vld [vmem:[#allocation8 + $0x590] sm:$0xf0] }
 0x166   :  { %3472 = vmatpush.bf16.msrb.mxu1 %v5526_v15  ;;  %v1942_v5 = vpop.f32.mrf.mxu3  ;;  %v5086_v15 = vor.u32 %v6136_v60, %v5083_v2  ;;  %v5278_v57 = vor.u32 %v6184_v13, %v5275_v14  ;;  %3496 = vmatpush.bf16.msrb.mxu3 %v5742_v20  ;;  %v5705_v60 = vld [vmem:[#allocation8 + $0x588] sm:$0xf]  ;;  %v5131_v2 = vld [vmem:[#allocation8 + $0x114] sm:$0xf0]  ;;  %v6121_v13 = vld [vmem:[#allocation8 + $0x34] sm:$0xf] }
 0x167   :  { %3485 = vmatpush.bf16.msrb.mxu2 %v5622_v54  ;;  %v5574_v54 = vor.u32 %v6260_v42, %v5573_v9  ;;  %v5706_v3 = vor.u32 %v6293_v61, %v5705_v60  ;;  %v5227_v9 = vld [vmem:[#allocation8 + $0x1d4] sm:$0xf0]  ;;  %v5693_v14 = vld [vmem:[#allocation8 + $0x570] sm:$0xf]  ;;  %v6169_v20 = vld [vmem:[#allocation8 + $0x1b4] sm:$0xf]  ;;  %v5206_v60 = vor.u32 %v6166_v43, %v5203_v44 }
 0x168   :  { %v5230_v19 = vor.u32 %v6172_v8, %v5227_v9  ;;  %v6244_v43 = vld [vmem:[#allocation8 + $0x40c] sm:$0xf]  ;;  %v5515_v44 = vld [vmem:[#allocation8 + $0x414] sm:$0xf0] }
 0x169   :  { %3460 = vmatpush.bf16.msrb.mxu0 %v5418_v22  ;;  %v6181_v22 = vld [vmem:[#allocation8 + $0x214] sm:$0xf] }
 0x16a   :  { %3473 = vmatpush.bf16.msrb.mxu1 %v5514_v23  ;;  %v5263_v23 = vld [vmem:[#allocation8 + $0x21c] sm:$0xf0]  ;;  %3497 = vmatpush.bf16.msrb.mxu3 %v5730_v37 }
 0x16b   :  { %3486 = vmatpush.bf16.msrb.mxu2 %v5610_v33  ;;  %v5059_v33 = vld [vmem:[#allocation8 + $0x84] sm:$0xf0]  ;;  %v5266_v38 = vor.u32 %v6181_v22, %v5263_v23  ;;  %v5122_v23 = vor.u32 %v6145_v16, %v5119_v32 }
 0x16c   :  { %v5062_v62 = vor.u32 %v6130_v27, %v5059_v33  ;;  %v6287_v27 = vld [vmem:[#allocation8 + $0x560] sm:$0xf0]  ;;  %v6142_v33 = vld [vmem:[#allocation8 + $0xdc] sm:$0xf] }
 0x16d   :  { %3461 = vmatpush.bf16.msrb.mxu0 %v5406_v6  ;;  %v6178_v6 = vld [vmem:[#allocation8 + $0x1fc] sm:$0xf] }
 0x16e   :  { %3474 = vmatpush.bf16.msrb.mxu1 %v5502_v39  ;;  %v5251_v39 = vld [vmem:[#allocation8 + $0x204] sm:$0xf0]  ;;  %3498 = vmatpush.bf16.msrb.mxu3 %v5718_v48  ;;  %v6232_v48 = vld [vmem:[#allocation8 + $0x3ac] sm:$0xf] }
 0x16f   :  { %3487 = vmatpush.bf16.msrb.mxu2 %v5598_v46  ;;  %v6151_v46 = vld [vmem:[#allocation8 + $0x124] sm:$0xf]  ;;  %v5254_v24 = vor.u32 %v6178_v6, %v5251_v39 }
 0x170   :  { %v5146_v56 = vor.u32 %v6151_v46, %v5143_v47  ;;  %v5110_v46 = vor.u32 %v6142_v33, %v5107_v34  ;;  %v5095_v47 = vld [vmem:[#allocation8 + $0xcc] sm:$0xf0]  ;;  %v6247_v33 = vld [vmem:[#allocation8 + $0x424] sm:$0xf] }
 0x171   :  { %3462 = vmatpush.bf16.msrb.mxu0 %v5394_v50  ;;  %v6175_v50 = vld [vmem:[#allocation8 + $0x1e4] sm:$0xf]  ;;  %v5527_v34 = vld [vmem:[#allocation8 + $0x42c] sm:$0xf0] }
 0x172   :  { %3475 = vmatpush.bf16.msrb.mxu1 %v5490_v51  ;;  %v5239_v51 = vld [vmem:[#allocation8 + $0x1ec] sm:$0xf0]  ;;  %3499 = vmatpush.bf16.msrb.mxu3 %v5706_v3 }
 0x173   :  { %3488 = vmatpush.bf16.msrb.mxu2 %v5586_v63  ;;  %v1953_v63 = vpop.f32.mrf.mxu0  ;;  %v5242_v7 = vor.u32 %v6175_v50, %v5239_v51  ;;  %v5467_v50 = vld [vmem:[#allocation8 + $0x3b4] sm:$0xf0]  ;;  %v6256_v51 = vld [vmem:[#allocation8 + $0x46c] sm:$0xf]  ;;  %v5191_v3 = vld [vmem:[#allocation8 + $0x18c] sm:$0xf0] }
 0x174   :  { %v1954_v4 = vadd.f32 %v1953_v63, %v379_v49  ;;  %v1966_v5 = vpop.f32.mrf.mxu1  ;;  %v5669_v49 = vld [vmem:[#allocation8 + $0x540] sm:$0xf]  ;;  %v6208_v63 = vld [vmem:[#allocation8 + $0x2ec] sm:$0xf]  ;;  %v5470_v8 = vor.u32 %v6232_v48, %v5467_v50  ;;  %v5518_v50 = vor.u32 %v6244_v43, %v5515_v44  ;;  %v5077_v43 = vld [vmem:[#allocation8 + $0x98] sm:$0xf] }
 0x175   :  { %3463 = vmatpush.bf16.msrb.mxu0 %v5382_v11  ;;  %v5038_v11 = vor.u32 %v6124_v36, %v5035_v0  ;;  %v5371_v0 = vld [vmem:[#allocation8 + $0x2f4] sm:$0xf0] }
 0x176   :  { %3476 = vmatpush.bf16.msrb.mxu1 %v5478_v12  ;;  %v1967_v42 = vadd.f32 %v1966_v5, %v1954_v4  ;;  %v5134_v12 = vor.u32 %v6148_v1, %v5131_v2  ;;  %v6163_v2 = vld [vmem:[#allocation8 + $0x184] sm:$0xf]  ;;  %v5374_v4 = vor.u32 %v6208_v63, %v5371_v0  ;;  %v5503_v63 = vld [vmem:[#allocation8 + $0x3fc] sm:$0xf0] }
 0x177   :  { %3489 = vmatpush.bf16.msrb.mxu2 %v5574_v54 }
 0x178   :  { %3464 = vmatmul.bf16.vlgmr.msrb.gmra.mxu0 %v6619_v21 }
 0x179   :  { %3508 = vmatpush.bf16.msra.mxu0 %v5086_v15  ;;  %v6290_v15 = vld [vmem:[#allocation8 + $0x578] sm:$0xf0] }
 0x17a   :  { %3521 = vmatpush.bf16.msra.mxu1 %v5182_v31  ;;  %v5023_v31 = vld [vmem:[#allocation8 + $0x3c] sm:$0xf0]  ;;  %v5694_v17 = vor.u32 %v6290_v15, %v5693_v14  ;;  %v5194_v14 = vor.u32 %v6163_v2, %v5191_v3  ;;  %v6205_v15 = vld [vmem:[#allocation8 + $0x2d4] sm:$0xf] }
 0x17b   :  { %3534 = vmatpush.bf16.msra.mxu2 %v5278_v57  ;;  %v5215_v57 = vld [vmem:[#allocation8 + $0x1bc] sm:$0xf0]  ;;  %v5026_v22 = vor.u32 %v6121_v13, %v5023_v31  ;;  %v1955_v35 = vpop.f32.mrf.mxu0 }
 0x17c   :  { %v1979_v18 = vpop.f32.mrf.mxu2  ;;  %3500 = vmatpush.bf16.msrb.mxu3 %v5694_v17  ;;  %v5218_v6 = vor.u32 %v6169_v20, %v5215_v57  ;;  %v5551_v13 = vld [vmem:[#allocation8 + $0x45c] sm:$0xf0]  ;;  %v6250_v20 = vld [vmem:[#allocation8 + $0x43c] sm:$0xf]  ;;  %v5539_v57 = vld [vmem:[#allocation8 + $0x444] sm:$0xf0] }
 0x17d   :  { %3509 = vmatpush.bf16.msra.mxu0 %v5074_v25  ;;  %v1980_v53 = vadd.f32 %v1979_v18, %v1967_v42  ;;  %v6118_v25 = vld [vmem:[#allocation8 + $0x1c] sm:$0xf]  ;;  %v6229_v42 = vld [vmem:[#allocation8 + $0x394] sm:$0xf]  ;;  %v5359_v31 = vld [vmem:[#allocation8 + $0x2dc] sm:$0xf0] }
 0x17e   :  { %3522 = vmatpush.bf16.msra.mxu1 %v5170_v26  ;;  %v1992_v54 = vpop.f32.mrf.mxu3  ;;  %v5681_v26 = vld [vmem:[#allocation8 + $0x558] sm:$0xf]  ;;  %v5014_v45 = vor.u32 %v6118_v25, %v5011_v29  ;;  %v5362_v16 = vor.u32 %v6205_v15, %v5359_v31  ;;  %v6226_v18 = vld [vmem:[#allocation8 + $0x37c] sm:$0xf]  ;;  %v5542_v25 = vor.u32 %v6250_v20, %v5539_v57  ;;  %v5431_v29 = vld [vmem:[#allocation8 + $0x36c] sm:$0xf0] }
 0x17f   :  { %3535 = vmatpush.bf16.msra.mxu2 %v5266_v38  ;;  %v1993_v28 = vadd.f32 %v1992_v54, %v1980_v53  ;;  %v5682_v37 = vor.u32 %v6287_v27, %v5681_v26  ;;  %v1968_v38 = vpop.f32.mrf.mxu1  ;;  %v5347_v53 = vld [vmem:[#allocation8 + $0x2c4] sm:$0xf0]  ;;  %v6223_v26 = vld [vmem:[#allocation8 + $0x364] sm:$0xf]  ;;  %v6280_v31 = vld [vmem:[#allocation8 + $0x52c] sm:$0xf] }
 0x180   :  { %v5443_v54 = vld [vmem:[#allocation8 + $0x384] sm:$0xf0]  ;;  %v6199_v27 = vld [vmem:[#allocation8 + $0x2a4] sm:$0xf]  ;;  %v5434_v38 = vor.u32 %v6223_v26, %v5431_v29  ;;  %v5185_v29 = vld [vmem:[#allocation8 + $0x170] sm:$0xf] }
 0x181   :  { %3510 = vmatpush.bf16.msra.mxu0 %v5062_v62  ;;  %v2105_v39 = vmax.f32 %v1993_v28, 0.0  ;;  %v6115_v62 = vld [vmem:[#allocation8 + $0x4] sm:$0xf]  ;;  %3501 = vmatpush.bf16.msrb.mxu3 %v5682_v37  ;;  %v5335_v28 = vld [vmem:[#allocation8 + $0x2ac] sm:$0xf0]  ;;  %v380_v37 = vperm.slane %v6616_v10, 6 }
 0x182   :  { %3523 = vmatpush.bf16.msra.mxu1 %v5158_v40  ;;  %v4999_v40 = vld [vmem:[#allocation8 + $0xc] sm:$0xf0]  ;;  %v5338_v35 = vor.u32 %v6199_v27, %v5335_v28  ;;  %v6235_v20 = vld [vmem:[#allocation8 + $0x3c4] sm:$0xf]  ;;  %v6138_v28 = vld [vmem:[#allocation8 + $0xb8] sm:$0xf0] }
 0x183   :  { %3536 = vmatpush.bf16.msra.mxu2 %v5254_v24  ;;  %v6623_v24 = vpack.c.bf16 %v2105_v39, %v2105_v39  ;;  %v5002_v5 = vor.u32 %v6115_v62, %v4999_v40  ;;  %v6220_v39 = vld [vmem:[#allocation8 + $0x34c] sm:$0xf]  ;;  %v5323_v40 = vld [vmem:[#allocation8 + $0x294] sm:$0xf0]  ;;  %v6187_v57 = vld [vmem:[#allocation8 + $0x244] sm:$0xf] }
 0x184   :  { %v1981_v36 = vpop.f32.mrf.mxu2  ;;  %v6196_v62 = vld [vmem:[#allocation8 + $0x28c] sm:$0xf] }
 0x185   :  { %3511 = vmatpush.bf16.msra.mxu0 %v5050_v30  ;;  %v6284_v30 = vld [vmem:[#allocation8 + $0x548] sm:$0xf0]  ;;  %3477 = vmatmul.bf16.vlgmr.msrb.gmra.mxu1 %v6623_v24 }
 0x186   :  { %3524 = vmatpush.bf16.msra.mxu1 %v5146_v56  ;;  %v5563_v56 = vld [vmem:[#allocation8 + $0x474] sm:$0xf0]  ;;  %v5670_v61 = vor.u32 %v6284_v30, %v5669_v49  ;;  %v1994_v1 = vpop.f32.mrf.mxu3  ;;  %v6193_v30 = vld [vmem:[#allocation8 + $0x274] sm:$0xf] }
 0x187   :  { %3537 = vmatpush.bf16.msra.mxu2 %v5242_v7  ;;  %v5098_v7 = vor.u32 %v6139_v41, %v5095_v47  ;;  %v5566_v9 = vor.u32 %v6256_v51, %v5563_v56  ;;  %v5419_v41 = vld [vmem:[#allocation8 + $0x354] sm:$0xf0]  ;;  %v6217_v51 = vld [vmem:[#allocation8 + $0x334] sm:$0xf]  ;;  %v5311_v56 = vld [vmem:[#allocation8 + $0x27c] sm:$0xf0] }
 0x188   :  { %3502 = vmatpush.bf16.msrb.mxu3 %v5670_v61  ;;  %v5422_v49 = vor.u32 %v6220_v39, %v5419_v41  ;;  %v6241_v61 = vld [vmem:[#allocation8 + $0x3f4] sm:$0xf]  ;;  %v5314_v0 = vor.u32 %v6193_v30, %v5311_v56  ;;  %v5065_v30 = vld [vmem:[#allocation8 + $0x80] sm:$0xf] }
 0x189   :  { %3512 = vmatpush.bf16.msra.mxu0 %v5038_v11  ;;  %v5455_v11 = vld [vmem:[#allocation8 + $0x39c] sm:$0xf0] }
 0x18a   :  { %3525 = vmatpush.bf16.msra.mxu1 %v5134_v12  ;;  %v6253_v12 = vld [vmem:[#allocation8 + $0x454] sm:$0xf]  ;;  %v5458_v32 = vor.u32 %v6229_v42, %v5455_v11  ;;  %v5395_v42 = vld [vmem:[#allocation8 + $0x324] sm:$0xf0]  ;;  %v6238_v11 = vld [vmem:[#allocation8 + $0x3dc] sm:$0xf] }
 0x18b   :  { %3538 = vmatpush.bf16.msra.mxu2 %v5230_v19  ;;  %v5554_v17 = vor.u32 %v6253_v12, %v5551_v13  ;;  %v6202_v19 = vld [vmem:[#allocation8 + $0x2bc] sm:$0xf]  ;;  %v5491_v12 = vld [vmem:[#allocation8 + $0x3e4] sm:$0xf0] }
 0x18c   :  { %3547 = vmatpush.bf16.msra.mxu3 %v5374_v4 }
 0x18d   :  { %3513 = vmatpush.bf16.msra.mxu0 %v5026_v22  ;;  %v5350_v22 = vor.u32 %v6202_v19, %v5347_v53 }
 0x18e   :  { %3526 = vmatpush.bf16.msra.mxu1 %v5122_v23  ;;  %v5446_v23 = vor.u32 %v6226_v18, %v5443_v54  ;;  %v5383_v18 = vld [vmem:[#allocation8 + $0x30c] sm:$0xf0]  ;;  %v5494_v54 = vor.u32 %v6238_v11, %v5491_v12  ;;  %v5611_v11 = vld [vmem:[#allocation8 + $0x4d4] sm:$0xf0] }
 0x18f   :  { %3539 = vmatpush.bf16.msra.mxu2 %v5218_v6  ;;  %v5530_v6 = vor.u32 %v6247_v33, %v5527_v34  ;;  %v6162_v33 = vld [vmem:[#allocation8 + $0x178] sm:$0xf0] }
 0x190   :  { %3548 = vmatpush.bf16.msra.mxu3 %v5362_v16  ;;  %v5659_v16 = vld [vmem:[#allocation8 + $0x534] sm:$0xf0]  ;;  %v5186_v41 = vor.u32 %v6162_v33, %v5185_v29  ;;  %v6262_v29 = vld [vmem:[#allocation8 + $0x49c] sm:$0xf]  ;;  %v5587_v33 = vld [vmem:[#allocation8 + $0x4a4] sm:$0xf0] }
 0x191   :  { %3514 = vmatpush.bf16.msra.mxu0 %v5014_v45  ;;  %v5326_v45 = vor.u32 %v6196_v62, %v5323_v40  ;;  %v5662_v27 = vor.u32 %v6280_v31, %v5659_v16  ;;  %v5137_v31 = vld [vmem:[#allocation8 + $0x110] sm:$0xf]  ;;  %v6150_v16 = vld [vmem:[#allocation8 + $0x118] sm:$0xf0] }
 0x192   :  { %3527 = vmatpush.bf16.msra.mxu1 %v5110_v46  ;;  %v2005_v46 = vpop.f32.mrf.mxu0 }
 0x193   :  { %3540 = vmatpush.bf16.msra.mxu2 %v5206_v60  ;;  %v2006_v47 = vadd.f32 %v2005_v46, %v380_v37  ;;  %v5407_v60 = vld [vmem:[#allocation8 + $0x33c] sm:$0xf0]  ;;  %v6277_v37 = vld [vmem:[#allocation8 + $0x514] sm:$0xf]  ;;  %v5173_v46 = vld [vmem:[#allocation8 + $0x158] sm:$0xf] }
 0x194   :  { %3549 = vmatpush.bf16.msra.mxu3 %v5350_v22  ;;  %v2018_v48 = vpop.f32.mrf.mxu1  ;;  %v5410_v4 = vor.u32 %v6217_v51, %v5407_v60  ;;  %v5479_v22 = vld [vmem:[#allocation8 + $0x3cc] sm:$0xf0]  ;;  %v5161_v60 = vld [vmem:[#allocation8 + $0x140] sm:$0xf] }
 0x195   :  { %3515 = vmatpush.bf16.msra.mxu0 %v5002_v5  ;;  %v2019_v36 = vadd.f32 %v2018_v48, %v2006_v47  ;;  %v5506_v5 = vor.u32 %v6241_v61, %v5503_v63  ;;  %v5482_v39 = vor.u32 %v6235_v20, %v5479_v22  ;;  %v6159_v47 = vld [vmem:[#allocation8 + $0x160] sm:$0xf0]  ;;  %v6274_v48 = vld [vmem:[#allocation8 + $0x4fc] sm:$0xf]  ;;  %v6156_v61 = vld [vmem:[#allocation8 + $0x148] sm:$0xf0]  ;;  %v5138_v20 = vor.u32 %v6150_v16, %v5137_v31 }
 0x196   :  { %3528 = vmatpush.bf16.msra.mxu1 %v5098_v7  ;;  %v6214_v7 = vld [vmem:[#allocation8 + $0x31c] sm:$0xf]  ;;  %v5174_v51 = vor.u32 %v6159_v47, %v5173_v46  ;;  %v6271_v63 = vld [vmem:[#allocation8 + $0x4e4] sm:$0xf]  ;;  %v5575_v47 = vld [vmem:[#allocation8 + $0x48c] sm:$0xf0] }
 0x197   :  { %3541 = vmatpush.bf16.msra.mxu2 %v5194_v14  ;;  %v5398_v53 = vor.u32 %v6214_v7, %v5395_v42  ;;  %v5149_v7 = vld [vmem:[#allocation8 + $0x128] sm:$0xf]  ;;  %v6268_v42 = vld [vmem:[#allocation8 + $0x4cc] sm:$0xf]  ;;  %v6123_v22 = vld [vmem:[#allocation8 + $0x40] sm:$0xf0] }
 0x198   :  { %3516 = vmatmul.bf16.vlgmr.msra.gmra.mxu0 %v6604_v52  ;;  %3550 = vmatpush.bf16.msra.mxu3 %v5338_v35  ;;  %v6259_v46 = vld [vmem:[#allocation8 + $0x484] sm:$0xf] }
 0x199   :  { %3560 = vmatpush.bf16.msrb.mxu0 %v5470_v8  ;;  %3529 = vmatmul.bf16.vlgmr.msra.gmra.mxu1 %v6606_v55  ;;  %v6190_v8 = vld [vmem:[#allocation8 + $0x25c] sm:$0xf]  ;;  %v6183_v31 = vld [vmem:[#allocation8 + $0x220] sm:$0xf0] }
 0x19a   :  { %3573 = vmatpush.bf16.msrb.mxu1 %v5566_v9  ;;  %v5299_v9 = vld [vmem:[#allocation8 + $0x264] sm:$0xf0]  ;;  %v2007_v15 = vpop.f32.mrf.mxu0 }
 0x19b   :  { %v5302_v13 = vor.u32 %v6190_v8, %v5299_v9  ;;  %v6153_v8 = vld [vmem:[#allocation8 + $0x130] sm:$0xf0]  ;;  %v381_v9 = vperm.slane %v6616_v10, 7  ;;  %v6126_v15 = vld [vmem:[#allocation8 + $0x58] sm:$0xf0] }
 0x19c   :  { %3551 = vmatpush.bf16.msra.mxu3 %v5326_v45  ;;  %v2031_v1 = vpop.f32.mrf.mxu2  ;;  %v6135_v45 = vld [vmem:[#allocation8 + $0xa0] sm:$0xf0] }
 0x19d   :  { %3561 = vmatpush.bf16.msrb.mxu0 %v5458_v32  ;;  %v2032_v2 = vadd.f32 %v2031_v1, %v2019_v36  ;;  %v2020_v32 = vpop.f32.mrf.mxu1  ;;  %v6132_v36 = vld [vmem:[#allocation8 + $0x88] sm:$0xf0] }
 0x19e   :  { %3574 = vmatpush.bf16.msrb.mxu1 %v5554_v17  ;;  %v2044_v3 = vpop.f32.mrf.mxu3  ;;  %v6211_v17 = vld [vmem:[#allocation8 + $0x304] sm:$0xf]  ;;  %v5066_v1 = vor.u32 %v6132_v36, %v5065_v30  ;;  %v6186_v36 = vld [vmem:[#allocation8 + $0x238] sm:$0xf0] }
 0x19f   :  { %v2045_v14 = vadd.f32 %v2044_v3, %v2032_v2  ;;  %v5162_v2 = vor.u32 %v6156_v61, %v5161_v60  ;;  %v5053_v3 = vld [vmem:[#allocation8 + $0x68] sm:$0xf]  ;;  %v6117_v61 = vld [vmem:[#allocation8 + $0x10] sm:$0xf0] }
 0x1a0   :  { %3552 = vmatpush.bf16.msra.mxu3 %v5314_v0  ;;  %v5623_v0 = vld [vmem:[#allocation8 + $0x4ec] sm:$0xf0]  ;;  %v5005_v60 = vld [vmem:[#allocation8 + $0x8] sm:$0xf] }
 0x1a1   :  { %3562 = vmatpush.bf16.msrb.mxu0 %v5446_v23  ;;  %v2106_v19 = vmax.f32 %v2045_v14, 0.0  ;;  %v5089_v23 = vld [vmem:[#allocation8 + $0xb0] sm:$0xf] }
 0x1a2   :  { %3575 = vmatpush.bf16.msrb.mxu1 %v5542_v25  ;;  %v5287_v25 = vld [vmem:[#allocation8 + $0x24c] sm:$0xf0]  ;;  %v5090_v40 = vor.u32 %v6138_v28, %v5089_v23  ;;  %v5125_v23 = vld [vmem:[#allocation8 + $0xf8] sm:$0xf] }
 0x1a3   :  { %v6629_v26 = vpack.c.bf16 %v2106_v19, %v2106_v19  ;;  %v5290_v34 = vor.u32 %v6187_v57, %v5287_v25  ;;  %v5041_v14 = vld [vmem:[#allocation8 + $0x50] sm:$0xf]  ;;  %v5029_v57 = vld [vmem:[#allocation8 + $0x38] sm:$0xf]  ;;  %v6147_v25 = vld [vmem:[#allocation8 + $0x100] sm:$0xf0] }
 0x1a4   :  { %3553 = vmatpush.bf16.msra.mxu3 %v5302_v13  ;;  %v2033_v35 = vpop.f32.mrf.mxu2  ;;  %v5150_v13 = vor.u32 %v6153_v8, %v5149_v7  ;;  %v5042_v10 = vor.u32 %v6126_v15, %v5041_v14  ;;  %v5569_v8 = vld [vmem:[#allocation8 + $0x470] sm:$0xf]  ;;  %v5743_v14 = vld [vmem:[#allocation8 + $0x5dc] sm:$0xf0]  ;;  %v5269_v15 = vld [vmem:[#allocation8 + $0x218] sm:$0xf] }
 0x1a5   :  { %3563 = vmatpush.bf16.msrb.mxu0 %v5434_v38  ;;  %v5647_v38 = vld [vmem:[#allocation8 + $0x51c] sm:$0xf0]  ;;  %3490 = vmatmul.bf16.vlgmr.msrb.gmra.mxu2 %v6629_v26  ;;  %v5126_v35 = vor.u32 %v6147_v25, %v5125_v23  ;;  %v5731_v23 = vld [vmem:[#allocation8 + $0x5c4] sm:$0xf0] }
 0x1a6   :  { %3576 = vmatpush.bf16.msrb.mxu1 %v5530_v6  ;;  %v5386_v6 = vor.u32 %v6211_v17, %v5383_v18  ;;  %v2046_v62 = vpop.f32.mrf.mxu3  ;;  %3586 = vmatpush.bf16.msrb.mxu2 %v5662_v27  ;;  %v5650_v44 = vor.u32 %v6277_v37, %v5647_v38  ;;  %v5614_v18 = vor.u32 %v6268_v42, %v5611_v11  ;;  %v5017_v37 = vld [vmem:[#allocation8 + $0x20] sm:$0xf]  ;;  %v6301_v42 = vld [vmem:[#allocation8 + $0x5d4] sm:$0xf] }
 0x1a7   :  { %v5113_v62 = vld [vmem:[#allocation8 + $0xe0] sm:$0xf] }
 0x1a8   :  { %3554 = vmatpush.bf16.msra.mxu3 %v5290_v34  ;;  %v5030_v34 = vor.u32 %v6123_v22, %v5029_v57  ;;  %v6255_v57 = vld [vmem:[#allocation8 + $0x460] sm:$0xf0]  ;;  %v6298_v22 = vld [vmem:[#allocation8 + $0x5bc] sm:$0xf]  ;;  %v5257_v25 = vld [vmem:[#allocation8 + $0x200] sm:$0xf] }
 0x1a9   :  { %3564 = vmatpush.bf16.msrb.mxu0 %v5422_v49  ;;  %v5635_v49 = vld [vmem:[#allocation8 + $0x504] sm:$0xf0] }
 0x1aa   :  { %3577 = vmatpush.bf16.msrb.mxu1 %v5518_v50  ;;  %v5078_v50 = vor.u32 %v6135_v45, %v5077_v43  ;;  %3587 = vmatpush.bf16.msrb.mxu2 %v5650_v44  ;;  %v5638_v56 = vor.u32 %v6274_v48, %v5635_v49  ;;  %v5590_v45 = vor.u32 %v6262_v29, %v5587_v33  ;;  %v6304_v48 = vld [vmem:[#allocation8 + $0x5ec] sm:$0xf]  ;;  %v5755_v49 = vld [vmem:[#allocation8 + $0x5f4] sm:$0xf0]  ;;  %v5449_v33 = vld [vmem:[#allocation8 + $0x380] sm:$0xf] }
 0x1ad   :  { %3565 = vmatpush.bf16.msrb.mxu0 %v5410_v4  ;;  %v5626_v4 = vor.u32 %v6271_v63, %v5623_v0  ;;  %v5101_v63 = vld [vmem:[#allocation8 + $0xc8] sm:$0xf]  ;;  %v6141_v0 = vld [vmem:[#allocation8 + $0xd0] sm:$0xf0] }
 0x1ae   :  { %3578 = vmatpush.bf16.msrb.mxu1 %v5506_v5  ;;  %3588 = vmatpush.bf16.msrb.mxu2 %v5638_v56  ;;  %v6129_v5 = vld [vmem:[#allocation8 + $0x70] sm:$0xf0]  ;;  %v5281_v56 = vld [vmem:[#allocation8 + $0x230] sm:$0xf] }
 0x1af   :  { %v5054_v12 = vor.u32 %v6129_v5, %v5053_v3  ;;  %v5473_v3 = vld [vmem:[#allocation8 + $0x3b0] sm:$0xf]  ;;  %v5758_v5 = vor.u32 %v6304_v48, %v5755_v49  ;;  %v5282_v7 = vor.u32 %v6186_v36, %v5281_v56  ;;  %v6225_v48 = vld [vmem:[#allocation8 + $0x370] sm:$0xf0]  ;;  %v5707_v56 = vld [vmem:[#allocation8 + $0x594] sm:$0xf0] }
 0x1b0   :  { %v6174_v36 = vld [vmem:[#allocation8 + $0x1d8] sm:$0xf0] }
 0x1b1   :  { %3566 = vmatpush.bf16.msrb.mxu0 %v5398_v53  ;;  %v6265_v53 = vld [vmem:[#allocation8 + $0x4b4] sm:$0xf] }
 0x1b2   :  { %3579 = vmatpush.bf16.msrb.mxu1 %v5494_v54  ;;  %3589 = vmatpush.bf16.msrb.mxu2 %v5626_v4  ;;  %v2057_v32 = vpop.f32.mrf.mxu0  ;;  %v5599_v54 = vld [vmem:[#allocation8 + $0x4bc] sm:$0xf0]  ;;  %v6234_v4 = vld [vmem:[#allocation8 + $0x3b8] sm:$0xf0] }
 0x1b3   :  { %v2058_v19 = vadd.f32 %v2057_v32, %v381_v9  ;;  %v5602_v28 = vor.u32 %v6265_v53, %v5599_v54  ;;  %v6258_v9 = vld [vmem:[#allocation8 + $0x478] sm:$0xf0]  ;;  %v6231_v53 = vld [vmem:[#allocation8 + $0x3a0] sm:$0xf0]  ;;  %v5746_v54 = vor.u32 %v6301_v42, %v5743_v14  ;;  %v5695_v42 = vld [vmem:[#allocation8 + $0x57c] sm:$0xf0] }
 0x1b4   :  { %v2070_v17 = vpop.f32.mrf.mxu1 }
 0x1b5   :  { %3567 = vmatpush.bf16.msrb.mxu0 %v5386_v6  ;;  %3542 = vmatmul.bf16.vlgmr.msra.gmra.mxu2 %v6608_v58  ;;  %v2071_v27 = vadd.f32 %v2070_v17, %v2058_v19  ;;  %v5474_v17 = vor.u32 %v6234_v4, %v5473_v3  ;;  %v5461_v19 = vld [vmem:[#allocation8 + $0x398] sm:$0xf]  ;;  %v5521_v4 = vld [vmem:[#allocation8 + $0x410] sm:$0xf] }
 0x1b6   :  { %3580 = vmatpush.bf16.msrb.mxu1 %v5482_v39  ;;  %3590 = vmatpush.bf16.msrb.mxu2 %v5614_v18  ;;  %v6120_v39 = vld [vmem:[#allocation8 + $0x28] sm:$0xf0]  ;;  %v5570_v18 = vor.u32 %v6258_v9, %v5569_v8 }
 0x1b8   :  { %3568 = vmatmul.bf16.vlgmr.msrb.gmra.mxu0 %v6619_v21 }
 0x1b9   :  { %3612 = vmatpush.bf16.msra.mxu0 %v5090_v40  ;;  %3581 = vmatmul.bf16.vlgmr.msrb.gmra.mxu1 %v6623_v24  ;;  %v6144_v40 = vld [vmem:[#allocation8 + $0xe8] sm:$0xf0] }
 0x1ba   :  { %3625 = vmatpush.bf16.msra.mxu1 %v5186_v41  ;;  %3591 = vmatpush.bf16.msrb.mxu2 %v5602_v28  ;;  %v2059_v43 = vpop.f32.mrf.mxu0  ;;  %v5114_v30 = vor.u32 %v6144_v40, %v5113_v62  ;;  %v5462_v28 = vor.u32 %v6231_v53, %v5461_v19  ;;  %v6643_v62 = vld [vmem:[%s6674_s4] sm:$0x7]  ;;  %v5719_v40 = vld [vmem:[#allocation8 + $0x5ac] sm:$0xf0]  ;;  %v5509_v19 = vld [vmem:[#allocation8 + $0x3f8] sm:$0xf] }
 0x1bb   :  { %v6177_v43 = vld [vmem:[#allocation8 + $0x1f0] sm:$0xf0]  ;;  %v6243_v53 = vld [vmem:[#allocation8 + $0x400] sm:$0xf0] }
 0x1bc   :  { %v2083_v38 = vpop.f32.mrf.mxu2  ;;  %v2072_v44 = vpop.f32.mrf.mxu1 }
 0x1bd   :  { %3613 = vmatpush.bf16.msra.mxu0 %v5078_v50  ;;  %v2084_v41 = vadd.f32 %v2083_v38, %v2071_v27  ;;  %v6180_v27 = vld [vmem:[#allocation8 + $0x208] sm:$0xf0] }
 0x1be   :  { %3626 = vmatpush.bf16.msra.mxu1 %v5174_v51  ;;  %v2096_v6 = vpop.f32.mrf.mxu3  ;;  %v5018_v51 = vor.u32 %v6120_v39, %v5017_v37  ;;  %3592 = vmatpush.bf16.msrb.mxu2 %v5590_v45  ;;  %v5734_v37 = vor.u32 %v6298_v22, %v5731_v23  ;;  %v5258_v38 = vor.u32 %v6180_v27, %v5257_v25  ;;  %v6295_v39 = vld [vmem:[#allocation8 + $0x5a4] sm:$0xf]  ;;  %v5401_v25 = vld [vmem:[#allocation8 + $0x320] sm:$0xf]  ;;  %v6216_v27 = vld [vmem:[#allocation8 + $0x328] sm:$0xf0] }
 0x1bf   :  { %v2097_v50 = vadd.f32 %v2096_v6, %v2084_v41  ;;  %v6252_v6 = vld [vmem:[#allocation8 + $0x448] sm:$0xf0]  ;;  %v5245_v41 = vld [vmem:[#allocation8 + $0x1e8] sm:$0xf]  ;;  %v5722_v49 = vor.u32 %v6295_v39, %v5719_v40  ;;  %v5510_v23 = vor.u32 %v6243_v53, %v5509_v19  ;;  %v6273_v19 = vld [vmem:[#allocation8 + $0x4f0] sm:$0xf0] }
 0x1c1   :  { %3614 = vmatpush.bf16.msra.mxu0 %v5066_v1  ;;  %v2107_v1 = vmax.f32 %v2097_v50, 0.0  ;;  %v5246_v50 = vor.u32 %v6177_v43, %v5245_v41  ;;  %v5197_v41 = vld [vmem:[#allocation8 + $0x188] sm:$0xf]  ;;  %v6165_v43 = vld [vmem:[#allocation8 + $0x190] sm:$0xf0] }
 0x1c2   :  { %3627 = vmatpush.bf16.msra.mxu1 %v5162_v2  ;;  %v5578_v2 = vor.u32 %v6259_v46, %v5575_v47  ;;  %v2374_v46 = vperm.slane %v6643_v62, 0  ;;  %v5437_v47 = vld [vmem:[#allocation8 + $0x368] sm:$0xf] }
 0x1c3   :  { %v6636_v11 = vpack.c.bf16 %v2107_v1, %v2107_v1 }
 0x1c4   :  { %v2085_v16 = vpop.f32.mrf.mxu2  ;;  %3593 = vmatpush.bf16.msrb.mxu2 %v5578_v2 }
 0x1c5   :  { %3615 = vmatpush.bf16.msra.mxu0 %v5054_v12  ;;  %v5006_v12 = vor.u32 %v6117_v61, %v5005_v60  ;;  %3503 = vmatmul.bf16.vlgmr.msrb.gmra.mxu3 %v6636_v11  ;;  %v5438_v60 = vor.u32 %v6225_v48, %v5437_v47  ;;  %v5413_v16 = vld [vmem:[#allocation8 + $0x338] sm:$0xf]  ;;  %v6210_v47 = vld [vmem:[#allocation8 + $0x2f8] sm:$0xf0]  ;;  %v5665_v48 = vld [vmem:[#allocation8 + $0x530] sm:$0xf] }
 0x1c6   :  { %3628 = vmatpush.bf16.msra.mxu1 %v5150_v13  ;;  %v5102_v13 = vor.u32 %v6141_v0, %v5101_v63  ;;  %v2098_v32 = vpop.f32.mrf.mxu3  ;;  %3599 = vmatpush.bf16.msrb.mxu3 %v5758_v5  ;;  %v5425_v63 = vld [vmem:[#allocation8 + $0x350] sm:$0xf]  ;;  %v6222_v0 = vld [vmem:[#allocation8 + $0x358] sm:$0xf0] }
 0x1c7   :  { %3594 = vmatmul.bf16.vlgmr.msrb.gmra.mxu2 %v6629_v26  ;;  %v6246_v5 = vld [vmem:[#allocation8 + $0x418] sm:$0xf0]  ;;  %v5426_v14 = vor.u32 %v6222_v0, %v5425_v63  ;;  %v6219_v32 = vld [vmem:[#allocation8 + $0x340] sm:$0xf0]  ;;  %v5365_v0 = vld [vmem:[#allocation8 + $0x2d8] sm:$0xf] }
 0x1c8   :  { %3638 = vmatpush.bf16.msra.mxu2 %v5282_v7  ;;  %v6289_v7 = vld [vmem:[#allocation8 + $0x574] sm:$0xf]  ;;  %v5414_v22 = vor.u32 %v6219_v32, %v5413_v16  ;;  %v5341_v32 = vld [vmem:[#allocation8 + $0x2a8] sm:$0xf] }
 0x1c9   :  { %3616 = vmatpush.bf16.msra.mxu0 %v5042_v10  ;;  %v5270_v10 = vor.u32 %v6183_v31, %v5269_v15  ;;  %v5522_v31 = vor.u32 %v6246_v5, %v5521_v4  ;;  %v6279_v4 = vld [vmem:[#allocation8 + $0x520] sm:$0xf0] }
 0x1ca   :  { %3629 = vmatpush.bf16.msra.mxu1 %v5138_v20  ;;  %v5557_v20 = vld [vmem:[#allocation8 + $0x458] sm:$0xf]  ;;  %3600 = vmatpush.bf16.msrb.mxu3 %v5746_v54  ;;  %v6286_v54 = vld [vmem:[#allocation8 + $0x55c] sm:$0xf] }
 0x1cb   :  { %v5558_v29 = vor.u32 %v6255_v57, %v5557_v20  ;;  %v5209_v20 = vld [vmem:[#allocation8 + $0x1a0] sm:$0xf]  ;;  %v6168_v57 = vld [vmem:[#allocation8 + $0x1a8] sm:$0xf0] }
 0x1cc   :  { %3639 = vmatpush.bf16.msra.mxu2 %v5270_v10  ;;  %v5683_v10 = vld [vmem:[#allocation8 + $0x564] sm:$0xf0] }
 0x1cd   :  { %3617 = vmatpush.bf16.msra.mxu0 %v5030_v34  ;;  %v6228_v34 = vld [vmem:[#allocation8 + $0x388] sm:$0xf0] }
 0x1ce   :  { %3630 = vmatpush.bf16.msra.mxu1 %v5126_v35  ;;  %v5545_v35 = vld [vmem:[#allocation8 + $0x440] sm:$0xf]  ;;  %v5450_v44 = vor.u32 %v6228_v34, %v5449_v33  ;;  %3601 = vmatpush.bf16.msrb.mxu3 %v5734_v37  ;;  %v5686_v34 = vor.u32 %v6286_v54, %v5683_v10  ;;  %v6240_v37 = vld [vmem:[#allocation8 + $0x3e8] sm:$0xf0]  ;;  %v6198_v10 = vld [vmem:[#allocation8 + $0x298] sm:$0xf0] }
 0x1cf   :  { %v5546_v45 = vor.u32 %v6252_v6, %v5545_v35  ;;  %v5210_v35 = vor.u32 %v6168_v57, %v5209_v20  ;;  %v5671_v6 = vld [vmem:[#allocation8 + $0x54c] sm:$0xf0]  ;;  %v6270_v57 = vld [vmem:[#allocation8 + $0x4d8] sm:$0xf0] }
 0x1d0   :  { %3640 = vmatpush.bf16.msra.mxu2 %v5258_v38  ;;  %v6283_v38 = vld [vmem:[#allocation8 + $0x544] sm:$0xf]  ;;  %v5617_v20 = vld [vmem:[#allocation8 + $0x4d0] sm:$0xf] }
 0x1d1   :  { %3618 = vmatpush.bf16.msra.mxu0 %v5018_v51  ;;  %v5533_v51 = vld [vmem:[#allocation8 + $0x428] sm:$0xf] }
 0x1d2   :  { %3631 = vmatpush.bf16.msra.mxu1 %v5114_v30  ;;  %v6249_v30 = vld [vmem:[#allocation8 + $0x430] sm:$0xf0]  ;;  %3602 = vmatpush.bf16.msrb.mxu3 %v5722_v49  ;;  %v6282_v49 = vld [vmem:[#allocation8 + $0x538] sm:$0xf0] }
 0x1d3   :  { %v5534_v61 = vor.u32 %v6249_v30, %v5533_v51  ;;  %v5389_v30 = vld [vmem:[#allocation8 + $0x308] sm:$0xf]  ;;  %v5666_v63 = vor.u32 %v6282_v49, %v5665_v48  ;;  %v6306_v48 = vld [vmem:[#allocation8 + $0x5f8] sm:$0xf0] }
 0x1d4   :  { %3641 = vmatpush.bf16.msra.mxu2 %v5246_v50 }
 0x1d5   :  { %3619 = vmatpush.bf16.msra.mxu0 %v5006_v12  ;;  %v3413_v1 = vpop.f32.mrf.mxu0  ;;  %v5221_v12 = vld [vmem:[#allocation8 + $0x1b8] sm:$0xf]  ;;  %3555 = vmatmul.bf16.vlgmr.msra.gmra.mxu3 %v6610_v59 }
 0x1d6   :  { %3632 = vmatpush.bf16.msra.mxu1 %v5102_v13  ;;  %v3414_v8 = vadd.f32 %v3413_v1, %v2374_v46  ;;  %v3426_v9 = vpop.f32.mrf.mxu1  ;;  %v6171_v13 = vld [vmem:[#allocation8 + $0x1c0] sm:$0xf0]  ;;  %v5402_v46 = vor.u32 %v6216_v27, %v5401_v25  ;;  %v5317_v25 = vld [vmem:[#allocation8 + $0x278] sm:$0xf] }
 0x1d8   :  { %3620 = vmatmul.bf16.vlgmr.msra.gmra.mxu0 %v6604_v52  ;;  %v6292_v52 = vld [vmem:[#allocation8 + $0x58c] sm:$0xf]  ;;  %v3427_v15 = vadd.f32 %v3426_v9, %v3414_v8 }
 0x1d9   :  { %3664 = vmatpush.bf16.msrb.mxu0 %v5474_v17  ;;  %3633 = vmatmul.bf16.vlgmr.msra.gmra.mxu1 %v6606_v55  ;;  %v5233_v55 = vld [vmem:[#allocation8 + $0x1d0] sm:$0xf]  ;;  %v5710_v2 = vor.u32 %v6292_v52, %v5707_v56  ;;  %v5698_v17 = vor.u32 %v6289_v7, %v5695_v42  ;;  %v6213_v52 = vld [vmem:[#allocation8 + $0x310] sm:$0xf0]  ;;  %v5674_v56 = vor.u32 %v6283_v38, %v5671_v6  ;;  %v5353_v42 = vld [vmem:[#allocation8 + $0x2c0] sm:$0xf] }
 0x1da   :  { %3677 = vmatpush.bf16.msrb.mxu1 %v5570_v18  ;;  %v5234_v3 = vor.u32 %v6174_v36, %v5233_v55  ;;  %v5222_v18 = vor.u32 %v6171_v13, %v5221_v12  ;;  %v5198_v55 = vor.u32 %v6165_v43, %v5197_v41  ;;  %v5485_v36 = vld [vmem:[#allocation8 + $0x3c8] sm:$0xf]  ;;  %v5390_v1 = vor.u32 %v6213_v52, %v5389_v30  ;;  %v6204_v12 = vld [vmem:[#allocation8 + $0x2c8] sm:$0xf0]  ;;  %v5641_v13 = vld [vmem:[#allocation8 + $0x500] sm:$0xf] }
 0x1db   :  { %3603 = vmatpush.bf16.msrb.mxu3 %v5710_v2  ;;  %v6207_v2 = vld [vmem:[#allocation8 + $0x2e0] sm:$0xf0]  ;;  %v5593_v38 = vld [vmem:[#allocation8 + $0x4a0] sm:$0xf]  ;;  %v6264_v6 = vld [vmem:[#allocation8 + $0x4a8] sm:$0xf0] }
 0x1dc   :  { %3642 = vmatpush.bf16.msra.mxu2 %v5234_v3  ;;  %v5653_v3 = vld [vmem:[#allocation8 + $0x518] sm:$0xf]  ;;  %v5366_v8 = vor.u32 %v6207_v2, %v5365_v0  ;;  %v5293_v41 = vld [vmem:[#allocation8 + $0x248] sm:$0xf]  ;;  %v6189_v43 = vld [vmem:[#allocation8 + $0x250] sm:$0xf0] }
 0x1dd   :  { %3665 = vmatpush.bf16.msrb.mxu0 %v5462_v28  ;;  %v5497_v28 = vld [vmem:[#allocation8 + $0x3e0] sm:$0xf]  ;;  %v3415_v33 = vpop.f32.mrf.mxu0  ;;  %v5654_v9 = vor.u32 %v6279_v4, %v5653_v3  ;;  %v5294_v49 = vor.u32 %v6189_v43, %v5293_v41  ;;  %v5749_v30 = vld [vmem:[#allocation8 + $0x5d8] sm:$0xf]  ;;  %v6303_v52 = vld [vmem:[#allocation8 + $0x5e0] sm:$0xf0] }
 0x1de   :  { %3678 = vmatpush.bf16.msrb.mxu1 %v5558_v29  ;;  %v3439_v29 = vpop.f32.mrf.mxu2  ;;  %v3428_v40 = vpop.f32.mrf.mxu1  ;;  %v5498_v51 = vor.u32 %v6240_v37, %v5497_v28  ;;  %v5605_v28 = vld [vmem:[#allocation8 + $0x4b8] sm:$0xf]  ;;  %v6192_v37 = vld [vmem:[#allocation8 + $0x268] sm:$0xf0]  ;;  %v6297_v0 = vld [vmem:[#allocation8 + $0x5b0] sm:$0xf0] }
 0x1df   :  { %3604 = vmatpush.bf16.msrb.mxu3 %v5698_v17  ;;  %v3440_v39 = vadd.f32 %v3439_v29, %v3427_v15  ;;  %v6201_v17 = vld [vmem:[#allocation8 + $0x2b0] sm:$0xf0]  ;;  %v5594_v40 = vor.u32 %v6264_v6, %v5593_v38  ;;  %v5713_v3 = vld [vmem:[#allocation8 + $0x590] sm:$0xf]  ;;  %v6294_v4 = vld [vmem:[#allocation8 + $0x598] sm:$0xf0] }
 0x1e0   :  { %3643 = vmatpush.bf16.msra.mxu2 %v5222_v18  ;;  %v5629_v18 = vld [vmem:[#allocation8 + $0x4e8] sm:$0xf]  ;;  %v5342_v53 = vor.u32 %v6201_v17, %v5341_v32  ;;  %v6319_v38 = vld [vmem:[#allocation10 + $0x60] sm:$0xff]  ;;  %v6318_v6 = vld [vmem:[#allocation10 + $0x58] sm:$0xff]  ;;  %v2376_v41 = vperm.slane %v6643_v62, 2 }
 0x1e1   :  { %3666 = vmatpush.bf16.msrb.mxu0 %v5450_v44  ;;  %v5377_v44 = vld [vmem:[#allocation8 + $0x2f0] sm:$0xf]  ;;  %v5630_v54 = vor.u32 %v6273_v19, %v5629_v18  ;;  %v5677_v18 = vld [vmem:[#allocation8 + $0x548] sm:$0xf]  ;;  %v6285_v19 = vld [vmem:[#allocation8 + $0x550] sm:$0xf0] }
 0x1e2   :  { %3679 = vmatpush.bf16.msrb.mxu1 %v5546_v45  ;;  %v3452_v45 = vpop.f32.mrf.mxu3  ;;  %v6316_v43 = vld [vmem:[#allocation10 + $0x48] sm:$0xff] }
 0x1e3   :  { %v6649_v50 = vadd.f32 %v3452_v45, %v3440_v39  ;;  %3605 = vmatpush.bf16.msrb.mxu3 %v5686_v34  ;;  %v6261_v45 = vld [vmem:[#allocation8 + $0x490] sm:$0xf0] }
 0x1e4   :  { %3644 = vmatpush.bf16.msra.mxu2 %v5210_v35  ;;  %v5305_v35 = vld [vmem:[#allocation8 + $0x260] sm:$0xf] }
 0x1e5   :  { %3667 = vmatpush.bf16.msrb.mxu0 %v5438_v60  ;;  %v6237_v60 = vld [vmem:[#allocation8 + $0x3d0] sm:$0xf0]  ;;  %v5306_v39 = vor.u32 %v6192_v37, %v5305_v35  ;;  %v6320_v37 = vld [vmem:[#allocation10 + $0x68] sm:$0xff] }
 0x1e6   :  { %3680 = vmatpush.bf16.msrb.mxu1 %v5534_v61  ;;  %v5378_v61 = vor.u32 %v6210_v47, %v5377_v44  ;;  %v5486_v5 = vor.u32 %v6237_v60, %v5485_v36  ;;  %v3441_v7 = vpop.f32.mrf.mxu2  ;;  %v5581_v44 = vld [vmem:[#allocation8 + $0x488] sm:$0xf]  ;;  %v5761_v47 = vld [vmem:[#allocation8 + $0x5f0] sm:$0xf]  ;;  %v6300_v36 = vld [vmem:[#allocation8 + $0x5c8] sm:$0xf0] }
 0x1e7   :  { %3606 = vmatpush.bf16.msrb.mxu3 %v5674_v56  ;;  %v5750_v56 = vor.u32 %v6303_v52, %v5749_v30  ;;  %v6314_v7 = vld [vmem:[#allocation10 + $0x38] sm:$0xff]  ;;  %v6321_v35 = vld [vmem:[#allocation10 + $0x70] sm:$0xff]  ;;  %v6315_v30 = vld [vmem:[#allocation10 + $0x40] sm:$0xff] }
 0x1e8   :  { %3645 = vmatpush.bf16.msra.mxu2 %v5198_v55  ;;  %v5737_v55 = vld [vmem:[#allocation8 + $0x5c0] sm:$0xf] }
 0x1e9   :  { %3668 = vmatpush.bf16.msrb.mxu0 %v5426_v14  ;;  %v6276_v14 = vld [vmem:[#allocation8 + $0x508] sm:$0xf0]  ;;  %v5738_v60 = vor.u32 %v6300_v36, %v5737_v55 }
 0x1ea   :  { %3681 = vmatpush.bf16.msrb.mxu1 %v5522_v31  ;;  %v3454_v15 = vpop.f32.mrf.mxu3  ;;  %3607 = vmatmul.bf16.vlgmr.msrb.gmra.mxu3 %v6636_v11  ;;  %v5354_v31 = vor.u32 %v6204_v12, %v5353_v42  ;;  %v5642_v16 = vor.u32 %v6276_v14, %v5641_v13  ;;  %v5701_v42 = vld [vmem:[#allocation8 + $0x578] sm:$0xf]  ;;  %v5689_v13 = vld [vmem:[#allocation8 + $0x560] sm:$0xf]  ;;  %v6288_v14 = vld [vmem:[#allocation8 + $0x568] sm:$0xf0] }
 0x1eb   :  { %3651 = vmatpush.bf16.msra.mxu3 %v5378_v61  ;;  %3646 = vmatmul.bf16.vlgmr.msra.gmra.mxu2 %v6608_v58  ;;  %v5329_v58 = vld [vmem:[#allocation8 + $0x290] sm:$0xf] }
 0x1ec   :  { %3690 = vmatpush.bf16.msrb.mxu2 %v5666_v63  ;;  %v5725_v63 = vld [vmem:[#allocation8 + $0x5a8] sm:$0xf]  ;;  %v6313_v15 = vld [vmem:[#allocation10 + $0x30] sm:$0xff] }
 0x1ed   :  { %3669 = vmatpush.bf16.msrb.mxu0 %v5414_v22  ;;  %v5330_v22 = vor.u32 %v6198_v10, %v5329_v58  ;;  %v5726_v2 = vor.u32 %v6297_v0, %v5725_v63  ;;  %v5678_v58 = vor.u32 %v6285_v19, %v5677_v18  ;;  %v6311_v10 = vld [vmem:[#allocation10 + $0x20] sm:$0xff]  ;;  %v6326_v18 = vld [vmem:[#allocation10 + $0x98] sm:$0xff]  ;;  %v6325_v19 = vld [vmem:[#allocation10 + $0x90] sm:$0xff] }
 0x1ee   :  { %3682 = vmatpush.bf16.msrb.mxu1 %v5510_v23  ;;  %v5618_v23 = vor.u32 %v6270_v57, %v5617_v20  ;;  %v6310_v57 = vld [vmem:[#allocation10 + $0x18] sm:$0xff] }
 0x1ef   :  { %3652 = vmatpush.bf16.msra.mxu3 %v5366_v8 }
 0x1f0   :  { %3691 = vmatpush.bf16.msrb.mxu2 %v5654_v9 }
 0x1f1   :  { %3670 = vmatpush.bf16.msrb.mxu0 %v5402_v46 }
 0x1f2   :  { %3683 = vmatpush.bf16.msrb.mxu1 %v5498_v51  ;;  %v5762_v51 = vor.u32 %v6306_v48, %v5761_v47 }
 0x1f3   :  { %3653 = vmatpush.bf16.msra.mxu3 %v5354_v31 }
 0x1f4   :  { %3692 = vmatpush.bf16.msrb.mxu2 %v5642_v16  ;;  %v5690_v16 = vor.u32 %v6288_v14, %v5689_v13 }
 0x1f5   :  { %3671 = vmatpush.bf16.msrb.mxu0 %v5390_v1  ;;  %v3465_v27 = vpop.f32.mrf.mxu0 }
 0x1f6   :  { %3684 = vmatpush.bf16.msrb.mxu1 %v5486_v5  ;;  %v3466_v29 = vadd.f32 %v3465_v27, %v6649_v50  ;;  %v5582_v50 = vor.u32 %v6261_v45, %v5581_v44  ;;  %v5714_v5 = vor.u32 %v6294_v4, %v5713_v3 }
 0x1f7   :  { %3654 = vmatpush.bf16.msra.mxu3 %v5342_v53  ;;  %v6312_v53 = vld [vmem:[#allocation10 + $0x28] sm:$0xff] }
 0x1f8   :  { %3672 = vmatmul.bf16.vlgmr.msrb.gmra.mxu0 %v6619_v21  ;;  %3693 = vmatpush.bf16.msrb.mxu2 %v5630_v54  ;;  %v6195_v21 = vld [vmem:[#allocation8 + $0x280] sm:$0xf0] }
 0x1f9   :  { %3685 = vmatmul.bf16.vlgmr.msrb.gmra.mxu1 %v6623_v24  ;;  %v6267_v24 = vld [vmem:[#allocation8 + $0x4c0] sm:$0xf0]  ;;  %v5318_v33 = vor.u32 %v6195_v21, %v5317_v25  ;;  %3914 = vmatpush.bf16.msra.mxu0 %v6314_v7 }
 0x1fa   :  { %v5606_v34 = vor.u32 %v6267_v24, %v5605_v28  ;;  %v6307_v28 = vld [vmem:[#allocation10] sm:$0xff]  ;;  %v6322_v24 = vld [vmem:[#allocation10 + $0x78] sm:$0xff] }
 0x1fb   :  { %3655 = vmatpush.bf16.msra.mxu3 %v5330_v22  ;;  %v6309_v22 = vld [vmem:[#allocation10 + $0x10] sm:$0xff]  ;;  %3927 = vmatpush.bf16.msra.mxu1 %v6322_v24 }
 0x1fc   :  { %3694 = vmatpush.bf16.msrb.mxu2 %v5618_v23  ;;  %v6308_v23 = vld [vmem:[#allocation10 + $0x8] sm:$0xff] }
 0x1fd   :  { %v3467_v46 = vpop.f32.mrf.mxu0  ;;  %3915 = vmatpush.bf16.msra.mxu0 %v6313_v15 }
 0x1ff   :  { %3656 = vmatpush.bf16.msra.mxu3 %v5318_v33  ;;  %3928 = vmatpush.bf16.msra.mxu1 %v6321_v35 }
 0x200   :  { %3695 = vmatpush.bf16.msrb.mxu2 %v5606_v34 }
 0x201   :  { %3916 = vmatpush.bf16.msra.mxu0 %v6312_v53  ;;  %v6324_v53 = vld [vmem:[#allocation10 + $0x88] sm:$0xff] }
 0x202   :  { %v3478_v61 = vpop.f32.mrf.mxu1 }
 0x203   :  { %3657 = vmatpush.bf16.msra.mxu3 %v5306_v39  ;;  %v6658_v1 = vadd.f32 %v3478_v61, %v3466_v29  ;;  %3929 = vmatpush.bf16.msra.mxu1 %v6320_v37 }
 0x204   :  { %3696 = vmatpush.bf16.msrb.mxu2 %v5594_v40  ;;  %v6317_v40 = vld [vmem:[#allocation10 + $0x50] sm:$0xff] }
 0x205   :  { %3917 = vmatpush.bf16.msra.mxu0 %v6311_v10 }
 0x207   :  { %3658 = vmatpush.bf16.msra.mxu3 %v5294_v49  ;;  %3930 = vmatpush.bf16.msra.mxu1 %v6319_v38 }
 0x208   :  { %3697 = vmatpush.bf16.msrb.mxu2 %v5582_v50 }
 0x209   :  { %3918 = vmatpush.bf16.msra.mxu0 %v6310_v57 }
 0x20a   :  { %3659 = vmatmul.bf16.vlgmr.msra.gmra.mxu3 %v6610_v59  ;;  %v3480_v9 = vpop.f32.mrf.mxu1  ;;  %v6291_v59 = vld [vmem:[#allocation8 + $0x580] sm:$0xf0] }
 0x20b   :  { %3703 = vmatpush.bf16.msrb.mxu3 %v5762_v51  ;;  %3698 = vmatmul.bf16.vlgmr.msrb.gmra.mxu2 %v6629_v26  ;;  %v2375_v26 = vperm.slane %v6643_v62, 1  ;;  %v5702_v12 = vor.u32 %v6291_v59, %v5701_v42  ;;  %v6330_v9 = vld [vmem:[#allocation10 + $0xb8] sm:$0xff] }
 0x20c   :  { %3931 = vmatpush.bf16.msra.mxu1 %v6318_v6  ;;  %3940 = vmatpush.bf16.msra.mxu2 %v6330_v9 }
 0x20d   :  { %3919 = vmatpush.bf16.msra.mxu0 %v6309_v22 }
 0x20f   :  { %3704 = vmatpush.bf16.msrb.mxu3 %v5750_v56 }
 0x210   :  { %3932 = vmatpush.bf16.msra.mxu1 %v6317_v40 }
 0x211   :  { %3920 = vmatpush.bf16.msra.mxu0 %v6308_v23 }
 0x213   :  { %3705 = vmatpush.bf16.msrb.mxu3 %v5738_v60 }
 0x214   :  { %3933 = vmatpush.bf16.msra.mxu1 %v6316_v43 }
 0x215   :  { %v3517_v8 = vpop.f32.mrf.mxu0  ;;  %3921 = vmatpush.bf16.msra.mxu0 %v6307_v28 }
 0x216   :  { %v3518_v31 = vadd.f32 %v3517_v8, %v2375_v26  ;;  %v3530_v17 = vpop.f32.mrf.mxu1 }
 0x217   :  { %3706 = vmatpush.bf16.msrb.mxu3 %v5726_v2 }
 0x218   :  { %v3531_v54 = vadd.f32 %v3530_v17, %v3518_v31  ;;  %3934 = vmatpush.bf16.msra.mxu1 %v6315_v30  ;;  %v6328_v31 = vld [vmem:[#allocation10 + $0xa8] sm:$0xff]  ;;  %v6327_v17 = vld [vmem:[#allocation10 + $0xa0] sm:$0xff] }
 0x21b   :  { %3707 = vmatpush.bf16.msrb.mxu3 %v5714_v5 }
 0x21d   :  { %v3519_v32 = vpop.f32.mrf.mxu0 }
 0x21e   :  { %v3532_v20 = vpop.f32.mrf.mxu1 }
 0x21f   :  { %3708 = vmatpush.bf16.msrb.mxu3 %v5702_v12  ;;  %v6329_v12 = vld [vmem:[#allocation10 + $0xb0] sm:$0xff] }
 0x220   :  { %3941 = vmatpush.bf16.msra.mxu2 %v6329_v12 }
 0x223   :  { %3709 = vmatpush.bf16.msrb.mxu3 %v5690_v16 }
 0x224   :  { %3942 = vmatpush.bf16.msra.mxu2 %v6328_v31 }
 0x227   :  { %3710 = vmatpush.bf16.msrb.mxu3 %v5678_v58 }
 0x228   :  { %v3491_v21 = vpop.f32.mrf.mxu2  ;;  %3943 = vmatpush.bf16.msra.mxu2 %v6327_v17 }
 0x229   :  { %v3492_v44 = vadd.f32 %v3491_v21, %v6658_v1 }
 0x22a   :  { %3711 = vmatmul.bf16.vlgmr.msrb.gmra.mxu3 %v6636_v11 }
 0x22c   :  { %3944 = vmatpush.bf16.msra.mxu2 %v6326_v18 }
 0x230   :  { %v3493_v34 = vpop.f32.mrf.mxu2  ;;  %3945 = vmatpush.bf16.msra.mxu2 %v6325_v19 }
 0x234   :  { %3946 = vmatpush.bf16.msra.mxu2 %v6324_v53 }
 0x235   :  { %v3569_v25 = vpop.f32.mrf.mxu0 }
 0x236   :  { %v3582_v27 = vpop.f32.mrf.mxu1 }
 0x238   :  { %v3543_v11 = vpop.f32.mrf.mxu2 }
 0x239   :  { %v3544_v63 = vadd.f32 %v3543_v11, %v3531_v54  ;;  %v6323_v54 = vld [vmem:[#allocation10 + $0x80] sm:$0xff] }
 0x23a   :  { %3947 = vmatpush.bf16.msra.mxu2 %v6323_v54 }
 0x23d   :  { %v3571_v29 = vpop.f32.mrf.mxu0 }
 0x23e   :  { %v3584_v33 = vpop.f32.mrf.mxu1 }
 0x240   :  { %v3545_v39 = vpop.f32.mrf.mxu2 }
 0x241   :  { %v6343_v39 = vld [vmem:[%s6676_s6] ss:$0 sm:$0xff] }
 0x248   :  { %v3504_v48 = vpop.f32.mrf.mxu3 }
 0x249   :  { %v3505_v49 = vadd.f32 %v3504_v48, %v3492_v44 }
 0x24a   :  { %v3595_v51 = vpop.f32.mrf.mxu2 }
 0x24b   :  { %v3716_v52 = vmax.f32 %v3505_v49, 0.0 }
 0x24d   :  { %v3719_v56 = vpack.c.bf16 %v3716_v52, %v3716_v52 }
 0x24f   :  { %3922 = vmatmul.bf16.vlgmr.msra.gmra.mxu0 %v3719_v56 }
 0x250   :  { %v3506_v62 = vpop.f32.mrf.mxu3 }
 0x252   :  { %v3597_v60 = vpop.f32.mrf.mxu2 }
 0x255   :  { %v3621_v45 = vpop.f32.mrf.mxu0 }
 0x256   :  { %v3634_v46 = vpop.f32.mrf.mxu1  ;;  %v3622_v47 = vadd.f32 %v3621_v45, %v2376_v41 }
 0x258   :  { %v3635_v50 = vadd.f32 %v3634_v46, %v3622_v47  ;;  %v3556_v61 = vpop.f32.mrf.mxu3 }
 0x259   :  { %v3557_v0 = vadd.f32 %v3556_v61, %v3544_v63 }
 0x25b   :  { %v3570_v1 = vadd.f32 %v3569_v25, %v3557_v0 }
 0x25d   :  { %v3623_v55 = vpop.f32.mrf.mxu0  ;;  %v3583_v3 = vadd.f32 %v3582_v27, %v3570_v1 }
 0x25e   :  { %v3636_v36 = vpop.f32.mrf.mxu1 }
 0x25f   :  { %v3596_v8 = vadd.f32 %v3595_v51, %v3583_v3 }
 0x260   :  { %v3558_v2 = vpop.f32.mrf.mxu3 }
 0x26d   :  { %v3608_v42 = vpop.f32.mrf.mxu3 }
 0x26e   :  { %v3647_v7 = vpop.f32.mrf.mxu2  ;;  %v3609_v59 = vadd.f32 %v3608_v42, %v3596_v8 }
 0x26f   :  { %v3648_v22 = vadd.f32 %v3647_v7, %v3635_v50 }
 0x270   :  { %v3717_v26 = vmax.f32 %v3609_v59, 0.0 }
 0x272   :  { %v3720_v15 = vpack.c.bf16 %v3717_v26, %v3717_v26 }
 0x274   :  { %3935 = vmatmul.bf16.vlgmr.msra.gmra.mxu1 %v3720_v15 }
 0x275   :  { %v3673_v4 = vpop.f32.mrf.mxu0  ;;  %v3610_v32 = vpop.f32.mrf.mxu3 }
 0x276   :  { %v3686_v5 = vpop.f32.mrf.mxu1  ;;  %v3649_v16 = vpop.f32.mrf.mxu2 }
 0x27d   :  { %v3675_v13 = vpop.f32.mrf.mxu0 }
 0x27e   :  { %v3688_v14 = vpop.f32.mrf.mxu1 }
 0x28d   :  { %v3660_v58 = vpop.f32.mrf.mxu3 }
 0x28e   :  { %v3699_v10 = vpop.f32.mrf.mxu2  ;;  %v3661_v23 = vadd.f32 %v3660_v58, %v3648_v22 }
 0x290   :  { %v3674_v25 = vadd.f32 %v3673_v4, %v3661_v23 }
 0x292   :  { %v3687_v27 = vadd.f32 %v3686_v5, %v3674_v25 }
 0x294   :  { %v3700_v21 = vadd.f32 %v3699_v10, %v3687_v27 }
 0x295   :  { %v3662_v20 = vpop.f32.mrf.mxu3 }
 0x296   :  { %v3701_v57 = vpop.f32.mrf.mxu2 }
 0x2ad   :  { %v3712_v28 = vpop.f32.mrf.mxu3 }
 0x2ae   :  { %v3713_v24 = vadd.f32 %v3712_v28, %v3700_v21 }
 0x2b0   :  { %v3718_v29 = vmax.f32 %v3713_v24, 0.0 }
 0x2b2   :  { %v3721_v33 = vpack.c.bf16 %v3718_v29, %v3718_v29 }
 0x2b4   :  { %3948 = vmatmul.bf16.vlgmr.msra.gmra.mxu2 %v3721_v33 }
 0x2b5   :  { %v3714_v34 = vpop.f32.mrf.mxu3 }
 0x2cc   :  { %v3923_v35 = vpop.f32.mrf.mxu0 }
 0x2d4   :  { %v3925_v37 = vpop.f32.mrf.mxu0 }
 0x2f1   :  { %v3936_v11 = vpop.f32.mrf.mxu1 }
 0x2f2   :  { %v3937_v6 = vadd.f32 %v3936_v11, %v3923_v35 }
 0x2f9   :  { %v3938_v38 = vpop.f32.mrf.mxu1 }
 0x337   :  { %v3949_v40 = vpop.f32.mrf.mxu2 }
 0x338   :  { %v3950_v41 = vadd.f32 %v3949_v40, %v3937_v6 }
 0x33a   :  { %v3957_v43 = vadd.f32 %v6343_v39, %v3950_v41 }
 0x33c   :  { %v3958_v44 = vmul.f32 0.5, %v3957_v43 }
 0x33e   :  { %6344 = vtanh.f32 %v3958_v44 }
 0x33f   :  { %v3951_v45 = vpop.f32.mrf.mxu2 }
 0x344   :  { %v6345_v46 = vpop.eup %6344 }
 0x345   :  { %v3960_v47 = vmul.f32 0.5, %v6345_v46 }
 0x347   :  { %v3961_v48 = vadd.f32 0.5, %v3960_v47 }
 0x349   :  { %3963 = vst.msk [vmem:[%s6677_s7] sm:$0xff] %vm3962_vm4, %v3961_v48 }
 0x34a   :  { %3968 = vsyncpa [#allocation4], 1 }
 0x34b   :  { %3969 = vsyncpa [#allocation6], 1 }
 0x34c   :  { %3970 = vsyncpa [#allocation9], 1 }

</bundles_post_ra>
